<compile_context>
chip_gen: v5e
topology: v5e:2x2
jax: 0.10.0
libtpu: 0.0.40
codegen_flags: <defaults>
</compile_context>

<pallas_src>
import jax
import jax.numpy as jnp
from jax import lax
from jax.experimental import pallas as pl
from jax.experimental.pallas import tpu as pltpu

LANE = 128


def _round_up(x, m):
    return ((x + m - 1) // m) * m


def _pad_axis(a, axis, new_size):
    pad = [(0, 0)] * a.ndim
    pad[axis] = (0, new_size - a.shape[axis])
    return jnp.pad(a, pad)


# ---------------------------------------------------------------------------
# Pallas kernel
# ---------------------------------------------------------------------------
def _bottleneck_kernel(x_ref, w1_ref, w2_ref, w3_ref, b1_ref, b2_ref, b3_ref,
                       o_ref, hp_ref):
    _, H, W, Cp = x_ref.shape        # padded in/out channels (Cin == Cout)
    Wd = w1_ref.shape[1]             # padded bottleneck width

    # ---- conv1 (1x1, BN scale folded into weights) + bias + ReLU ----------
    xb = x_ref[0].reshape(H * W, Cp)                      # bf16 already
    h1 = jnp.dot(xb, w1_ref[...], preferred_element_type=jnp.float32)
    h1 = jnp.maximum(h1 + b1_ref[...], 0.0)

    # ---- stage h1 into the persistent zero-padded scratch (bf16) ----------
    # Border is zeroed every grid step (4 tiny stores) so the kernel stays
    # correct under megacore grid sharding; interior is overwritten each step.
    zrow = jnp.zeros((1, W + 2, Wd), jnp.bfloat16)
    zcol = jnp.zeros((H + 2, 1, Wd), jnp.bfloat16)
    hp_ref[0:1, :, :] = zrow
    hp_ref[H + 1:H + 2, :, :] = zrow
    hp_ref[:, 0:1, :] = zcol
    hp_ref[:, W + 1:W + 2, :] = zcol
    hp_ref[1:H + 1, 1:W + 1, :] = h1.reshape(H, W, Wd).astype(jnp.bfloat16)

    # ---- conv2 (3x3, pad 1): 9 accumulated tap matmuls (no im2col copy) ----
    # Each tap reads a static (H, W, Wd) window of the padded scratch and
    # contributes one K=Wd matmul into a single f32 register accumulator.
    def tap_dot(t):
        dy, dx = divmod(t, 3)
        win = hp_ref[dy:dy + H, dx:dx + W, :].reshape(H * W, Wd)   # bf16
        return jnp.dot(win, w2_ref[t], preferred_element_type=jnp.float32)

    h2 = tap_dot(0)
    for t in range(1, 9):
        h2 = h2 + tap_dot(t)
    h2 = jnp.maximum(h2 + b2_ref[...], 0.0)

    # ---- conv3 (1x1) + bias + residual add + ReLU --------------------------
    h3 = jnp.dot(h2.astype(jnp.bfloat16), w3_ref[...],
                 preferred_element_type=jnp.float32)
    h3 = h3 + b3_ref[...]
    identity = x_ref[0].reshape(H * W, Cp).astype(jnp.float32)
    out = jnp.maximum(h3 + identity, 0.0)
    o_ref[0] = out.reshape(H, W, Cp)


def _vmem_limit_bytes():
    """~85% of physical VMEM (headroom for compiler scratch); None if unknown."""
    try:
        info = pltpu.get_tpu_info()
        cap = getattr(info, "vmem_capacity_bytes", None)
        if cap is None:
            return None
        return int(cap * 0.85)
    except Exception:
        return None


def _build_call(shapes, single_buffer_weights):
    """Construct the pallas_call callable for the given (static) shapes."""
    (N, H, W, Cp), Wp = shapes

    def const_spec(shape):
        nd = len(shape)
        if single_buffer_weights:
            # Constant across the grid: one VMEM buffer is enough.
            return pl.BlockSpec(shape, lambda n: (0,) * nd,
                                pipeline_mode=pl.Buffered(1))
        return pl.BlockSpec(shape, lambda n: (0,) * nd)

    cp_kwargs = dict(dimension_semantics=("parallel",))
    vl = _vmem_limit_bytes()
    if vl is not None:
        cp_kwargs["vmem_limit_bytes"] = vl

    return pl.pallas_call(
        _bottleneck_kernel,
        out_shape=jax.ShapeDtypeStruct((N, H, W, Cp), jnp.float32),
        grid_spec=pltpu.PrefetchScalarGridSpec(
            num_scalar_prefetch=0,
            grid=(N,),
            in_specs=[
                pl.BlockSpec((1, H, W, Cp), lambda n: (n, 0, 0, 0)),
                const_spec((Cp, Wp)),          # w1
                const_spec((9, Wp, Wp)),       # w2 taps
                const_spec((Wp, Cp)),          # w3
                const_spec((1, Wp)),           # b1
                const_spec((1, Wp)),           # b2
                const_spec((1, Cp)),           # b3
            ],
            out_specs=pl.BlockSpec((1, H, W, Cp), lambda n: (n, 0, 0, 0)),
            scratch_shapes=[pltpu.VMEM((H + 2, W + 2, Wp), jnp.bfloat16)],
        ),
        compiler_params=pltpu.CompilerParams(**cp_kwargs),
    )


def bottleneck_pallas(x_nhwc, w1, w2, w3, b1, b2, b3):
    """x_nhwc: (N,H,W,Cp) bf16 (channel-padded); w1:(Cp,Wp) bf16;
    w2:(9,Wp,Wp) bf16; w3:(Wp,Cp) bf16; b1,b2:(1,Wp) f32; b3:(1,Cp) f32."""
    N, H, W, Cp = x_nhwc.shape
    Wp = w1.shape[1]
    shapes = ((N, H, W, Cp), Wp)
    args = (x_nhwc, w1, w2, w3, b1, b2, b3)
    try:
        out = _build_call(shapes, single_buffer_weights=True)(*args)
        return jax.block_until_ready(out)
    except Exception:
        # pipeline_mode=pl.Buffered(1) unsupported on this jax/backend combo:
        # fall back to default double-buffered constant operands.
        out = _build_call(shapes, single_buffer_weights=False)(*args)
        return jax.block_until_ready(out)


# ---------------------------------------------------------------------------
# Wrapper: BN folding, NHWC repacking, channel padding, bf16 casts.
# ---------------------------------------------------------------------------
def fold_and_pack(params, eps=1e-5):
    def fold(bn):
        gamma, beta, mean, var = bn
        scale = gamma / jnp.sqrt(var + eps)
        bias = beta - mean * scale
        return scale, bias

    s1, b1 = fold(params["bn1"])
    s2, b2 = fold(params["bn2"])
    s3, b3 = fold(params["bn3"])

    # OIHW -> matmul layouts, with BN scale folded into the output channels.
    w1 = jnp.transpose(params["w1"][:, :, 0, 0], (1, 0)) * s1[None, :]        # (Cin, width)
    w2 = jnp.transpose(params["w2"], (2, 3, 1, 0)) * s2[None, None, None, :]  # (kh,kw,in,out)
    w3 = jnp.transpose(params["w3"][:, :, 0, 0], (1, 0)) * s3[None, :]        # (width, Cout)

    Cin, width = w1.shape
    Cout = w3.shape[1]
    assert Cin == Cout, "no-downsample Bottleneck requires inplanes == planes*4"
    Cp = _round_up(Cin, LANE)
    Wp = _round_up(width, LANE)

    w1p = _pad_axis(_pad_axis(w1, 0, Cp), 1, Wp).astype(jnp.bfloat16)
    w2p = _pad_axis(_pad_axis(w2, 2, Wp), 3, Wp).reshape(9, Wp, Wp).astype(jnp.bfloat16)
    w3p = _pad_axis(_pad_axis(w3, 0, Wp), 1, Cp).astype(jnp.bfloat16)
    b1p = _pad_axis(b1[None, :], 1, Wp).astype(jnp.float32)
    b2p = _pad_axis(b2[None, :], 1, Wp).astype(jnp.float32)
    b3p = _pad_axis(b3[None, :], 1, Cp).astype(jnp.float32)
    return (w1p, w2p, w3p, b1p, b2p, b3p), Cp


def bottleneck_forward(x_nchw, params):
    """Full forward, NCHW f32 in/out, matching PyTorch Bottleneck (eval mode)."""
    packed, Cp = fold_and_pack(params)
    N, Cin, H, W = x_nchw.shape
    x_nhwc = jnp.transpose(x_nchw, (0, 2, 3, 1))
    # bf16 activation into the kernel (halves input HBM bytes on v5e/v6e);
    # the residual add upconverts to f32 inside the kernel.
    x_pad = _pad_axis(x_nhwc, 3, Cp).astype(jnp.bfloat16)
    out = bottleneck_pallas(x_pad, *packed)
    out = out[..., :Cin]
    return jnp.transpose(out, (0, 3, 1, 2))


# ---------------------------------------------------------------------------
# Pure-JAX reference (NCHW, matches PyTorch semantics) for correctness check.
# ---------------------------------------------------------------------------
def _conv_nchw(x, w, padding):
    return lax.conv_general_dilated(
        x, w, window_strides=(1, 1), padding=padding,
        dimension_numbers=("NCHW", "OIHW", "NCHW"))


def _bn_eval(x, gamma, beta, mean, var, eps=1e-5):
    scale = gamma / jnp.sqrt(var + eps)
    bias = beta - mean * scale
    return x * scale[None, :, None, None] + bias[None, :, None, None]


def bottleneck_ref(x, params):
    p = params
    out = _conv_nchw(x, p["w1"], [(0, 0), (0, 0)])
    out = jnp.maximum(_bn_eval(out, *p["bn1"]), 0.0)
    out = _conv_nchw(out, p["w2"], [(1, 1), (1, 1)])
    out = jnp.maximum(_bn_eval(out, *p["bn2"]), 0.0)
    out = _conv_nchw(out, p["w3"], [(0, 0), (0, 0)])
    out = _bn_eval(out, *p["bn3"])
    return jnp.maximum(out + x, 0.0)


# ---------------------------------------------------------------------------
# Parameter setup + driver
# ---------------------------------------------------------------------------
def make_params(key, inplanes, planes, base_width=64, groups=1):
    expansion = 4
    width = int(planes * (base_width / 64.0)) * groups
    cout = planes * expansion
    ks = jax.random.split(key, 6)

    def bn(k, c):
        k1, k2, k3, k4 = jax.random.split(k, 4)
        gamma = jax.random.uniform(k1, (c,), jnp.float32, 0.5, 1.5)
        beta = jax.random.normal(k2, (c,), jnp.float32) * 0.1
        mean = jax.random.normal(k3, (c,), jnp.float32) * 0.1
        var = jax.random.uniform(k4, (c,), jnp.float32, 0.5, 1.5)
        return gamma, beta, mean, var

    params = {
        "w1": jax.random.normal(ks[0], (width, inplanes, 1, 1), jnp.float32) * 0.1,
        "w2": jax.random.normal(ks[1], (width, width, 3, 3), jnp.float32) * 0.1,
        "w3": jax.random.normal(ks[2], (cout, width, 1, 1), jnp.float32) * 0.1,
        "bn1": bn(ks[3], width),
        "bn2": bn(ks[4], width),
        "bn3": bn(ks[5], cout),
    }
    return params, width, cout


if __name__ == "__main__":
    # Small shapes: inplanes must equal planes*4 so downsample=None is valid.
    N, inplanes, planes, H, W = 2, 16, 4, 8, 8

    key = jax.random.PRNGKey(0)
    kx, kp = jax.random.split(key)
    x_nchw = jax.random.normal(kx, (N, inplanes, H, W), jnp.float32)
    params, width, cout = make_params(kp, inplanes, planes)

    out = bottleneck_forward(x_nchw, params)
    out = jax.block_until_ready(out)

    ref = bottleneck_ref(x_nchw, params)
    assert out.shape == ref.shape == (N, inplanes, H, W)
    err = float(jnp.max(jnp.abs(out - ref)))
    # bf16 MXU operands + bf16 activation I/O (f32 accumulation) -> small
    # rounding error vs the all-f32 reference.
    assert err < 5e-2, f"max abs err {err}"

    print("KERNEL_OK")
</pallas_src>

<mosaic_0001>
module attributes {stable_mosaic.version = 11 : i64} {
  func.func @_bottleneck_kernel(%arg0: i32, %arg1: memref<1x8x8x128xbf16, #tpu.memory_space<vmem>>, %arg2: memref<128x128xbf16, #tpu.memory_space<vmem>>, %arg3: memref<9x128x128xbf16, #tpu.memory_space<vmem>>, %arg4: memref<128x128xbf16, #tpu.memory_space<vmem>>, %arg5: memref<1x128xf32, #tpu.memory_space<vmem>>, %arg6: memref<1x128xf32, #tpu.memory_space<vmem>>, %arg7: memref<1x128xf32, #tpu.memory_space<vmem>>, %arg8: memref<1x8x8x128xf32, #tpu.memory_space<vmem>>, %arg9: memref<10x10x128xbf16, #tpu.memory_space<vmem>>) attributes {dimension_semantics = [#tpu.dimension_semantics<parallel>], iteration_bounds = array<i64: 2>, scalar_prefetch = 0 : i64, scratch_operands = 1 : i64, tpu.core_type = #tpu.core_type<tc>, window_params = [{transform_indices = @transform_0, window_bounds = array<i64: 1, 8, 8, 128>}, {pipeline_mode = #tpu.pipeline_mode<synchronous>, transform_indices = @transform_1, window_bounds = array<i64: 128, 128>}, {pipeline_mode = #tpu.pipeline_mode<synchronous>, transform_indices = @transform_2, window_bounds = array<i64: 9, 128, 128>}, {pipeline_mode = #tpu.pipeline_mode<synchronous>, transform_indices = @transform_3, window_bounds = array<i64: 128, 128>}, {pipeline_mode = #tpu.pipeline_mode<synchronous>, transform_indices = @transform_4, window_bounds = array<i64: 1, 128>}, {pipeline_mode = #tpu.pipeline_mode<synchronous>, transform_indices = @transform_5, window_bounds = array<i64: 1, 128>}, {pipeline_mode = #tpu.pipeline_mode<synchronous>, transform_indices = @transform_6, window_bounds = array<i64: 1, 128>}, {transform_indices = @transform_7, window_bounds = array<i64: 1, 8, 8, 128>}]} {
    %c0 = arith.constant 0 : index
    %c0_0 = arith.constant 0 : index
    %c0_1 = arith.constant 0 : index
    %c0_2 = arith.constant 0 : index
    %0 = vector.load %arg1[%c0, %c0_0, %c0_1, %c0_2] : memref<1x8x8x128xbf16, #tpu.memory_space<vmem>>, vector<1x8x8x128xbf16>
    %1 = vector.shape_cast %0 : vector<1x8x8x128xbf16> to vector<8x8x128xbf16>
    %2 = vector.shape_cast %1 : vector<8x8x128xbf16> to vector<64x128xbf16>
    %c0_3 = arith.constant 0 : index
    %c0_4 = arith.constant 0 : index
    %3 = vector.load %arg2[%c0_3, %c0_4] : memref<128x128xbf16, #tpu.memory_space<vmem>>, vector<128x128xbf16>
    %cst = arith.constant dense<0.000000e+00> : vector<64x128xf32>
    %4 = tpu.matmul %2, %3, %cst {dimension_numbers = #tpu.dot_dimension_numbers<[1], [0], [0], [1], [0, 0, 1, 1], [], []>} : vector<64x128xbf16>, vector<128x128xbf16>, vector<64x128xf32> -> vector<64x128xf32>
    %c0_5 = arith.constant 0 : index
    %c0_6 = arith.constant 0 : index
    %5 = vector.load %arg5[%c0_5, %c0_6] : memref<1x128xf32, #tpu.memory_space<vmem>>, vector<1x128xf32>
    %6 = vector.broadcast %5 : vector<1x128xf32> to vector<64x128xf32>
    %7 = arith.addf %4, %6 : vector<64x128xf32>
    %cst_7 = arith.constant 0.000000e+00 : f32
    %8 = vector.broadcast %cst_7 : f32 to vector<64x128xf32>
    %9 = arith.maximumf %7, %8 : vector<64x128xf32>
    %cst_8 = arith.constant 0.000000e+00 : bf16
    %10 = vector.broadcast %cst_8 : bf16 to vector<1x10x128xbf16>
    %cst_9 = arith.constant 0.000000e+00 : bf16
    %11 = vector.broadcast %cst_9 : bf16 to vector<10x1x128xbf16>
    %c0_10 = arith.constant 0 : index
    %c0_11 = arith.constant 0 : index
    %c0_12 = arith.constant 0 : index
    %12 = vector.load %arg9[%c0_10, %c0_11, %c0_12] : memref<10x10x128xbf16, #tpu.memory_space<vmem>>, vector<1x10x128xbf16>
    tpu.vector_store %arg9[%c0_10, %c0_11, %c0_12], %10 {strides = array<i32>} : memref<10x10x128xbf16, #tpu.memory_space<vmem>>, vector<1x10x128xbf16>,
    %c9 = arith.constant 9 : index
    %c0_13 = arith.constant 0 : index
    %c0_14 = arith.constant 0 : index
    %13 = vector.load %arg9[%c9, %c0_13, %c0_14] : memref<10x10x128xbf16, #tpu.memory_space<vmem>>, vector<1x10x128xbf16>
    tpu.vector_store %arg9[%c9, %c0_13, %c0_14], %10 {strides = array<i32>} : memref<10x10x128xbf16, #tpu.memory_space<vmem>>, vector<1x10x128xbf16>,
    %c0_15 = arith.constant 0 : index
    %c0_16 = arith.constant 0 : index
    %c0_17 = arith.constant 0 : index
    %14 = vector.load %arg9[%c0_15, %c0_16, %c0_17] : memref<10x10x128xbf16, #tpu.memory_space<vmem>>, vector<10x1x128xbf16>
    tpu.vector_store %arg9[%c0_15, %c0_16, %c0_17], %11 {strides = array<i32>} : memref<10x10x128xbf16, #tpu.memory_space<vmem>>, vector<10x1x128xbf16>,
    %c0_18 = arith.constant 0 : index
    %c9_19 = arith.constant 9 : index
    %c0_20 = arith.constant 0 : index
    %15 = vector.load %arg9[%c0_18, %c9_19, %c0_20] : memref<10x10x128xbf16, #tpu.memory_space<vmem>>, vector<10x1x128xbf16>
    tpu.vector_store %arg9[%c0_18, %c9_19, %c0_20], %11 {strides = array<i32>} : memref<10x10x128xbf16, #tpu.memory_space<vmem>>, vector<10x1x128xbf16>,
    %16 = vector.shape_cast %9 : vector<64x128xf32> to vector<8x8x128xf32>
    %17 = arith.truncf %16 : vector<8x8x128xf32> to vector<8x8x128xbf16>
    %c1 = arith.constant 1 : index
    %c1_21 = arith.constant 1 : index
    %c0_22 = arith.constant 0 : index
    %18 = vector.load %arg9[%c1, %c1_21, %c0_22] : memref<10x10x128xbf16, #tpu.memory_space<vmem>>, vector<8x8x128xbf16>
    tpu.vector_store %arg9[%c1, %c1_21, %c0_22], %17 {strides = array<i32>} : memref<10x10x128xbf16, #tpu.memory_space<vmem>>, vector<8x8x128xbf16>,
    %c0_23 = arith.constant 0 : index
    %c0_24 = arith.constant 0 : index
    %c0_25 = arith.constant 0 : index
    %19 = vector.load %arg9[%c0_23, %c0_24, %c0_25] : memref<10x10x128xbf16, #tpu.memory_space<vmem>>, vector<8x8x128xbf16>
    %20 = vector.shape_cast %19 : vector<8x8x128xbf16> to vector<64x128xbf16>
    %c0_26 = arith.constant 0 : index
    %c0_27 = arith.constant 0 : index
    %c0_28 = arith.constant 0 : index
    %21 = vector.load %arg3[%c0_26, %c0_27, %c0_28] : memref<9x128x128xbf16, #tpu.memory_space<vmem>>, vector<1x128x128xbf16>
    %22 = vector.shape_cast %21 : vector<1x128x128xbf16> to vector<128x128xbf16>
    %cst_29 = arith.constant dense<0.000000e+00> : vector<64x128xf32>
    %23 = tpu.matmul %20, %22, %cst_29 {dimension_numbers = #tpu.dot_dimension_numbers<[1], [0], [0], [1], [0, 0, 1, 1], [], []>} : vector<64x128xbf16>, vector<128x128xbf16>, vector<64x128xf32> -> vector<64x128xf32>
    %c0_30 = arith.constant 0 : index
    %c1_31 = arith.constant 1 : index
    %c0_32 = arith.constant 0 : index
    %24 = vector.load %arg9[%c0_30, %c1_31, %c0_32] : memref<10x10x128xbf16, #tpu.memory_space<vmem>>, vector<8x8x128xbf16>
    %25 = vector.shape_cast %24 : vector<8x8x128xbf16> to vector<64x128xbf16>
    %c1_33 = arith.constant 1 : index
    %c0_34 = arith.constant 0 : index
    %c0_35 = arith.constant 0 : index
    %26 = vector.load %arg3[%c1_33, %c0_34, %c0_35] : memref<9x128x128xbf16, #tpu.memory_space<vmem>>, vector<1x128x128xbf16>
    %27 = vector.shape_cast %26 : vector<1x128x128xbf16> to vector<128x128xbf16>
    %cst_36 = arith.constant dense<0.000000e+00> : vector<64x128xf32>
    %28 = tpu.matmul %25, %27, %cst_36 {dimension_numbers = #tpu.dot_dimension_numbers<[1], [0], [0], [1], [0, 0, 1, 1], [], []>} : vector<64x128xbf16>, vector<128x128xbf16>, vector<64x128xf32> -> vector<64x128xf32>
    %29 = arith.addf %23, %28 : vector<64x128xf32>
    %c0_37 = arith.constant 0 : index
    %c2 = arith.constant 2 : index
    %c0_38 = arith.constant 0 : index
    %30 = vector.load %arg9[%c0_37, %c2, %c0_38] : memref<10x10x128xbf16, #tpu.memory_space<vmem>>, vector<8x8x128xbf16>
    %31 = vector.shape_cast %30 : vector<8x8x128xbf16> to vector<64x128xbf16>
    %c2_39 = arith.constant 2 : index
    %c0_40 = arith.constant 0 : index
    %c0_41 = arith.constant 0 : index
    %32 = vector.load %arg3[%c2_39, %c0_40, %c0_41] : memref<9x128x128xbf16, #tpu.memory_space<vmem>>, vector<1x128x128xbf16>
    %33 = vector.shape_cast %32 : vector<1x128x128xbf16> to vector<128x128xbf16>
    %cst_42 = arith.constant dense<0.000000e+00> : vector<64x128xf32>
    %34 = tpu.matmul %31, %33, %cst_42 {dimension_numbers = #tpu.dot_dimension_numbers<[1], [0], [0], [1], [0, 0, 1, 1], [], []>} : vector<64x128xbf16>, vector<128x128xbf16>, vector<64x128xf32> -> vector<64x128xf32>
    %35 = arith.addf %29, %34 : vector<64x128xf32>
    %c1_43 = arith.constant 1 : index
    %c0_44 = arith.constant 0 : index
    %c0_45 = arith.constant 0 : index
    %36 = vector.load %arg9[%c1_43, %c0_44, %c0_45] : memref<10x10x128xbf16, #tpu.memory_space<vmem>>, vector<8x8x128xbf16>
    %37 = vector.shape_cast %36 : vector<8x8x128xbf16> to vector<64x128xbf16>
    %c3 = arith.constant 3 : index
    %c0_46 = arith.constant 0 : index
    %c0_47 = arith.constant 0 : index
    %38 = vector.load %arg3[%c3, %c0_46, %c0_47] : memref<9x128x128xbf16, #tpu.memory_space<vmem>>, vector<1x128x128xbf16>
    %39 = vector.shape_cast %38 : vector<1x128x128xbf16> to vector<128x128xbf16>
    %cst_48 = arith.constant dense<0.000000e+00> : vector<64x128xf32>
    %40 = tpu.matmul %37, %39, %cst_48 {dimension_numbers = #tpu.dot_dimension_numbers<[1], [0], [0], [1], [0, 0, 1, 1], [], []>} : vector<64x128xbf16>, vector<128x128xbf16>, vector<64x128xf32> -> vector<64x128xf32>
    %41 = arith.addf %35, %40 : vector<64x128xf32>
    %c1_49 = arith.constant 1 : index
    %c1_50 = arith.constant 1 : index
    %c0_51 = arith.constant 0 : index
    %42 = vector.load %arg9[%c1_49, %c1_50, %c0_51] : memref<10x10x128xbf16, #tpu.memory_space<vmem>>, vector<8x8x128xbf16>
    %43 = vector.shape_cast %42 : vector<8x8x128xbf16> to vector<64x128xbf16>
    %c4 = arith.constant 4 : index
    %c0_52 = arith.constant 0 : index
    %c0_53 = arith.constant 0 : index
    %44 = vector.load %arg3[%c4, %c0_52, %c0_53] : memref<9x128x128xbf16, #tpu.memory_space<vmem>>, vector<1x128x128xbf16>
    %45 = vector.shape_cast %44 : vector<1x128x128xbf16> to vector<128x128xbf16>
    %cst_54 = arith.constant dense<0.000000e+00> : vector<64x128xf32>
    %46 = tpu.matmul %43, %45, %cst_54 {dimension_numbers = #tpu.dot_dimension_numbers<[1], [0], [0], [1], [0, 0, 1, 1], [], []>} : vector<64x128xbf16>, vector<128x128xbf16>, vector<64x128xf32> -> vector<64x128xf32>
    %47 = arith.addf %41, %46 : vector<64x128xf32>
    %c1_55 = arith.constant 1 : index
    %c2_56 = arith.constant 2 : index
    %c0_57 = arith.constant 0 : index
    %48 = vector.load %arg9[%c1_55, %c2_56, %c0_57] : memref<10x10x128xbf16, #tpu.memory_space<vmem>>, vector<8x8x128xbf16>
    %49 = vector.shape_cast %48 : vector<8x8x128xbf16> to vector<64x128xbf16>
    %c5 = arith.constant 5 : index
    %c0_58 = arith.constant 0 : index
    %c0_59 = arith.constant 0 : index
    %50 = vector.load %arg3[%c5, %c0_58, %c0_59] : memref<9x128x128xbf16, #tpu.memory_space<vmem>>, vector<1x128x128xbf16>
    %51 = vector.shape_cast %50 : vector<1x128x128xbf16> to vector<128x128xbf16>
    %cst_60 = arith.constant dense<0.000000e+00> : vector<64x128xf32>
    %52 = tpu.matmul %49, %51, %cst_60 {dimension_numbers = #tpu.dot_dimension_numbers<[1], [0], [0], [1], [0, 0, 1, 1], [], []>} : vector<64x128xbf16>, vector<128x128xbf16>, vector<64x128xf32> -> vector<64x128xf32>
    %53 = arith.addf %47, %52 : vector<64x128xf32>
    %c2_61 = arith.constant 2 : index
    %c0_62 = arith.constant 0 : index
    %c0_63 = arith.constant 0 : index
    %54 = vector.load %arg9[%c2_61, %c0_62, %c0_63] : memref<10x10x128xbf16, #tpu.memory_space<vmem>>, vector<8x8x128xbf16>
    %55 = vector.shape_cast %54 : vector<8x8x128xbf16> to vector<64x128xbf16>
    %c6 = arith.constant 6 : index
    %c0_64 = arith.constant 0 : index
    %c0_65 = arith.constant 0 : index
    %56 = vector.load %arg3[%c6, %c0_64, %c0_65] : memref<9x128x128xbf16, #tpu.memory_space<vmem>>, vector<1x128x128xbf16>
    %57 = vector.shape_cast %56 : vector<1x128x128xbf16> to vector<128x128xbf16>
    %cst_66 = arith.constant dense<0.000000e+00> : vector<64x128xf32>
    %58 = tpu.matmul %55, %57, %cst_66 {dimension_numbers = #tpu.dot_dimension_numbers<[1], [0], [0], [1], [0, 0, 1, 1], [], []>} : vector<64x128xbf16>, vector<128x128xbf16>, vector<64x128xf32> -> vector<64x128xf32>
    %59 = arith.addf %53, %58 : vector<64x128xf32>
    %c2_67 = arith.constant 2 : index
    %c1_68 = arith.constant 1 : index
    %c0_69 = arith.constant 0 : index
    %60 = vector.load %arg9[%c2_67, %c1_68, %c0_69] : memref<10x10x128xbf16, #tpu.memory_space<vmem>>, vector<8x8x128xbf16>
    %61 = vector.shape_cast %60 : vector<8x8x128xbf16> to vector<64x128xbf16>
    %c7 = arith.constant 7 : index
    %c0_70 = arith.constant 0 : index
    %c0_71 = arith.constant 0 : index
    %62 = vector.load %arg3[%c7, %c0_70, %c0_71] : memref<9x128x128xbf16, #tpu.memory_space<vmem>>, vector<1x128x128xbf16>
    %63 = vector.shape_cast %62 : vector<1x128x128xbf16> to vector<128x128xbf16>
    %cst_72 = arith.constant dense<0.000000e+00> : vector<64x128xf32>
    %64 = tpu.matmul %61, %63, %cst_72 {dimension_numbers = #tpu.dot_dimension_numbers<[1], [0], [0], [1], [0, 0, 1, 1], [], []>} : vector<64x128xbf16>, vector<128x128xbf16>, vector<64x128xf32> -> vector<64x128xf32>
    %65 = arith.addf %59, %64 : vector<64x128xf32>
    %c2_73 = arith.constant 2 : index
    %c2_74 = arith.constant 2 : index
    %c0_75 = arith.constant 0 : index
    %66 = vector.load %arg9[%c2_73, %c2_74, %c0_75] : memref<10x10x128xbf16, #tpu.memory_space<vmem>>, vector<8x8x128xbf16>
    %67 = vector.shape_cast %66 : vector<8x8x128xbf16> to vector<64x128xbf16>
    %c8 = arith.constant 8 : index
    %c0_76 = arith.constant 0 : index
    %c0_77 = arith.constant 0 : index
    %68 = vector.load %arg3[%c8, %c0_76, %c0_77] : memref<9x128x128xbf16, #tpu.memory_space<vmem>>, vector<1x128x128xbf16>
    %69 = vector.shape_cast %68 : vector<1x128x128xbf16> to vector<128x128xbf16>
    %cst_78 = arith.constant dense<0.000000e+00> : vector<64x128xf32>
    %70 = tpu.matmul %67, %69, %cst_78 {dimension_numbers = #tpu.dot_dimension_numbers<[1], [0], [0], [1], [0, 0, 1, 1], [], []>} : vector<64x128xbf16>, vector<128x128xbf16>, vector<64x128xf32> -> vector<64x128xf32>
    %71 = arith.addf %65, %70 : vector<64x128xf32>
    %c0_79 = arith.constant 0 : index
    %c0_80 = arith.constant 0 : index
    %72 = vector.load %arg6[%c0_79, %c0_80] : memref<1x128xf32, #tpu.memory_space<vmem>>, vector<1x128xf32>
    %73 = vector.broadcast %72 : vector<1x128xf32> to vector<64x128xf32>
    %74 = arith.addf %71, %73 : vector<64x128xf32>
    %cst_81 = arith.constant 0.000000e+00 : f32
    %75 = vector.broadcast %cst_81 : f32 to vector<64x128xf32>
    %76 = arith.maximumf %74, %75 : vector<64x128xf32>
    %77 = arith.truncf %76 : vector<64x128xf32> to vector<64x128xbf16>
    %c0_82 = arith.constant 0 : index
    %c0_83 = arith.constant 0 : index
    %78 = vector.load %arg4[%c0_82, %c0_83] : memref<128x128xbf16, #tpu.memory_space<vmem>>, vector<128x128xbf16>
    %cst_84 = arith.constant dense<0.000000e+00> : vector<64x128xf32>
    %79 = tpu.matmul %77, %78, %cst_84 {dimension_numbers = #tpu.dot_dimension_numbers<[1], [0], [0], [1], [0, 0, 1, 1], [], []>} : vector<64x128xbf16>, vector<128x128xbf16>, vector<64x128xf32> -> vector<64x128xf32>
    %c0_85 = arith.constant 0 : index
    %c0_86 = arith.constant 0 : index
    %80 = vector.load %arg7[%c0_85, %c0_86] : memref<1x128xf32, #tpu.memory_space<vmem>>, vector<1x128xf32>
    %81 = vector.broadcast %80 : vector<1x128xf32> to vector<64x128xf32>
    %82 = arith.addf %79, %81 : vector<64x128xf32>
    %c0_87 = arith.constant 0 : index
    %c0_88 = arith.constant 0 : index
    %c0_89 = arith.constant 0 : index
    %c0_90 = arith.constant 0 : index
    %83 = vector.load %arg1[%c0_87, %c0_88, %c0_89, %c0_90] : memref<1x8x8x128xbf16, #tpu.memory_space<vmem>>, vector<1x8x8x128xbf16>
    %84 = vector.shape_cast %83 : vector<1x8x8x128xbf16> to vector<8x8x128xbf16>
    %85 = vector.shape_cast %84 : vector<8x8x128xbf16> to vector<64x128xbf16>
    %86 = arith.extf %85 : vector<64x128xbf16> to vector<64x128xf32>
    %87 = arith.addf %82, %86 : vector<64x128xf32>
    %cst_91 = arith.constant 0.000000e+00 : f32
    %88 = vector.broadcast %cst_91 : f32 to vector<64x128xf32>
    %89 = arith.maximumf %87, %88 : vector<64x128xf32>
    %90 = vector.shape_cast %89 : vector<64x128xf32> to vector<8x8x128xf32>
    %c0_92 = arith.constant 0 : index
    %c0_93 = arith.constant 0 : index
    %c0_94 = arith.constant 0 : index
    %c0_95 = arith.constant 0 : index
    %91 = vector.load %arg8[%c0_92, %c0_93, %c0_94, %c0_95] : memref<1x8x8x128xf32, #tpu.memory_space<vmem>>, vector<1x8x8x128xf32>
    %92 = vector.shape_cast %91 : vector<1x8x8x128xf32> to vector<8x8x128xf32>
    %93 = vector.shape_cast %90 : vector<8x8x128xf32> to vector<1x8x8x128xf32>
    tpu.vector_store %arg8[%c0_92, %c0_93, %c0_94, %c0_95], %93 {strides = array<i32>} : memref<1x8x8x128xf32, #tpu.memory_space<vmem>>, vector<1x8x8x128xf32>,
    return
  }
  func.func @transform_0(%arg0: i32) -> (i32, i32, i32, i32) {
    %c0_i32 = arith.constant 0 : i32
    %c0_i32_0 = arith.constant 0 : i32
    %c0_i32_1 = arith.constant 0 : i32
    %c0_i32_2 = arith.constant 0 : i32
    return %arg0, %c0_i32, %c0_i32_0, %c0_i32_1 : i32, i32, i32, i32
  }
  func.func @transform_1(%arg0: i32) -> (i32, i32) {
    %c0_i32 = arith.constant 0 : i32
    %c0_i32_0 = arith.constant 0 : i32
    %c0_i32_1 = arith.constant 0 : i32
    return %c0_i32, %c0_i32_0 : i32, i32
  }
  func.func @transform_2(%arg0: i32) -> (i32, i32, i32) {
    %c0_i32 = arith.constant 0 : i32
    %c0_i32_0 = arith.constant 0 : i32
    %c0_i32_1 = arith.constant 0 : i32
    %c0_i32_2 = arith.constant 0 : i32
    return %c0_i32, %c0_i32_0, %c0_i32_1 : i32, i32, i32
  }
  func.func @transform_3(%arg0: i32) -> (i32, i32) {
    %c0_i32 = arith.constant 0 : i32
    %c0_i32_0 = arith.constant 0 : i32
    %c0_i32_1 = arith.constant 0 : i32
    return %c0_i32, %c0_i32_0 : i32, i32
  }
  func.func @transform_4(%arg0: i32) -> (i32, i32) {
    %c0_i32 = arith.constant 0 : i32
    %c0_i32_0 = arith.constant 0 : i32
    %c0_i32_1 = arith.constant 0 : i32
    return %c0_i32, %c0_i32_0 : i32, i32
  }
  func.func @transform_5(%arg0: i32) -> (i32, i32) {
    %c0_i32 = arith.constant 0 : i32
    %c0_i32_0 = arith.constant 0 : i32
    %c0_i32_1 = arith.constant 0 : i32
    return %c0_i32, %c0_i32_0 : i32, i32
  }
  func.func @transform_6(%arg0: i32) -> (i32, i32) {
    %c0_i32 = arith.constant 0 : i32
    %c0_i32_0 = arith.constant 0 : i32
    %c0_i32_1 = arith.constant 0 : i32
    return %c0_i32, %c0_i32_0 : i32, i32
  }
  func.func @transform_7(%arg0: i32) -> (i32, i32, i32, i32) {
    %c0_i32 = arith.constant 0 : i32
    %c0_i32_0 = arith.constant 0 : i32
    %c0_i32_1 = arith.constant 0 : i32
    %c0_i32_2 = arith.constant 0 : i32
    return %arg0, %c0_i32, %c0_i32_0, %c0_i32_1 : i32, i32, i32, i32
  }
}

module attributes {stable_mosaic.version = 11 : i64} {
  func.func @_bottleneck_kernel(%arg0: i32, %arg1: memref<1x8x8x128xbf16, #tpu.memory_space<vmem>>, %arg2: memref<128x128xbf16, #tpu.memory_space<vmem>>, %arg3: memref<9x128x128xbf16, #tpu.memory_space<vmem>>, %arg4: memref<128x128xbf16, #tpu.memory_space<vmem>>, %arg5: memref<1x128xf32, #tpu.memory_space<vmem>>, %arg6: memref<1x128xf32, #tpu.memory_space<vmem>>, %arg7: memref<1x128xf32, #tpu.memory_space<vmem>>, %arg8: memref<1x8x8x128xf32, #tpu.memory_space<vmem>>, %arg9: memref<10x10x128xbf16, #tpu.memory_space<vmem>>) attributes {dimension_semantics = [#tpu.dimension_semantics<parallel>], iteration_bounds = array<i64: 2>, scalar_prefetch = 0 : i64, scratch_operands = 1 : i64, tpu.core_type = #tpu.core_type<tc>, window_params = [{transform_indices = @transform_0, window_bounds = array<i64: 1, 8, 8, 128>}, {pipeline_mode = #tpu.pipeline_mode<synchronous>, transform_indices = @transform_1, window_bounds = array<i64: 128, 128>}, {pipeline_mode = #tpu.pipeline_mode<synchronous>, transform_indices = @transform_2, window_bounds = array<i64: 9, 128, 128>}, {pipeline_mode = #tpu.pipeline_mode<synchronous>, transform_indices = @transform_3, window_bounds = array<i64: 128, 128>}, {pipeline_mode = #tpu.pipeline_mode<synchronous>, transform_indices = @transform_4, window_bounds = array<i64: 1, 128>}, {pipeline_mode = #tpu.pipeline_mode<synchronous>, transform_indices = @transform_5, window_bounds = array<i64: 1, 128>}, {pipeline_mode = #tpu.pipeline_mode<synchronous>, transform_indices = @transform_6, window_bounds = array<i64: 1, 128>}, {transform_indices = @transform_7, window_bounds = array<i64: 1, 8, 8, 128>}]} {
    %c0 = arith.constant 0 : index
    %c0_0 = arith.constant 0 : index
    %c0_1 = arith.constant 0 : index
    %c0_2 = arith.constant 0 : index
    %0 = vector.load %arg1[%c0, %c0_0, %c0_1, %c0_2] : memref<1x8x8x128xbf16, #tpu.memory_space<vmem>>, vector<1x8x8x128xbf16>
    %1 = vector.shape_cast %0 : vector<1x8x8x128xbf16> to vector<8x8x128xbf16>
    %2 = vector.shape_cast %1 : vector<8x8x128xbf16> to vector<64x128xbf16>
    %c0_3 = arith.constant 0 : index
    %c0_4 = arith.constant 0 : index
    %3 = vector.load %arg2[%c0_3, %c0_4] : memref<128x128xbf16, #tpu.memory_space<vmem>>, vector<128x128xbf16>
    %cst = arith.constant dense<0.000000e+00> : vector<64x128xf32>
    %4 = tpu.matmul %2, %3, %cst {dimension_numbers = #tpu.dot_dimension_numbers<[1], [0], [0], [1], [0, 0, 1, 1], [], []>} : vector<64x128xbf16>, vector<128x128xbf16>, vector<64x128xf32> -> vector<64x128xf32>
    %c0_5 = arith.constant 0 : index
    %c0_6 = arith.constant 0 : index
    %5 = vector.load %arg5[%c0_5, %c0_6] : memref<1x128xf32, #tpu.memory_space<vmem>>, vector<1x128xf32>
    %6 = vector.broadcast %5 : vector<1x128xf32> to vector<64x128xf32>
    %7 = arith.addf %4, %6 : vector<64x128xf32>
    %cst_7 = arith.constant 0.000000e+00 : f32
    %8 = vector.broadcast %cst_7 : f32 to vector<64x128xf32>
    %9 = arith.maximumf %7, %8 : vector<64x128xf32>
    %cst_8 = arith.constant 0.000000e+00 : bf16
    %10 = vector.broadcast %cst_8 : bf16 to vector<1x10x128xbf16>
    %cst_9 = arith.constant 0.000000e+00 : bf16
    %11 = vector.broadcast %cst_9 : bf16 to vector<10x1x128xbf16>
    %c0_10 = arith.constant 0 : index
    %c0_11 = arith.constant 0 : index
    %c0_12 = arith.constant 0 : index
    %12 = vector.load %arg9[%c0_10, %c0_11, %c0_12] : memref<10x10x128xbf16, #tpu.memory_space<vmem>>, vector<1x10x128xbf16>
    tpu.vector_store %arg9[%c0_10, %c0_11, %c0_12], %10 {strides = array<i32>} : memref<10x10x128xbf16, #tpu.memory_space<vmem>>, vector<1x10x128xbf16>,
    %c9 = arith.constant 9 : index
    %c0_13 = arith.constant 0 : index
    %c0_14 = arith.constant 0 : index
    %13 = vector.load %arg9[%c9, %c0_13, %c0_14] : memref<10x10x128xbf16, #tpu.memory_space<vmem>>, vector<1x10x128xbf16>
    tpu.vector_store %arg9[%c9, %c0_13, %c0_14], %10 {strides = array<i32>} : memref<10x10x128xbf16, #tpu.memory_space<vmem>>, vector<1x10x128xbf16>,
    %c0_15 = arith.constant 0 : index
    %c0_16 = arith.constant 0 : index
    %c0_17 = arith.constant 0 : index
    %14 = vector.load %arg9[%c0_15, %c0_16, %c0_17] : memref<10x10x128xbf16, #tpu.memory_space<vmem>>, vector<10x1x128xbf16>
    tpu.vector_store %arg9[%c0_15, %c0_16, %c0_17], %11 {strides = array<i32>} : memref<10x10x128xbf16, #tpu.memory_space<vmem>>, vector<10x1x128xbf16>,
    %c0_18 = arith.constant 0 : index
    %c9_19 = arith.constant 9 : index
    %c0_20 = arith.constant 0 : index
    %15 = vector.load %arg9[%c0_18, %c9_19, %c0_20] : memref<10x10x128xbf16, #tpu.memory_space<vmem>>, vector<10x1x128xbf16>
    tpu.vector_store %arg9[%c0_18, %c9_19, %c0_20], %11 {strides = array<i32>} : memref<10x10x128xbf16, #tpu.memory_space<vmem>>, vector<10x1x128xbf16>,
    %16 = vector.shape_cast %9 : vector<64x128xf32> to vector<8x8x128xf32>
    %17 = arith.truncf %16 : vector<8x8x128xf32> to vector<8x8x128xbf16>
    %c1 = arith.constant 1 : index
    %c1_21 = arith.constant 1 : index
    %c0_22 = arith.constant 0 : index
    %18 = vector.load %arg9[%c1, %c1_21, %c0_22] : memref<10x10x128xbf16, #tpu.memory_space<vmem>>, vector<8x8x128xbf16>
    tpu.vector_store %arg9[%c1, %c1_21, %c0_22], %17 {strides = array<i32>} : memref<10x10x128xbf16, #tpu.memory_space<vmem>>, vector<8x8x128xbf16>,
    %c0_23 = arith.constant 0 : index
    %c0_24 = arith.constant 0 : index
    %c0_25 = arith.constant 0 : index
    %19 = vector.load %arg9[%c0_23, %c0_24, %c0_25] : memref<10x10x128xbf16, #tpu.memory_space<vmem>>, vector<8x8x128xbf16>
    %20 = vector.shape_cast %19 : vector<8x8x128xbf16> to vector<64x128xbf16>
    %c0_26 = arith.constant 0 : index
    %c0_27 = arith.constant 0 : index
    %c0_28 = arith.constant 0 : index
    %21 = vector.load %arg3[%c0_26, %c0_27, %c0_28] : memref<9x128x128xbf16, #tpu.memory_space<vmem>>, vector<1x128x128xbf16>
    %22 = vector.shape_cast %21 : vector<1x128x128xbf16> to vector<128x128xbf16>
    %cst_29 = arith.constant dense<0.000000e+00> : vector<64x128xf32>
    %23 = tpu.matmul %20, %22, %cst_29 {dimension_numbers = #tpu.dot_dimension_numbers<[1], [0], [0], [1], [0, 0, 1, 1], [], []>} : vector<64x128xbf16>, vector<128x128xbf16>, vector<64x128xf32> -> vector<64x128xf32>
    %c0_30 = arith.constant 0 : index
    %c1_31 = arith.constant 1 : index
    %c0_32 = arith.constant 0 : index
    %24 = vector.load %arg9[%c0_30, %c1_31, %c0_32] : memref<10x10x128xbf16, #tpu.memory_space<vmem>>, vector<8x8x128xbf16>
    %25 = vector.shape_cast %24 : vector<8x8x128xbf16> to vector<64x128xbf16>
    %c1_33 = arith.constant 1 : index
    %c0_34 = arith.constant 0 : index
    %c0_35 = arith.constant 0 : index
    %26 = vector.load %arg3[%c1_33, %c0_34, %c0_35] : memref<9x128x128xbf16, #tpu.memory_space<vmem>>, vector<1x128x128xbf16>
    %27 = vector.shape_cast %26 : vector<1x128x128xbf16> to vector<128x128xbf16>
    %cst_36 = arith.constant dense<0.000000e+00> : vector<64x128xf32>
    %28 = tpu.matmul %25, %27, %cst_36 {dimension_numbers = #tpu.dot_dimension_numbers<[1], [0], [0], [1], [0, 0, 1, 1], [], []>} : vector<64x128xbf16>, vector<128x128xbf16>, vector<64x128xf32> -> vector<64x128xf32>
    %29 = arith.addf %23, %28 : vector<64x128xf32>
    %c0_37 = arith.constant 0 : index
    %c2 = arith.constant 2 : index
    %c0_38 = arith.constant 0 : index
    %30 = vector.load %arg9[%c0_37, %c2, %c0_38] : memref<10x10x128xbf16, #tpu.memory_space<vmem>>, vector<8x8x128xbf16>
    %31 = vector.shape_cast %30 : vector<8x8x128xbf16> to vector<64x128xbf16>
    %c2_39 = arith.constant 2 : index
    %c0_40 = arith.constant 0 : index
    %c0_41 = arith.constant 0 : index
    %32 = vector.load %arg3[%c2_39, %c0_40, %c0_41] : memref<9x128x128xbf16, #tpu.memory_space<vmem>>, vector<1x128x128xbf16>
    %33 = vector.shape_cast %32 : vector<1x128x128xbf16> to vector<128x128xbf16>
    %cst_42 = arith.constant dense<0.000000e+00> : vector<64x128xf32>
    %34 = tpu.matmul %31, %33, %cst_42 {dimension_numbers = #tpu.dot_dimension_numbers<[1], [0], [0], [1], [0, 0, 1, 1], [], []>} : vector<64x128xbf16>, vector<128x128xbf16>, vector<64x128xf32> -> vector<64x128xf32>
    %35 = arith.addf %29, %34 : vector<64x128xf32>
    %c1_43 = arith.constant 1 : index
    %c0_44 = arith.constant 0 : index
    %c0_45 = arith.constant 0 : index
    %36 = vector.load %arg9[%c1_43, %c0_44, %c0_45] : memref<10x10x128xbf16, #tpu.memory_space<vmem>>, vector<8x8x128xbf16>
    %37 = vector.shape_cast %36 : vector<8x8x128xbf16> to vector<64x128xbf16>
    %c3 = arith.constant 3 : index
    %c0_46 = arith.constant 0 : index
    %c0_47 = arith.constant 0 : index
    %38 = vector.load %arg3[%c3, %c0_46, %c0_47] : memref<9x128x128xbf16, #tpu.memory_space<vmem>>, vector<1x128x128xbf16>
    %39 = vector.shape_cast %38 : vector<1x128x128xbf16> to vector<128x128xbf16>
    %cst_48 = arith.constant dense<0.000000e+00> : vector<64x128xf32>
    %40 = tpu.matmul %37, %39, %cst_48 {dimension_numbers = #tpu.dot_dimension_numbers<[1], [0], [0], [1], [0, 0, 1, 1], [], []>} : vector<64x128xbf16>, vector<128x128xbf16>, vector<64x128xf32> -> vector<64x128xf32>
    %41 = arith.addf %35, %40 : vector<64x128xf32>
    %c1_49 = arith.constant 1 : index
    %c1_50 = arith.constant 1 : index
    %c0_51 = arith.constant 0 : index
    %42 = vector.load %arg9[%c1_49, %c1_50, %c0_51] : memref<10x10x128xbf16, #tpu.memory_space<vmem>>, vector<8x8x128xbf16>
    %43 = vector.shape_cast %42 : vector<8x8x128xbf16> to vector<64x128xbf16>
    %c4 = arith.constant 4 : index
    %c0_52 = arith.constant 0 : index
    %c0_53 = arith.constant 0 : index
    %44 = vector.load %arg3[%c4, %c0_52, %c0_53] : memref<9x128x128xbf16, #tpu.memory_space<vmem>>, vector<1x128x128xbf16>
    %45 = vector.shape_cast %44 : vector<1x128x128xbf16> to vector<128x128xbf16>
    %cst_54 = arith.constant dense<0.000000e+00> : vector<64x128xf32>
    %46 = tpu.matmul %43, %45, %cst_54 {dimension_numbers = #tpu.dot_dimension_numbers<[1], [0], [0], [1], [0, 0, 1, 1], [], []>} : vector<64x128xbf16>, vector<128x128xbf16>, vector<64x128xf32> -> vector<64x128xf32>
    %47 = arith.addf %41, %46 : vector<64x128xf32>
    %c1_55 = arith.constant 1 : index
    %c2_56 = arith.constant 2 : index
    %c0_57 = arith.constant 0 : index
    %48 = vector.load %arg9[%c1_55, %c2_56, %c0_57] : memref<10x10x128xbf16, #tpu.memory_space<vmem>>, vector<8x8x128xbf16>
    %49 = vector.shape_cast %48 : vector<8x8x128xbf16> to vector<64x128xbf16>
    %c5 = arith.constant 5 : index
    %c0_58 = arith.constant 0 : index
    %c0_59 = arith.constant 0 : index
    %50 = vector.load %arg3[%c5, %c0_58, %c0_59] : memref<9x128x128xbf16, #tpu.memory_space<vmem>>, vector<1x128x128xbf16>
    %51 = vector.shape_cast %50 : vector<1x128x128xbf16> to vector<128x128xbf16>
    %cst_60 = arith.constant dense<0.000000e+00> : vector<64x128xf32>
    %52 = tpu.matmul %49, %51, %cst_60 {dimension_numbers = #tpu.dot_dimension_numbers<[1], [0], [0], [1], [0, 0, 1, 1], [], []>} : vector<64x128xbf16>, vector<128x128xbf16>, vector<64x128xf32> -> vector<64x128xf32>
    %53 = arith.addf %47, %52 : vector<64x128xf32>
    %c2_61 = arith.constant 2 : index
    %c0_62 = arith.constant 0 : index
    %c0_63 = arith.constant 0 : index
    %54 = vector.load %arg9[%c2_61, %c0_62, %c0_63] : memref<10x10x128xbf16, #tpu.memory_space<vmem>>, vector<8x8x128xbf16>
    %55 = vector.shape_cast %54 : vector<8x8x128xbf16> to vector<64x128xbf16>
    %c6 = arith.constant 6 : index
    %c0_64 = arith.constant 0 : index
    %c0_65 = arith.constant 0 : index
    %56 = vector.load %arg3[%c6, %c0_64, %c0_65] : memref<9x128x128xbf16, #tpu.memory_space<vmem>>, vector<1x128x128xbf16>
    %57 = vector.shape_cast %56 : vector<1x128x128xbf16> to vector<128x128xbf16>
    %cst_66 = arith.constant dense<0.000000e+00> : vector<64x128xf32>
    %58 = tpu.matmul %55, %57, %cst_66 {dimension_numbers = #tpu.dot_dimension_numbers<[1], [0], [0], [1], [0, 0, 1, 1], [], []>} : vector<64x128xbf16>, vector<128x128xbf16>, vector<64x128xf32> -> vector<64x128xf32>
    %59 = arith.addf %53, %58 : vector<64x128xf32>
    %c2_67 = arith.constant 2 : index
    %c1_68 = arith.constant 1 : index
    %c0_69 = arith.constant 0 : index
    %60 = vector.load %arg9[%c2_67, %c1_68, %c0_69] : memref<10x10x128xbf16, #tpu.memory_space<vmem>>, vector<8x8x128xbf16>
    %61 = vector.shape_cast %60 : vector<8x8x128xbf16> to vector<64x128xbf16>
    %c7 = arith.constant 7 : index
    %c0_70 = arith.constant 0 : index
    %c0_71 = arith.constant 0 : index
    %62 = vector.load %arg3[%c7, %c0_70, %c0_71] : memref<9x128x128xbf16, #tpu.memory_space<vmem>>, vector<1x128x128xbf16>
    %63 = vector.shape_cast %62 : vector<1x128x128xbf16> to vector<128x128xbf16>
    %cst_72 = arith.constant dense<0.000000e+00> : vector<64x128xf32>
    %64 = tpu.matmul %61, %63, %cst_72 {dimension_numbers = #tpu.dot_dimension_numbers<[1], [0], [0], [1], [0, 0, 1, 1], [], []>} : vector<64x128xbf16>, vector<128x128xbf16>, vector<64x128xf32> -> vector<64x128xf32>
    %65 = arith.addf %59, %64 : vector<64x128xf32>
    %c2_73 = arith.constant 2 : index
    %c2_74 = arith.constant 2 : index
    %c0_75 = arith.constant 0 : index
    %66 = vector.load %arg9[%c2_73, %c2_74, %c0_75] : memref<10x10x128xbf16, #tpu.memory_space<vmem>>, vector<8x8x128xbf16>
    %67 = vector.shape_cast %66 : vector<8x8x128xbf16> to vector<64x128xbf16>
    %c8 = arith.constant 8 : index
    %c0_76 = arith.constant 0 : index
    %c0_77 = arith.constant 0 : index
    %68 = vector.load %arg3[%c8, %c0_76, %c0_77] : memref<9x128x128xbf16, #tpu.memory_space<vmem>>, vector<1x128x128xbf16>
    %69 = vector.shape_cast %68 : vector<1x128x128xbf16> to vector<128x128xbf16>
    %cst_78 = arith.constant dense<0.000000e+00> : vector<64x128xf32>
    %70 = tpu.matmul %67, %69, %cst_78 {dimension_numbers = #tpu.dot_dimension_numbers<[1], [0], [0], [1], [0, 0, 1, 1], [], []>} : vector<64x128xbf16>, vector<128x128xbf16>, vector<64x128xf32> -> vector<64x128xf32>
    %71 = arith.addf %65, %70 : vector<64x128xf32>
    %c0_79 = arith.constant 0 : index
    %c0_80 = arith.constant 0 : index
    %72 = vector.load %arg6[%c0_79, %c0_80] : memref<1x128xf32, #tpu.memory_space<vmem>>, vector<1x128xf32>
    %73 = vector.broadcast %72 : vector<1x128xf32> to vector<64x128xf32>
    %74 = arith.addf %71, %73 : vector<64x128xf32>
    %cst_81 = arith.constant 0.000000e+00 : f32
    %75 = vector.broadcast %cst_81 : f32 to vector<64x128xf32>
    %76 = arith.maximumf %74, %75 : vector<64x128xf32>
    %77 = arith.truncf %76 : vector<64x128xf32> to vector<64x128xbf16>
    %c0_82 = arith.constant 0 : index
    %c0_83 = arith.constant 0 : index
    %78 = vector.load %arg4[%c0_82, %c0_83] : memref<128x128xbf16, #tpu.memory_space<vmem>>, vector<128x128xbf16>
    %cst_84 = arith.constant dense<0.000000e+00> : vector<64x128xf32>
    %79 = tpu.matmul %77, %78, %cst_84 {dimension_numbers = #tpu.dot_dimension_numbers<[1], [0], [0], [1], [0, 0, 1, 1], [], []>} : vector<64x128xbf16>, vector<128x128xbf16>, vector<64x128xf32> -> vector<64x128xf32>
    %c0_85 = arith.constant 0 : index
    %c0_86 = arith.constant 0 : index
    %80 = vector.load %arg7[%c0_85, %c0_86] : memref<1x128xf32, #tpu.memory_space<vmem>>, vector<1x128xf32>
    %81 = vector.broadcast %80 : vector<1x128xf32> to vector<64x128xf32>
    %82 = arith.addf %79, %81 : vector<64x128xf32>
    %c0_87 = arith.constant 0 : index
    %c0_88 = arith.constant 0 : index
    %c0_89 = arith.constant 0 : index
    %c0_90 = arith.constant 0 : index
    %83 = vector.load %arg1[%c0_87, %c0_88, %c0_89, %c0_90] : memref<1x8x8x128xbf16, #tpu.memory_space<vmem>>, vector<1x8x8x128xbf16>
    %84 = vector.shape_cast %83 : vector<1x8x8x128xbf16> to vector<8x8x128xbf16>
    %85 = vector.shape_cast %84 : vector<8x8x128xbf16> to vector<64x128xbf16>
    %86 = arith.extf %85 : vector<64x128xbf16> to vector<64x128xf32>
    %87 = arith.addf %82, %86 : vector<64x128xf32>
    %cst_91 = arith.constant 0.000000e+00 : f32
    %88 = vector.broadcast %cst_91 : f32 to vector<64x128xf32>
    %89 = arith.maximumf %87, %88 : vector<64x128xf32>
    %90 = vector.shape_cast %89 : vector<64x128xf32> to vector<8x8x128xf32>
    %c0_92 = arith.constant 0 : index
    %c0_93 = arith.constant 0 : index
    %c0_94 = arith.constant 0 : index
    %c0_95 = arith.constant 0 : index
    %91 = vector.load %arg8[%c0_92, %c0_93, %c0_94, %c0_95] : memref<1x8x8x128xf32, #tpu.memory_space<vmem>>, vector<1x8x8x128xf32>
    %92 = vector.shape_cast %91 : vector<1x8x8x128xf32> to vector<8x8x128xf32>
    %93 = vector.shape_cast %90 : vector<8x8x128xf32> to vector<1x8x8x128xf32>
    tpu.vector_store %arg8[%c0_92, %c0_93, %c0_94, %c0_95], %93 {strides = array<i32>} : memref<1x8x8x128xf32, #tpu.memory_space<vmem>>, vector<1x8x8x128xf32>,
    return
  }
  func.func @transform_0(%arg0: i32) -> (i32, i32, i32, i32) {
    %c0_i32 = arith.constant 0 : i32
    %c0_i32_0 = arith.constant 0 : i32
    %c0_i32_1 = arith.constant 0 : i32
    %c0_i32_2 = arith.constant 0 : i32
    return %arg0, %c0_i32, %c0_i32_0, %c0_i32_1 : i32, i32, i32, i32
  }
  func.func @transform_1(%arg0: i32) -> (i32, i32) {
    %c0_i32 = arith.constant 0 : i32
    %c0_i32_0 = arith.constant 0 : i32
    %c0_i32_1 = arith.constant 0 : i32
    return %c0_i32, %c0_i32_0 : i32, i32
  }
  func.func @transform_2(%arg0: i32) -> (i32, i32, i32) {
    %c0_i32 = arith.constant 0 : i32
    %c0_i32_0 = arith.constant 0 : i32
    %c0_i32_1 = arith.constant 0 : i32
    %c0_i32_2 = arith.constant 0 : i32
    return %c0_i32, %c0_i32_0, %c0_i32_1 : i32, i32, i32
  }
  func.func @transform_3(%arg0: i32) -> (i32, i32) {
    %c0_i32 = arith.constant 0 : i32
    %c0_i32_0 = arith.constant 0 : i32
    %c0_i32_1 = arith.constant 0 : i32
    return %c0_i32, %c0_i32_0 : i32, i32
  }
  func.func @transform_4(%arg0: i32) -> (i32, i32) {
    %c0_i32 = arith.constant 0 : i32
    %c0_i32_0 = arith.constant 0 : i32
    %c0_i32_1 = arith.constant 0 : i32
    return %c0_i32, %c0_i32_0 : i32, i32
  }
  func.func @transform_5(%arg0: i32) -> (i32, i32) {
    %c0_i32 = arith.constant 0 : i32
    %c0_i32_0 = arith.constant 0 : i32
    %c0_i32_1 = arith.constant 0 : i32
    return %c0_i32, %c0_i32_0 : i32, i32
  }
  func.func @transform_6(%arg0: i32) -> (i32, i32) {
    %c0_i32 = arith.constant 0 : i32
    %c0_i32_0 = arith.constant 0 : i32
    %c0_i32_1 = arith.constant 0 : i32
    return %c0_i32, %c0_i32_0 : i32, i32
  }
  func.func @transform_7(%arg0: i32) -> (i32, i32, i32, i32) {
    %c0_i32 = arith.constant 0 : i32
    %c0_i32_0 = arith.constant 0 : i32
    %c0_i32_1 = arith.constant 0 : i32
    %c0_i32_2 = arith.constant 0 : i32
    return %arg0, %c0_i32, %c0_i32_0, %c0_i32_1 : i32, i32, i32, i32
  }
}

</mosaic_0001>

<bundles_post_ra>
// kernel: tpu_custom_call.1
= control target key start
LH: loop header
LB: loop body
LE: loop exit
PB: predicated region body
PF: predicated region fallthrough
CT: control target
= control target key end

     0   :  { %s4087_s0 = inlined_call_operand.hbm [shape: bf16[2,8,8,128], index: 0, kind: input, shape index: {}]   ;;  %s4088_s1 = inlined_call_operand.hbm [shape: bf16[128,128], index: 1, kind: input, shape index: {}]   ;;  %s4089_s2 = inlined_call_operand.hbm [shape: bf16[9,128,128], index: 2, kind: input, shape index: {}]   ;;  %s4090_s3 = inlined_call_operand.hbm [shape: bf16[128,128], index: 3, kind: input, shape index: {}]   ;;  %s4091_s4 = inlined_call_operand.vmem [shape: f32[1,128], index: 4, kind: input, shape index: {}]   ;;  %s4092_s5 = inlined_call_operand.vmem [shape: f32[1,128], index: 5, kind: input, shape index: {}]   ;;  %s4093_s6 = inlined_call_operand.vmem [shape: f32[1,128], index: 6, kind: input, shape index: {}]   ;;  %s4094_s7 = inlined_call_operand.hbm [shape: f32[2,8,8,128], index: 7, kind: output, shape index: {}]  }
   0x1   :  { %4097 = sst [smem:[#allocation16_spill]] %s4088_s1 }
   0x2   :  { %12 = vsyncpa [#allocation4], 0 }
   0x3   :  { %14 = vsyncpa [#allocation4 + $0x1], 0 }
   0x4   :  { %15 = vsyncpa [#allocation7], 0 }
   0x5   :  { %16 = vsyncpa [#allocation10], 0 }
   0x6   :  { %17 = vsyncpa [#allocation5], 0 }
   0x7   :  { %19 = vsyncpa [#allocation5 + $0x1], 0  ;;  %s3557_s24 = smov 0   ;;  %s3559_s25 = smov 0  }
   0x8   :  { %s3561_s26 = smov 0   ;;  %s3563_s27 = smov 0  }
   0x9 LB: > { %s3578_s28 = sadd.s32 4294967295, %s3507_s27   ;;  %s2619_s29 = sadd.s32 4294967294, %s3507_s27   ;;  %s3507_s27 = sphi %s3563_s27, %s4121_s27   ;;  %s3503_s26 = sphi %s3561_s26, %s4120_s26   ;;  %s3499_s25 = sphi %s3559_s25, %s4119_s25   ;;  %s3495_s24 = sphi %s3557_s24, %s4118_s24  }
   0xa   : > { %p45_p0 = scmp.ne.s32.totalorder %s3499_s25, %s3495_s24  ;;  %p46_p1 = scmp.eq.s32.totalorder %s3578_s28, 0 }
   0xb   : > { %p195_p2 = scmp.eq.s32.totalorder %s3578_s28, 1  ;;  %p201_p3 = scmp.eq.s32.totalorder %s2619_s29, 1 }
   0xc   : > { %p3587_p4 = por %p46_p1, %p45_p0  ;;  %p2620_p5 = scmp.ge.s32.totalorder %s3507_s27, 1 }
   0xd   : > { %p3592_p6 = por %p201_p3, %p45_p0  ;;  %p208_p7 = scmp.lt.s32.totalorder %s3507_s27, 3 }
   0xe   : > { %s4100_s1 = sld [smem:[#allocation16_spill]]  ;;  %s3509_s13 = smov [#allocation6]  }
   0xf   : > { %p3600_p8 = pnand %p2620_p5, %p208_p7  ;;  %s221_s14 = sshll.u32 %s3509_s13, 4  ;;  %s222_s14 = int_to_ptr.vmem [resolvable:$true] %s221_s14 }
  0x10   : > { %s233_s18 = sshll.u32 %s4089_s2, 4  ;;  %s4095_s19 = smov 64   ;;  %s234_s18 = int_to_ptr.hbm [resolvable:$true] %s233_s18 }
  0x11   : > { %p3244_p9 = pneg %p3600_p8  ;;  %s4096_s20 = smov 4  }
  0x12   : > { %s3512_s21 = smov [#allocation8]   ;;  %s247_s9 = sshll.u32 %s4090_s3, 4  ;;  %s248_s9 = int_to_ptr.hbm [resolvable:$true] %s247_s9 }
  0x13   : > { %p3608_p10 = pnand %p3244_p9, %p46_p1  ;;  %s235_s22 = sshll.u32 %s3512_s21, 4  ;;  %s236_s22 = int_to_ptr.vmem [resolvable:$true] %s235_s22 }
  0x14   : > { %s219_s11 = sshll.u32 %s4100_s1, 4  ;;  %s3513_s10 = smov [#allocation9]   ;;  %s220_s11 = int_to_ptr.hbm [resolvable:$true] %s219_s11 }
  0x15   : > { %3247 = dma.hbm_to_vmem [thread:$0]  (!%p3608_p10), %s220_s11, 1024, %s222_s14, [#allocation7], %s4095_s19, %s4095_s19, %s4096_s20  }
  0x16   : > { %3250 = dma.hbm_to_vmem [thread:$0]  (!%p3608_p10), %s234_s18, 9216, %s236_s22, [#allocation7], %s4095_s19, %s4095_s19, %s4096_s20  }
  0x17   : > { %s249_s11 = sshll.u32 %s3513_s10, 4  ;;  %s3630_s13 = sadd.s32 1, %s3507_s27   ;;  %s250_s11 = int_to_ptr.vmem [resolvable:$true] %s249_s11 }
  0x18   : > { %3253 = dma.hbm_to_vmem [thread:$0]  (!%p3608_p10), %s248_s9, 1024, %s250_s11, [#allocation10], %s4095_s19, %s4095_s19, %s4096_s20  }
  0x19   : > { %s29_s14 = ssub.s32 %s3507_s27, %s3630_s13  ;;  %s32_s16 = sadd.s32 1, %s3503_s26 }
  0x1a   : > { %p30_p12 = scmp.eq.s32.totalorder %s29_s14, 0  ;;  %p39_p13 = scmp.ne.s32.totalorder %s3503_s26, %s3499_s25 }
  0x1b   : > { %p40_p0 = scmp.eq.s32.totalorder %s3507_s27, 0  ;;  %p3265_p5 = scmp.lt.s32.totalorder %s3507_s27, 2 }
  0x1c   : > { %s3644_s17 = scalar_select %p30_p12, %s3503_s26, %s32_s16  }
  0x1d   : > { %p3648_p3 = por %p195_p2, %p39_p13  ;;  %s272_s21 = sand.u32 1, %s3503_s26  }
  0x1e   : > { %s3079_s15 = sshll.u32 %s3507_s27, 5  ;;  %p41_p7 = por %p40_p0, %p39_p13 }
  0x1f   : > { %s2625_s22 = sshll.u32 %s272_s21, 5  ;;  %s281_s9 = scalar_lea.hbm %s4087_s0, %s3079_s15 }
  0x20   : > { %s282_s10 = sshll.u32 %s281_s9, 4  ;;  %s276_s11 = scalar_lea.vmem [#allocation3], %s2625_s22  ;;  %s283_s10 = int_to_ptr.hbm [resolvable:$true] %s282_s10 }
  0x21   : > { %s284_s14 = sshll.u32 %s276_s11, 4  ;;  %p3658_p9 = pnand %p3265_p5, %p41_p7  ;;  %s285_s14 = int_to_ptr.vmem [resolvable:$true] %s284_s14 }
  0x22   : > { %s273_s19 = scalar_lea.sflag [#allocation4], %s272_s21  ;;  %s3403_s20 = sshra.s32 %s283_s10, 4  ;;  %s3404_s20 = int_to_ptr.hbm [resolvable:$true] %s3403_s20 }
  0x23   : > { %s3405_s1 = scalar_lea.hbm %s3404_s20, 32  ;;  %p3407_p10 = pneg %p3658_p9 }
  0x24   : > { %p3406_p2 = scmp.ne.s32.totalorder %s3404_s20, %s3405_s1  ;;  %s3410_s22 = scalar_lea.hbm %s4087_s0, 64 }
  0x25   : > { %p3411_p0 = scmp.lt.s32.totalorder %s3404_s20, %s4087_s0  ;;  %p3412_p5 = scmp.lt.s32.totalorder %s3410_s22, %s3405_s1 }
  0x26   : > { %p3408_p12 = pnand %p3407_p10, %p3406_p2 }
  0x27   : > { %p3413_p7 = por %p3412_p5, %p3411_p0 }
  0x28   : > { %p3409_p13 = pneg %p3408_p12 }
  0x2a   : > { %p3414_p11 = pnand %p3413_p7, %p3409_p13 }
  0x2c   : > { %3417 = shalt.err (!%p3414_p11)
}
  0x2d   : > { %s4105_s21 = smov 4   ;;  %s4106_s11 = smov 64  }
  0x2e   : > { %3257 = dma.hbm_to_vmem [thread:$0]  (!%p3658_p9), %s283_s10, 512, %s285_s14, %s273_s19, %s4106_s11, %s4106_s11, %s4105_s21  }
  0x2f   : > { %296 = sbr.rel (%p3600_p8) target bundleno = 708 (0x2c4), region = 48  ;;  %s3678_s15 = sand.u32 (!%p3600_p8), 1, %s3499_s25  }
  0x30   : > { %s2629_s20 = sshll.u32 (!%p3600_p8), %s3678_s15, 5  ;;  %s299_s1 = scalar_lea.sflag (!%p3600_p8), [#allocation4], %s3678_s15 }
  0x31   : > { %s3682_s23 = scalar_lea.vmem (!%p3600_p8), [#allocation3], %s2629_s20 }
  0x34   : > { %3478 = dma.done.wait (%p3587_p4), %s299_s1, 512  }
  0x35   : > { %3480 = vsyncadd (%p3587_p4), %s299_s1, 4294966784 }
  0x36   : > { %3482 = dma.done.wait (%p46_p1), [#allocation7], 10240  }
  0x37   : > { %3484 = vsyncadd (%p46_p1), [#allocation7], 4294957056 }
  0x38   : > { %3486 = dma.done.wait (%p46_p1), [#allocation10], 1024  }
  0x39   : > { %3488 = vsyncadd (%p46_p1), [#allocation10], 4294966272  ;;  %v3091_v0 = vld [vmem:[#allocation6 + $0x38] sm:$0xff]  ;;  %v3090_v1 = vld [vmem:[#allocation6 + $0x30] sm:$0xff]  ;;  %vm492_vm0 = vcmask 1040384   ;;  %v3514_v29 = vmov 0  }
  0x3a   : > { %450 = vmatpush.bf16.msra.mxu0 %v3091_v0  ;;  %3204 = vmatpush.bf16.msra.mxu3 %v3091_v0  ;;  %v3089_v2 = vld [vmem:[#allocation6 + $0x28] sm:$0xff]  ;;  %v3088_v3 = vld [vmem:[#allocation6 + $0x20] sm:$0xff]  ;;  %v3087_v4 = vld [vmem:[#allocation6 + $0x18] sm:$0xff]  ;;  %vm493_vm1 = vsmask.f32 256  ;;  %vm646_vm5 = vcmask 1043456  }
  0x3b   : > { %v3103_v5 = vld [vmem:[#allocation8 + $0x38] sm:$0xff]  ;;  %v3086_v6 = vld [vmem:[#allocation6 + $0x10] sm:$0xff]  ;;  %v3085_v8 = vld [vmem:[#allocation6 + $0x8] sm:$0xff]  ;;  %vm525_vm2 = vsmask.f32 7938  ;;  %vm1078_vm6 = vcmask 1042432  }
  0x3c   : > { %1025 = vmatpush.bf16.msra.mxu2 %v3103_v5  ;;  %v3102_v7 = vld [vmem:[#allocation8 + $0x30] sm:$0xff]  ;;  %v3084_v9 = vld [vmem:[#allocation6] sm:$0xff]  ;;  %v3119_v10 = vld [vmem:[#allocation8 + $0xb8] sm:$0xff]  ;;  %487 = vst [vmem:[#allocation2] sm:$0xf] %v3514_v29  ;;  %vm1079_vm7 = vcmask 1046532  }
  0x3d   : > { %v3080_v11 = vld [vmem:[%s3682_s23] sm:$0xff]  ;;  %v3082_v12 = vld [vmem:[%s3682_s23 + $0x10] sm:$0xff]  ;;  %v3081_v13 = vld [vmem:[%s3682_s23 + $0x8] sm:$0xff]  ;;  %488 = vst [vmem:[#allocation2 + $0x4] sm:$0x1] %v3514_v29  ;;  %s2633_s22 = sshll.u32 %s3678_s15, 6 }
  0x3e   : > { %451 = vmatpush.bf16.msra.mxu0 %v3090_v1  ;;  %3205 = vmatpush.bf16.msra.mxu3 %v3090_v1  ;;  %v3083_v14 = vld [vmem:[%s3682_s23 + $0x18] sm:$0xff]  ;;  %v3101_v15 = vld [vmem:[#allocation8 + $0x28] sm:$0xff]  ;;  %v3118_v17 = vld [vmem:[#allocation8 + $0xb0] sm:$0xff]  ;;  %491 = vst [vmem:[#allocation2 + $0x4c] sm:$0x1] %v3514_v29  ;;  %s4040_s29 = scalar_lea.vmem [#allocation11], %s2633_s22 }
  0x3f   : > { %v3131_v16 = vld [vmem:[#allocation8 + $0xf8] sm:$0xff]  ;;  %vm3700_vm3 = vmand %vm492_vm0, %vm493_vm1  ;;  %v3100_v24 = vld [vmem:[#allocation8 + $0x20] sm:$0xff]  ;;  %490 = vst [vmem:[#allocation2 + $0x48] sm:$0xf] %v3514_v29  ;;  %vm728_vm9 = vsmask.f32 3328 }
  0x40   : > { %1026 = vmatpush.bf16.msra.mxu2 %v3102_v7  ;;  %v498_v19 = vld [vmem:[#allocation2 + $0x8] sm:$0x1]  ;;  %v530_v20 = vld [vmem:[#allocation2 + $0xc] sm:$0x1]  ;;  %vm3707_vm4 = vmand %vm492_vm0, %vm525_vm2  ;;  %vm729_vm10 = vsmask.f32 7440 }
  0x41   : > { %v499_v21 = vsel %vm3700_vm3, 0, %v498_v19  ;;  %v3111_v23 = vld [vmem:[#allocation8 + $0x78] sm:$0xff]  ;;  %v531_v25 = vsel %vm3707_vm4, 0, %v530_v20  ;;  %v3130_v26 = vld [vmem:[#allocation8 + $0xf0] sm:$0xff]  ;;  %v3117_v27 = vld [vmem:[#allocation8 + $0xa8] sm:$0xff]  ;;  %s3184_s9 = sshll.u32 %s3578_s28, 6 }
  0x42   : > { %452 = vmatpush.bf16.msra.mxu0 %v3089_v2  ;;  %3206 = vmatpush.bf16.msra.mxu3 %v3089_v2  ;;  %500 = vst [vmem:[#allocation2 + $0x8] sm:$0x1] %v499_v21  ;;  %v3110_v28 = vld [vmem:[#allocation8 + $0x70] sm:$0xff]  ;;  %v3099_v30 = vld [vmem:[#allocation8 + $0x18] sm:$0xff]  ;;  %v3129_v31 = vld [vmem:[#allocation8 + $0xe8] sm:$0xff]  ;;  %s2513_s20 = scalar_lea.hbm %s4094_s7, %s3184_s9  ;;  %s2514_s1 = sshll.u32 %s4040_s29, 4  ;;  %s2515_s1 = int_to_ptr.vmem [resolvable:$true] %s2514_s1 }
  0x43   : > { %532 = vst [vmem:[#allocation2 + $0xc] sm:$0x1] %v531_v25  ;;  %924 = vmatpush.bf16.msra.mxu1 %v3111_v23  ;;  %v3116_v32 = vld [vmem:[#allocation8 + $0xa0] sm:$0xff]  ;;  %v3109_v33 = vld [vmem:[#allocation8 + $0x68] sm:$0xff]  ;;  %v3098_v37 = vld [vmem:[#allocation8 + $0x10] sm:$0xff]  ;;  %s2502_s30 = scalar_lea.sflag [#allocation5], %s3678_s15 }
  0x44   : > { %1027 = vmatpush.bf16.msra.mxu2 %v3101_v15  ;;  %v501_v34 = vld [vmem:[#allocation2 + $0x10] sm:$0x1]  ;;  %v533_v36 = vld [vmem:[#allocation2 + $0x14] sm:$0x1]  ;;  %v3115_v40 = vld [vmem:[#allocation8 + $0x98] sm:$0xff]  ;;  %s3453_s14 = scalar_lea.hbm %s4094_s7, 128 }
  0x45   : > { %v502_v35 = vsel %vm3700_vm3, 0, %v501_v34  ;;  %v534_v38 = vsel %vm3707_vm4, 0, %v533_v36  ;;  %v3128_v39 = vld [vmem:[#allocation8 + $0xe0] sm:$0xff]  ;;  %v495_v41 = vld [vmem:[#allocation2] sm:$0x1]  ;;  %v3097_v46 = vld [vmem:[#allocation8 + $0x8] sm:$0xff] }
  0x46   : > { %453 = vmatpush.bf16.msra.mxu0 %v3088_v3  ;;  %3207 = vmatpush.bf16.msra.mxu3 %v3088_v3  ;;  %503 = vst [vmem:[#allocation2 + $0x10] sm:$0x1] %v502_v35  ;;  %v527_v42 = vld [vmem:[#allocation2 + $0x4] sm:$0x1]  ;;  %v3108_v43 = vld [vmem:[#allocation8 + $0x60] sm:$0xff]  ;;  %v496_v44 = vsel %vm3700_vm3, 0, %v495_v41  ;;  %vm3753_vm8 = vmand %vm646_vm5, %vm525_vm2 }
  0x47   : > { %925 = vmatpush.bf16.msra.mxu1 %v3110_v28  ;;  %535 = vst [vmem:[#allocation2 + $0x14] sm:$0x1] %v534_v38  ;;  %v528_v45 = vsel %vm3707_vm4, 0, %v527_v42  ;;  %v3127_v47 = vld [vmem:[#allocation8 + $0xd8] sm:$0xff]  ;;  %v3114_v48 = vld [vmem:[#allocation8 + $0x90] sm:$0xff]  ;;  %v3096_v54 = vld [vmem:[#allocation8] sm:$0xff] }
  0x48   : > { %1028 = vmatpush.bf16.msra.mxu2 %v3100_v24  ;;  %497 = vst [vmem:[#allocation2] sm:$0x1] %v496_v44  ;;  %v504_v49 = vld [vmem:[#allocation2 + $0x18] sm:$0x1]  ;;  %v536_v50 = vld [vmem:[#allocation2 + $0x1c] sm:$0x1]  ;;  %vm3770_vm11 = vmor %vm1078_vm6, %vm1079_vm7 }
  0x49   : > { %529 = vst [vmem:[#allocation2 + $0x4] sm:$0x1] %v528_v45  ;;  %v3107_v51 = vld [vmem:[#allocation8 + $0x58] sm:$0xff]  ;;  %v505_v52 = vsel %vm3700_vm3, 0, %v504_v49  ;;  %v537_v53 = vsel %vm3707_vm4, 0, %v536_v50  ;;  %v3126_v55 = vld [vmem:[#allocation8 + $0xd0] sm:$0xff]  ;;  %vm3789_vm12 = vmor %vm728_vm9, %vm729_vm10 }
  0x4a   : > { %454 = vmatpush.bf16.msra.mxu0 %v3087_v4  ;;  %3208 = vmatpush.bf16.msra.mxu3 %v3087_v4  ;;  %506 = vst [vmem:[#allocation2 + $0x18] sm:$0x1] %v505_v52  ;;  %v3113_v56 = vld [vmem:[#allocation8 + $0x88] sm:$0xff]  ;;  %v510_v57 = vld [vmem:[#allocation2 + $0x28] sm:$0x1]  ;;  %v3106_v61 = vld [vmem:[#allocation8 + $0x50] sm:$0xff] }
  0x4b   : > { %926 = vmatpush.bf16.msra.mxu1 %v3109_v33  ;;  %v542_v58 = vld [vmem:[#allocation2 + $0x2c] sm:$0x1]  ;;  %538 = vst [vmem:[#allocation2 + $0x1c] sm:$0x1] %v537_v53  ;;  %v511_v59 = vsel %vm3700_vm3, 0, %v510_v57  ;;  %v3125_v62 = vld [vmem:[#allocation8 + $0xc8] sm:$0xff] }
  0x4c   : > { %1029 = vmatpush.bf16.msra.mxu2 %v3099_v30  ;;  %v543_v60 = vsel %vm3707_vm4, 0, %v542_v58  ;;  %512 = vst [vmem:[#allocation2 + $0x28] sm:$0x1] %v511_v59  ;;  %v3112_v63 = vld [vmem:[#allocation8 + $0x80] sm:$0xff]  ;;  %v3105_v0 = vld [vmem:[#allocation8 + $0x48] sm:$0xff]  ;;  %v3167_v38 = vld [vmem:[#allocation8 + $0x1f8] sm:$0xff] }
  0x4d   : > { %544 = vst [vmem:[#allocation2 + $0x2c] sm:$0x1] %v543_v60  ;;  %v3732_v1 = vld [vmem:[%s4091_s4] ss:$0 sm:$0xff]  ;;  %v539_v3 = vld [vmem:[#allocation2 + $0x24] sm:$0x1] }
  0x4e   : > { %455 = vmatpush.bf16.msra.mxu0 %v3086_v6  ;;  %3209 = vmatpush.bf16.msra.mxu3 %v3086_v6  ;;  %v507_v2 = vld [vmem:[#allocation2 + $0x20] sm:$0x1]  ;;  %v540_v5 = vsel %vm3707_vm4, 0, %v539_v3  ;;  %v3124_v6 = vld [vmem:[#allocation8 + $0xc0] sm:$0xff]  ;;  %v548_v19 = vld [vmem:[#allocation2 + $0x3c] sm:$0x1] }
  0x4f   : > { %927 = vmatpush.bf16.msra.mxu1 %v3108_v43  ;;  %v508_v4 = vsel %vm3700_vm3, 0, %v507_v2  ;;  %541 = vst [vmem:[#allocation2 + $0x24] sm:$0x1] %v540_v5  ;;  %v3104_v15 = vld [vmem:[#allocation8 + $0x40] sm:$0xff]  ;;  %v549_v20 = vsel %vm3707_vm4, 0, %v548_v19  ;;  %v3171_v22 = vld [vmem:[#allocation8 + $0x218] sm:$0xff] }
  0x50   : > { %1030 = vmatpush.bf16.msra.mxu2 %v3098_v37  ;;  %509 = vst [vmem:[#allocation2 + $0x20] sm:$0x1] %v508_v4  ;;  %v3748_v28 = vld [vmem:[#allocation2 + $0x4] sm:$0x1]  ;;  %v648_v29 = vld [vmem:[#allocation2 + $0x8] sm:$0xf] }
  0x51   : > { %550 = vst [vmem:[#allocation2 + $0x3c] sm:$0x1] %v549_v20  ;;  %v651_v30 = vld [vmem:[#allocation2 + $0xc] sm:$0x1]  ;;  %v519_v49 = vld [vmem:[#allocation2 + $0x40] sm:$0x1] }
  0x52   : > { %456 = vmatpush.bf16.msra.mxu0 %v3085_v8  ;;  %3210 = vmatpush.bf16.msra.mxu3 %v3085_v8  ;;  %v513_v8 = vld [vmem:[#allocation2 + $0x30] sm:$0x1]  ;;  %v3139_v37 = vld [vmem:[#allocation8 + $0x138] sm:$0xff]  ;;  %v551_v52 = vld [vmem:[#allocation2 + $0x44] sm:$0x1]  ;;  %v741_v60 = vshll.u32 %v3748_v28, 16 }
  0x53   : > { %928 = vmatpush.bf16.msra.mxu1 %v3107_v51  ;;  %v520_v51 = vsel %vm3700_vm3, 0, %v519_v49 }
  0x54   : > { %1031 = vmatpush.bf16.msra.mxu2 %v3097_v46  ;;  %521 = vst [vmem:[#allocation2 + $0x40] sm:$0x1] %v520_v51  ;;  %v675_v5 = vld [vmem:[#allocation2 + $0x2c] sm:$0x1] }
  0x56   : > { %457 = vmatpush.bf16.msra.mxu0 %v3084_v9  ;;  %3211 = vmatpush.bf16.msra.mxu3 %v3084_v9  ;;  %v545_v9 = vld [vmem:[#allocation2 + $0x34] sm:$0x1] }
  0x57   : > { %929 = vmatpush.bf16.msra.mxu1 %v3106_v61  ;;  %v552_v61 = vsel %vm3707_vm4, 0, %v551_v52 }
  0x58   : > { %1032 = vmatpush.bf16.msra.mxu2 %v3096_v54  ;;  %553 = vst [vmem:[#allocation2 + $0x44] sm:$0x1] %v552_v61 }
  0x59   : > { %458 = vmatmul.bf16.vlgmr.msra.gmra.mxu0 %v3080_v11  ;;  %468 = vmatmul.bf16.vlgmr.msra.gmra.mxu3 %v3082_v12  ;;  %v514_v11 = vsel %vm3700_vm3, 0, %v513_v8  ;;  %v546_v12 = vsel %vm3707_vm4, 0, %v545_v9  ;;  %v654_v8 = vld [vmem:[#allocation2 + $0x10] sm:$0xf] }
  0x5a   : > { %1194 = vmatpush.bf16.msrb.mxu3 %v3119_v10  ;;  %1328 = vmatpush.bf16.msrb.mxu0 %v3131_v16  ;;  %515 = vst [vmem:[#allocation2 + $0x30] sm:$0x1] %v514_v11 }
  0x5b   : > { %930 = vmatpush.bf16.msra.mxu1 %v3105_v0  ;;  %547 = vst [vmem:[#allocation2 + $0x34] sm:$0x1] %v546_v12  ;;  %v672_v0 = vld [vmem:[#allocation2 + $0x28] sm:$0xf]  ;;  %v657_v12 = vld [vmem:[#allocation2 + $0x14] sm:$0x1] }
  0x5e   : > { %1195 = vmatpush.bf16.msrb.mxu3 %v3118_v17  ;;  %1329 = vmatpush.bf16.msrb.mxu0 %v3130_v26 }
  0x5f   : > { %931 = vmatpush.bf16.msra.mxu1 %v3104_v15 }
  0x62   : > { %1196 = vmatpush.bf16.msrb.mxu3 %v3117_v27  ;;  %1330 = vmatpush.bf16.msrb.mxu0 %v3129_v31 }
  0x63   : > { %1574 = vmatpush.bf16.msrb.mxu1 %v3139_v37 }
  0x66   : > { %1197 = vmatpush.bf16.msrb.mxu3 %v3116_v32  ;;  %1331 = vmatpush.bf16.msrb.mxu0 %v3128_v39  ;;  %v1054_v32 = vld [vmem:[#allocation2] sm:$0xe] }
  0x67   : > { %v2762_v50 = vrot.slane %v1054_v32, 9 }
  0x69   : > { %463 = vmatmul.bf16.gmra.mxu0 %v3081_v13  ;;  %473 = vmatmul.bf16.gmra.mxu3 %v3083_v14  ;;  %v696_v13 = vld [vmem:[#allocation2] sm:$0xf]  ;;  %v516_v14 = vld [vmem:[#allocation2 + $0x38] sm:$0x1] }
  0x6a   : > { %1198 = vmatpush.bf16.msrb.mxu3 %v3115_v40  ;;  %1332 = vmatpush.bf16.msrb.mxu0 %v3127_v47  ;;  %v517_v17 = vsel %vm3700_vm3, 0, %v516_v14  ;;  %v732_v24 = vshrl.u32 %v696_v13, 16  ;;  %v735_v25 = vshll.u32 %v696_v13, 16  ;;  %v1083_v40 = vrot.slane %v3748_v28, 5  ;;  %v3138_v47 = vld [vmem:[#allocation8 + $0x130] sm:$0xff] }
  0x6b   : > { %518 = vst [vmem:[#allocation2 + $0x38] sm:$0x1] %v517_v17  ;;  %1575 = vmatpush.bf16.msrb.mxu1 %v3138_v47 }
  0x6c   : > { %v734_v41 = vrot.slane %v732_v24, 4  ;;  %v737_v42 = vrot.slane %v735_v25, 5  ;;  %v3777_v14 = vsel %vm3770_vm11, %v2762_v50, %v1083_v40  ;;  %v681_v50 = vld [vmem:[#allocation2 + $0x34] sm:$0x1] }
  0x6e   : > { %1199 = vmatpush.bf16.msrb.mxu3 %v3114_v48  ;;  %1333 = vmatpush.bf16.msrb.mxu0 %v3126_v55  ;;  %v3166_v48 = vld [vmem:[#allocation8 + $0x1f0] sm:$0xff]  ;;  %v738_v59 = vor.u32 %v737_v42, %v734_v41 }
  0x70   : > { %v3779_v15 = vrot.slane %v738_v59, 4 }
  0x72   : > { %1200 = vmatpush.bf16.msrb.mxu3 %v3113_v56  ;;  %1334 = vmatpush.bf16.msrb.mxu0 %v3125_v62 }
  0x76   : > { %1201 = vmatpush.bf16.msrb.mxu3 %v3112_v63  ;;  %1335 = vmatpush.bf16.msrb.mxu0 %v3124_v6 }
  0x7a   : > { %2129 = vmatpush.bf16.msra.mxu0 %v3167_v38  ;;  %v678_v38 = vld [vmem:[#allocation2 + $0x30] sm:$0xf] }
  0x7e   : > { %2130 = vmatpush.bf16.msra.mxu0 %v3166_v48 }
  0xd6   : > { %v459_v7 = vpop.f32.mrf.mxu0 }
  0xd7   : > { %v460_v10 = vadd.f32 %v3732_v1, %v459_v7 }
  0xd9   : > { %v479_v16 = vmax.f32 %v460_v10, 0.0 }
  0xdb   : > { %v557_v21 = vpack.c.bf16 %v479_v16, %v479_v16  ;;  %v3781_v16 = vrot.slane %v741_v60, 5 }
  0xdc   : > { %v469_v23 = vpop.f32.mrf.mxu3 }
  0xdd   : > { %v566_v26 = vshrl.u32 %v557_v21, 16  ;;  %v470_v27 = vadd.f32 %v3732_v1, %v469_v23  ;;  %v569_v34 = vshll.u32 %v557_v21, 16  ;;  %v2716_v23 = vld [vmem:[#allocation2] sm:$0xf] }
  0xde   : > { %v461_v31 = vpop.f32.mrf.mxu0 }
  0xdf   : > { %v568_v33 = vrot.slane %v566_v26, 7  ;;  %v462_v35 = vadd.f32 %v3732_v1, %v461_v31  ;;  %v483_v36 = vmax.f32 %v470_v27, 0.0  ;;  %v1130_v31 = vunpack.c.l.b16 %v3777_v14 }
  0xe1   : > { %v571_v43 = vor.u32 %v569_v34, %v568_v33  ;;  %v572_v44 = vrot.slane %v568_v33, 4  ;;  %v480_v45 = vmax.f32 %v462_v35, 0.0  ;;  %v561_v46 = vpack.c.bf16 %v483_v36, %v483_v36 }
  0xe3   : > { %v649_v53 = vsel %vm3753_vm8, %v571_v43, %v648_v29  ;;  %v652_v54 = vsel %vm3700_vm3, %v572_v44, %v651_v30  ;;  %v558_v55 = vpack.c.bf16 %v480_v45, %v480_v45  ;;  %v598_v56 = vshrl.u32 %v561_v46, 16 }
  0xe4   : > { %650 = vst [vmem:[#allocation2 + $0x8] sm:$0xf] %v649_v53  ;;  %v601_v57 = vshll.u32 %v561_v46, 16  ;;  %v471_v58 = vpop.f32.mrf.mxu3  ;;  %v744_v43 = vsel %vm3789_vm12, %v3779_v15, %v3781_v16 }
  0xe5   : > { %653 = vst [vmem:[#allocation2 + $0xc] sm:$0x1] %v652_v54  ;;  %v574_v62 = vshrl.u32 %v558_v55, 16  ;;  %v600_v63 = vrot.slane %v598_v56, 7  ;;  %v472_v2 = vadd.f32 %v3732_v1, %v471_v58  ;;  %v577_v4 = vshll.u32 %v558_v55, 16  ;;  %v3137_v55 = vld [vmem:[#allocation8 + $0x128] sm:$0xff] }
  0xe6   : > { %v464_v6 = vpop.f32.mrf.mxu0  ;;  %v3165_v56 = vld [vmem:[#allocation8 + $0x1e8] sm:$0xff]  ;;  %1576 = vmatpush.bf16.msrb.mxu1 %v3137_v55 }
  0xe7   : > { %v576_v7 = vrot.slane %v574_v62, 7  ;;  %v603_v9 = vor.u32 %v601_v57, %v600_v63  ;;  %v604_v10 = vrot.slane %v600_v63, 4  ;;  %v465_v11 = vadd.f32 %v3732_v1, %v464_v6  ;;  %v660_v58 = vld [vmem:[#allocation2 + $0x18] sm:$0xf]  ;;  %v3147_v62 = vld [vmem:[#allocation8 + $0x178] sm:$0xff]  ;;  %2131 = vmatpush.bf16.msra.mxu0 %v3165_v56  ;;  %v3136_v6 = vld [vmem:[#allocation8 + $0x120] sm:$0xff] }
  0xe8   : > { %v484_v13 = vmax.f32 %v472_v2, 0.0  ;;  %v663_v63 = vld [vmem:[#allocation2 + $0x1c] sm:$0x1]  ;;  %1748 = vmatpush.bf16.msrb.mxu2 %v3147_v62 }
  0xe9   : > { %v579_v17 = vor.u32 %v577_v4, %v576_v7  ;;  %v580_v19 = vrot.slane %v576_v7, 4  ;;  %v673_v20 = vsel %vm3753_vm8, %v603_v9, %v672_v0  ;;  %v676_v21 = vsel %vm3700_vm3, %v604_v10, %v675_v5 }
  0xea   : > { %674 = vst [vmem:[#allocation2 + $0x28] sm:$0xf] %v673_v20  ;;  %v481_v24 = vmax.f32 %v465_v11, 0.0  ;;  %v562_v25 = vpack.c.bf16 %v484_v13, %v484_v13  ;;  %1577 = vmatpush.bf16.msrb.mxu1 %v3136_v6 }
  0xeb   : > { %v655_v27 = vsel %vm3753_vm8, %v579_v17, %v654_v8  ;;  %v658_v28 = vsel %vm3700_vm3, %v580_v19, %v657_v12  ;;  %677 = vst [vmem:[#allocation2 + $0x2c] sm:$0x1] %v676_v21  ;;  %v3092_v29 = vld [vmem:[#allocation2 + $0x4] sm:$0xf0]  ;;  %v3164_v12 = vld [vmem:[#allocation8 + $0x1e0] sm:$0xff] }
  0xec   : > { %v1055_v30 = vld [vmem:[#allocation2 + $0x8] sm:$0xe]  ;;  %656 = vst [vmem:[#allocation2 + $0x10] sm:$0xf] %v655_v27  ;;  %v559_v32 = vpack.c.bf16 %v481_v24, %v481_v24  ;;  %v606_v33 = vshrl.u32 %v562_v25, 16  ;;  %v609_v34 = vshll.u32 %v562_v25, 16  ;;  %v2717_v35 = vor.u32 %v3092_v29, %v2716_v23  ;;  %v474_v36 = vpop.f32.mrf.mxu3  ;;  %2132 = vmatpush.bf16.msra.mxu0 %v3164_v12 }
  0xed   : > { %v721_v37 = vld [vmem:[#allocation2 + $0xc] sm:$0x1]  ;;  %659 = vst [vmem:[#allocation2 + $0x14] sm:$0x1] %v658_v28  ;;  %v475_v40 = vadd.f32 %v3732_v1, %v474_v36  ;;  %v2763_v41 = vrot.slane %v1055_v30, 9 }
  0xee   : > { %v1087_v42 = vrot.slane %v721_v37, 5  ;;  %v582_v44 = vshrl.u32 %v559_v32, 16  ;;  %v585_v45 = vshll.u32 %v559_v32, 16  ;;  %v608_v46 = vrot.slane %v606_v33, 7  ;;  %v466_v47 = vpop.f32.mrf.mxu0  ;;  %1033 = vmatmul.bf16.vlgmr.msra.gmra.mxu2 %v2717_v35  ;;  %v697_v48 = vld [vmem:[#allocation2 + $0x8] sm:$0xf] }
  0xef   : > { %v755_v49 = vshll.u32 %v721_v37, 16  ;;  %v467_v51 = vadd.f32 %v3732_v1, %v466_v47  ;;  %v485_v52 = vmax.f32 %v475_v40, 0.0  ;;  %v746_v54 = vshrl.u32 %v697_v48, 16  ;;  %v2804_v11 = vld [vmem:[#allocation2 + $0x8] sm:$0xf] }
  0xf0   : > { %v1088_v53 = vsel %vm3770_vm11, %v2763_v41, %v1087_v42  ;;  %v584_v57 = vrot.slane %v582_v44, 7  ;;  %v611_v59 = vor.u32 %v609_v34, %v608_v46  ;;  %v612_v60 = vrot.slane %v608_v46, 4  ;;  %v684_v21 = vld [vmem:[#allocation2 + $0x38] sm:$0xf]  ;;  %v687_v23 = vld [vmem:[#allocation2 + $0x3c] sm:$0x1] }
  0xf1   : > { %v1131_v61 = vunpack.c.l.b16 %v1088_v53  ;;  %v482_v0 = vmax.f32 %v467_v51, 0.0  ;;  %v563_v2 = vpack.c.bf16 %v485_v52, %v485_v52  ;;  %v748_v4 = vrot.slane %v746_v54, 4  ;;  %v669_v33 = vld [vmem:[#allocation2 + $0x24] sm:$0x1]  ;;  %v3159_v51 = vld [vmem:[#allocation8 + $0x1b8] sm:$0xff]  ;;  %v3145_v54 = vld [vmem:[#allocation8 + $0x168] sm:$0xff] }
  0xf2   : > { %v749_v5 = vshll.u32 %v697_v48, 16  ;;  %v587_v7 = vor.u32 %v585_v45, %v584_v57  ;;  %v588_v8 = vrot.slane %v584_v57, 4  ;;  %v679_v9 = vsel %vm3753_vm8, %v611_v59, %v678_v38  ;;  %v3146_v46 = vld [vmem:[#allocation8 + $0x170] sm:$0xff]  ;;  %1883 = vmatpush.bf16.msra.mxu3 %v3159_v51 }
  0xf3   : > { %v682_v10 = vsel %vm3700_vm3, %v612_v60, %v681_v50  ;;  %680 = vst [vmem:[#allocation2 + $0x30] sm:$0xf] %v679_v9  ;;  %v560_v13 = vpack.c.bf16 %v482_v0, %v482_v0  ;;  %v614_v14 = vshrl.u32 %v563_v2, 16  ;;  %v617_v15 = vshll.u32 %v563_v2, 16  ;;  %v3120_v17 = vld [vmem:[#allocation2 + $0xc] sm:$0xf0]  ;;  %1749 = vmatpush.bf16.msrb.mxu2 %v3146_v46 }
  0xf4   : > { %v1138_v16 = vpack.c.b16 %v1131_v61, %v1130_v31  ;;  %v661_v19 = vsel %vm3753_vm8, %v587_v7, %v660_v58  ;;  %v664_v20 = vsel %vm3700_vm3, %v588_v8, %v663_v63  ;;  %683 = vst [vmem:[#allocation2 + $0x34] sm:$0x1] %v682_v10  ;;  %v2805_v24 = vor.u32 %v3120_v17, %v2804_v11  ;;  %v476_v27 = vpop.f32.mrf.mxu3  ;;  %v666_v31 = vld [vmem:[#allocation2 + $0x20] sm:$0xf]  ;;  %v3815_v37 = vld [vmem:[#allocation2 + $0x14] sm:$0x1] }
  0xf5   : > { %v751_v25 = vrot.slane %v749_v5, 5  ;;  %662 = vst [vmem:[#allocation2 + $0x18] sm:$0xf] %v661_v19  ;;  %v590_v28 = vshrl.u32 %v560_v13, 16  ;;  %v593_v29 = vshll.u32 %v560_v13, 16  ;;  %v616_v30 = vrot.slane %v614_v14, 7 }
  0xf6   : > { %1202 = vmatmul.bf16.vlgmr.msrb.gmra.mxu3 %v1138_v16  ;;  %v757_v32 = vrot.slane %v755_v49, 5  ;;  %665 = vst [vmem:[#allocation2 + $0x1c] sm:$0x1] %v664_v20  ;;  %1336 = vmatmul.bf16.vlgmr.msrb.gmra.mxu0 %v2805_v24  ;;  %v860_v35 = vunpack.c.l.b16 %v744_v43  ;;  %v477_v36 = vadd.f32 %v3732_v1, %v476_v27  ;;  %v1056_v38 = vld [vmem:[#allocation2 + $0x10] sm:$0xe]  ;;  %v1091_v49 = vrot.slane %v3815_v37, 5 }
  0xf7   : > { %v752_v34 = vor.u32 %v751_v25, %v748_v4  ;;  %v592_v40 = vrot.slane %v590_v28, 7  ;;  %v619_v41 = vor.u32 %v617_v15, %v616_v30  ;;  %v620_v42 = vrot.slane %v616_v30, 4  ;;  %v698_v45 = vld [vmem:[#allocation2 + $0x10] sm:$0xf]  ;;  %v3158_v57 = vld [vmem:[#allocation8 + $0x1b0] sm:$0xff]  ;;  %1750 = vmatpush.bf16.msrb.mxu2 %v3145_v54  ;;  %v3163_v24 = vld [vmem:[#allocation8 + $0x1d8] sm:$0xff] }
  0xf8   : > { %v2764_v44 = vrot.slane %v1056_v38, 9  ;;  %v486_v48 = vmax.f32 %v477_v36, 0.0  ;;  %v760_v50 = vshrl.u32 %v698_v45, 16  ;;  %v2720_v61 = vld [vmem:[#allocation2 + $0x10] sm:$0xf]  ;;  %v763_v13 = vshll.u32 %v698_v45, 16  ;;  %1884 = vmatpush.bf16.msra.mxu3 %v3158_v57  ;;  %2133 = vmatpush.bf16.msra.mxu0 %v3163_v24 }
  0xf9   : > { %v753_v47 = vrot.slane %v752_v34, 4  ;;  %v595_v52 = vor.u32 %v593_v29, %v592_v40  ;;  %v596_v43 = vrot.slane %v592_v40, 4  ;;  %v685_v1 = vsel %vm3753_vm8, %v619_v41, %v684_v21  ;;  %v690_v10 = vld [vmem:[#allocation2 + $0x40] sm:$0xf]  ;;  %v693_v14 = vld [vmem:[#allocation2 + $0x44] sm:$0x1] }
  0xfa   : > { %v688_v53 = vsel %vm3700_vm3, %v620_v42, %v687_v23  ;;  %686 = vst [vmem:[#allocation2 + $0x38] sm:$0xf] %v685_v1  ;;  %v564_v56 = vpack.c.bf16 %v486_v48, %v486_v48  ;;  %v762_v62 = vrot.slane %v760_v50, 4  ;;  %v1092_v8 = vsel %vm3770_vm11, %v2764_v44, %v1091_v49  ;;  %v3135_v23 = vld [vmem:[#allocation8 + $0x118] sm:$0xff]  ;;  %v3144_v25 = vld [vmem:[#allocation8 + $0x160] sm:$0xff]  ;;  %v3134_v41 = vld [vmem:[#allocation8 + $0x110] sm:$0xff] }
  0xfb   : > { %v758_v55 = vsel %vm3789_vm12, %v753_v47, %v757_v32  ;;  %v667_v58 = vsel %vm3753_vm8, %v595_v52, %v666_v31  ;;  %v670_v59 = vsel %vm3700_vm3, %v596_v43, %v669_v33  ;;  %689 = vst [vmem:[#allocation2 + $0x3c] sm:$0x1] %v688_v53  ;;  %v769_v16 = vshll.u32 %v3815_v37, 16  ;;  %v701_v31 = vld [vmem:[#allocation2 + $0x28] sm:$0xf]  ;;  %v3157_v33 = vld [vmem:[#allocation8 + $0x1a8] sm:$0xff]  ;;  %1578 = vmatpush.bf16.msrb.mxu1 %v3135_v23 }
  0xfc   : > { %v861_v60 = vunpack.c.l.b16 %v758_v55  ;;  %668 = vst [vmem:[#allocation2 + $0x20] sm:$0xf] %v667_v58  ;;  %v3093_v63 = vld [vmem:[#allocation2 + $0x14] sm:$0xf0]  ;;  %v622_v0 = vshrl.u32 %v564_v56, 16  ;;  %v625_v2 = vshll.u32 %v564_v56, 16  ;;  %v1132_v27 = vunpack.c.l.b16 %v1092_v8  ;;  %1751 = vmatpush.bf16.msrb.mxu2 %v3144_v25  ;;  %1885 = vmatpush.bf16.msra.mxu3 %v3157_v33 }
  0xfd   : > { %671 = vst [vmem:[#allocation2 + $0x24] sm:$0x1] %v670_v59  ;;  %v2721_v5 = vor.u32 %v3093_v63, %v2720_v61  ;;  %v3828_v6 = vld [vmem:[#allocation2 + $0x1c] sm:$0x1]  ;;  %v1057_v7 = vld [vmem:[#allocation2 + $0x18] sm:$0xe] }
  0xfe   : > { %v868_v4 = vpack.c.b16 %v861_v60, %v860_v35  ;;  %v624_v9 = vrot.slane %v622_v0, 7  ;;  %v2765_v11 = vrot.slane %v1057_v7, 9  ;;  %v1095_v12 = vrot.slane %v3828_v6, 5  ;;  %v699_v15 = vld [vmem:[#allocation2 + $0x18] sm:$0xf]  ;;  %v3143_v38 = vld [vmem:[#allocation8 + $0x158] sm:$0xff] }
  0xff   : > { %1038 = vmatmul.bf16.gmra.mxu2 %v2721_v5  ;;  %v765_v21 = vrot.slane %v763_v13, 5  ;;  %v2808_v29 = vld [vmem:[#allocation2 + $0x18] sm:$0xf]  ;;  %v774_v30 = vshrl.u32 %v699_v15, 16  ;;  %v777_v32 = vshll.u32 %v699_v15, 16  ;;  %v783_v37 = vshll.u32 %v3828_v6, 16  ;;  %1579 = vmatpush.bf16.msrb.mxu1 %v3134_v41 }
 0x100   : > { %932 = vmatmul.bf16.vlgmr.msra.gmra.mxu1 %v868_v4  ;;  %v627_v17 = vor.u32 %v625_v2, %v624_v9  ;;  %v628_v19 = vrot.slane %v624_v9, 4  ;;  %v1096_v20 = vsel %vm3770_vm11, %v2765_v11, %v1095_v12  ;;  %v3156_v40 = vld [vmem:[#allocation8 + $0x1a0] sm:$0xff]  ;;  %v3841_v47 = vld [vmem:[#allocation2 + $0x2c] sm:$0x1]  ;;  %v771_v49 = vrot.slane %v769_v16, 5  ;;  %v3162_v56 = vld [vmem:[#allocation8 + $0x1d0] sm:$0xff]  ;;  %1752 = vmatpush.bf16.msrb.mxu2 %v3143_v38 }
 0x101   : > { %v1133_v28 = vunpack.c.l.b16 %v1096_v20  ;;  %v766_v36 = vor.u32 %v765_v21, %v762_v62  ;;  %v776_v45 = vrot.slane %v774_v30, 4  ;;  %v779_v46 = vrot.slane %v777_v32, 5  ;;  %v1059_v50 = vld [vmem:[#allocation2 + $0x28] sm:$0xe]  ;;  %1886 = vmatpush.bf16.msra.mxu3 %v3156_v40  ;;  %v3142_v61 = vld [vmem:[#allocation8 + $0x150] sm:$0xff]  ;;  %2134 = vmatpush.bf16.msra.mxu0 %v3162_v56  ;;  %v3161_v30 = vld [vmem:[#allocation8 + $0x1c8] sm:$0xff] }
 0x102   : > { %v691_v34 = vsel %vm3753_vm8, %v627_v17, %v690_v10  ;;  %v694_v35 = vsel %vm3700_vm3, %v628_v19, %v693_v14  ;;  %v802_v55 = vshrl.u32 %v701_v31, 16  ;;  %v785_v58 = vrot.slane %v783_v37, 5  ;;  %v3155_v4 = vld [vmem:[#allocation8 + $0x198] sm:$0xff]  ;;  %v3141_v17 = vld [vmem:[#allocation8 + $0x148] sm:$0xff]  ;;  %v3154_v19 = vld [vmem:[#allocation8 + $0x190] sm:$0xff] }
 0x103   : > { %692 = vst [vmem:[#allocation2 + $0x40] sm:$0xf] %v691_v34  ;;  %v1139_v42 = vpack.c.b16 %v1133_v28, %v1132_v27  ;;  %v3121_v44 = vld [vmem:[#allocation2 + $0x1c] sm:$0xf0]  ;;  %v767_v48 = vrot.slane %v766_v36, 4  ;;  %v780_v51 = vor.u32 %v779_v46, %v776_v45  ;;  %v2767_v59 = vrot.slane %v1059_v50, 9 }
 0x104   : > { %695 = vst [vmem:[#allocation2 + $0x44] sm:$0x1] %v694_v35  ;;  %v2809_v39 = vor.u32 %v3121_v44, %v2808_v29  ;;  %v3843_v52 = vld [vmem:[#allocation2 + $0x24] sm:$0x1]  ;;  %v1058_v43 = vld [vmem:[#allocation2 + $0x20] sm:$0xe]  ;;  %1753 = vmatpush.bf16.msrb.mxu2 %v3142_v61 }
 0x105   : > { %v700_v1 = vld [vmem:[#allocation2 + $0x20] sm:$0xf]  ;;  %v772_v53 = vsel %vm3789_vm12, %v767_v48, %v771_v49  ;;  %v781_v57 = vrot.slane %v780_v51, 4  ;;  %v2766_v62 = vrot.slane %v1058_v43, 9  ;;  %v1099_v63 = vrot.slane %v3843_v52, 5  ;;  %1887 = vmatpush.bf16.msra.mxu3 %v3155_v4  ;;  %v3133_v29 = vld [vmem:[#allocation8 + $0x108] sm:$0xff]  ;;  %2135 = vmatpush.bf16.msra.mxu0 %v3161_v30 }
 0x106   : > { %1207 = vmatmul.bf16.gmra.mxu3 %v1139_v42  ;;  %1341 = vmatmul.bf16.gmra.mxu0 %v2809_v39  ;;  %v788_v54 = vshrl.u32 %v700_v1, 16  ;;  %v791_v60 = vshll.u32 %v700_v1, 16  ;;  %v1103_v0 = vrot.slane %v3841_v47, 5  ;;  %v805_v2 = vshll.u32 %v701_v31, 16  ;;  %v3094_v7 = vld [vmem:[#allocation2 + $0x24] sm:$0xf0] }
 0x107   : > { %v786_v5 = vsel %vm3789_vm12, %v781_v57, %v785_v58  ;;  %v862_v6 = vunpack.c.l.b16 %v772_v53  ;;  %v2724_v10 = vld [vmem:[#allocation2 + $0x20] sm:$0xf]  ;;  %v804_v12 = vrot.slane %v802_v55, 4  ;;  %v1100_v15 = vsel %vm3770_vm11, %v2766_v62, %v1099_v63  ;;  %v2812_v28 = vld [vmem:[#allocation2 + $0x28] sm:$0xf]  ;;  %v3140_v33 = vld [vmem:[#allocation8 + $0x140] sm:$0xff]  ;;  %1580 = vmatpush.bf16.msrb.mxu1 %v3133_v29 }
 0x108   : > { %v790_v8 = vrot.slane %v788_v54, 4  ;;  %v863_v9 = vunpack.c.l.b16 %v786_v5  ;;  %v793_v11 = vrot.slane %v791_v60, 5  ;;  %v807_v13 = vrot.slane %v805_v2, 5  ;;  %1754 = vmatpush.bf16.msrb.mxu2 %v3141_v17  ;;  %v702_v31 = vld [vmem:[#allocation2 + $0x30] sm:$0xf]  ;;  %v3153_v34 = vld [vmem:[#allocation8 + $0x188] sm:$0xff] }
 0x109   : > { %v1104_v16 = vsel %vm3770_vm11, %v2767_v59, %v1103_v0  ;;  %v2725_v20 = vor.u32 %v3094_v7, %v2724_v10  ;;  %v811_v24 = vshll.u32 %v3841_v47, 16  ;;  %v1134_v25 = vunpack.c.l.b16 %v1100_v15  ;;  %1888 = vmatpush.bf16.msra.mxu3 %v3154_v19  ;;  %v3122_v35 = vld [vmem:[#allocation2 + $0x2c] sm:$0xf0]  ;;  %v3857_v36 = vld [vmem:[#allocation2 + $0x34] sm:$0x1] }
 0x10a   : > { %v869_v14 = vpack.c.b16 %v863_v9, %v862_v6  ;;  %v794_v21 = vor.u32 %v793_v11, %v790_v8  ;;  %v808_v23 = vor.u32 %v807_v13, %v804_v12  ;;  %v1135_v27 = vunpack.c.l.b16 %v1104_v16  ;;  %v3132_v37 = vld [vmem:[#allocation8 + $0x100] sm:$0xff]  ;;  %v703_v42 = vld [vmem:[#allocation2 + $0x38] sm:$0xf]  ;;  %v727_v50 = vld [vmem:[#allocation2 + $0x3c] sm:$0x1] }
 0x10b   : > { %v797_v32 = vshll.u32 %v3843_v52, 16  ;;  %v813_v41 = vrot.slane %v811_v24, 5  ;;  %v1060_v45 = vld [vmem:[#allocation2 + $0x30] sm:$0xe]  ;;  %v816_v46 = vshrl.u32 %v702_v31, 16  ;;  %v819_v47 = vshll.u32 %v702_v31, 16  ;;  %1581 = vmatpush.bf16.msrb.mxu1 %v3132_v37 }
 0x10c   : > { %v795_v38 = vrot.slane %v794_v21, 4  ;;  %v809_v40 = vrot.slane %v808_v23, 4  ;;  %v1140_v44 = vpack.c.b16 %v1135_v27, %v1134_v25  ;;  %v3160_v39 = vld [vmem:[#allocation8 + $0x1c0] sm:$0xff]  ;;  %v2813_v48 = vor.u32 %v3122_v35, %v2812_v28  ;;  %v1061_v51 = vld [vmem:[#allocation2 + $0x38] sm:$0xe]  ;;  %1755 = vmatpush.bf16.msrb.mxu2 %v3140_v33 }
 0x10d   : > { %v799_v49 = vrot.slane %v797_v32, 5  ;;  %1889 = vmatpush.bf16.msra.mxu3 %v3153_v34  ;;  %v3152_v52 = vld [vmem:[#allocation8 + $0x180] sm:$0xff]  ;;  %v830_v43 = vshrl.u32 %v703_v42, 16  ;;  %v833_v1 = vshll.u32 %v703_v42, 16  ;;  %v2768_v55 = vrot.slane %v1060_v45, 9  ;;  %2136 = vmatpush.bf16.msra.mxu0 %v3160_v39  ;;  %v3175_v34 = vld [vmem:[#allocation8 + $0x238] sm:$0xff] }
 0x10e   : > { %v814_v54 = vsel %vm3789_vm12, %v809_v40, %v813_v41  ;;  %v1107_v56 = vrot.slane %v3857_v36, 5  ;;  %v2769_v57 = vrot.slane %v1061_v51, 9  ;;  %v1111_v58 = vrot.slane %v727_v50, 5  ;;  %v2728_v61 = vld [vmem:[#allocation2 + $0x30] sm:$0xf]  ;;  %v3174_v45 = vld [vmem:[#allocation8 + $0x230] sm:$0xff] }
 0x10f   : > { %1043 = vmatmul.bf16.gmra.mxu2 %v2725_v20  ;;  %v800_v53 = vsel %vm3789_vm12, %v795_v38, %v799_v49  ;;  %v818_v59 = vrot.slane %v816_v46, 4  ;;  %v821_v60 = vrot.slane %v819_v47, 5  ;;  %v865_v63 = vunpack.c.l.b16 %v814_v54  ;;  %v3095_v0 = vld [vmem:[#allocation2 + $0x34] sm:$0xf0]  ;;  %v1920_v6 = vld [vmem:[#allocation2 + $0x10] sm:$0xf]  ;;  %3212 = vmatpush.bf16.msra.mxu1 %v3175_v34 }
 0x110   : > { %937 = vmatmul.bf16.gmra.mxu1 %v869_v14  ;;  %v864_v62 = vunpack.c.l.b16 %v800_v53  ;;  %v832_v2 = vrot.slane %v830_v43, 4  ;;  %v835_v4 = vrot.slane %v833_v1, 5  ;;  %v1922_v5 = vld [vmem:[#allocation2 + $0x18] sm:$0xf]  ;;  %v1108_v7 = vsel %vm3770_vm11, %v2768_v55, %v1107_v56  ;;  %v3869_v11 = vld [vmem:[#allocation2 + $0x14] sm:$0x1] }
 0x111   : > { %1890 = vmatpush.bf16.msra.mxu3 %v3152_v52  ;;  %v1112_v8 = vsel %vm3770_vm11, %v2769_v57, %v1111_v58  ;;  %v822_v9 = vor.u32 %v821_v60, %v818_v59  ;;  %v825_v10 = vshll.u32 %v3857_v36, 16  ;;  %v1612_v12 = vld [vmem:[#allocation2 + $0x10] sm:$0xe]  ;;  %v2729_v13 = vor.u32 %v3095_v0, %v2728_v61  ;;  %v3871_v25 = vld [vmem:[#allocation2 + $0xc] sm:$0x1]  ;;  %2303 = vmatpush.bf16.msrb.mxu0 %v3175_v34 }
 0x112   : > { %v839_v14 = vshll.u32 %v727_v50, 16  ;;  %v1951_v15 = vshrl.u32 %v1922_v5, 16  ;;  %v1954_v16 = vshll.u32 %v1922_v5, 16  ;;  %v870_v17 = vpack.c.b16 %v865_v63, %v864_v62  ;;  %v2816_v29 = vld [vmem:[#allocation2 + $0x38] sm:$0xf] }
 0x113   : > { %v836_v19 = vor.u32 %v835_v4, %v832_v2  ;;  %v1937_v20 = vshrl.u32 %v1920_v6, 16  ;;  %v1940_v21 = vshll.u32 %v1920_v6, 16  ;;  %v1136_v23 = vunpack.c.l.b16 %v1108_v7  ;;  %v3123_v30 = vld [vmem:[#allocation2 + $0x3c] sm:$0xf0]  ;;  %v1611_v33 = vld [vmem:[#allocation2 + $0x8] sm:$0xe]  ;;  %3213 = vmatpush.bf16.msra.mxu1 %v3174_v45 }
 0x114   : > { %v1137_v24 = vunpack.c.l.b16 %v1112_v8  ;;  %v2883_v27 = vrot.slane %v1612_v12, 9  ;;  %v1641_v28 = vrot.slane %v3869_v11, 5  ;;  %v823_v32 = vrot.slane %v822_v9, 4  ;;  %v1365_v37 = vld [vmem:[#allocation2 + $0x8] sm:$0xf] }
 0x115   : > { %v827_v31 = vrot.slane %v825_v10, 5  ;;  %v1953_v35 = vrot.slane %v1951_v15, 4  ;;  %v1956_v36 = vrot.slane %v1954_v16, 5  ;;  %v1367_v38 = vld [vmem:[#allocation2 + $0x10] sm:$0xf]  ;;  %v837_v40 = vrot.slane %v836_v19, 4  ;;  %2304 = vmatpush.bf16.msrb.mxu0 %v3174_v45 }
 0x116   : > { %1212 = vmatmul.bf16.gmra.mxu3 %v1140_v44  ;;  %1346 = vmatmul.bf16.gmra.mxu0 %v2813_v48  ;;  %v841_v41 = vrot.slane %v839_v14, 5  ;;  %v1939_v42 = vrot.slane %v1937_v20, 4  ;;  %v1942_v44 = vrot.slane %v1940_v21, 5  ;;  %v1141_v46 = vpack.c.b16 %v1137_v24, %v1136_v23  ;;  %v3877_v49 = vld [vmem:[#allocation2 + $0x14] sm:$0x1] }
 0x117   : > { %v2882_v47 = vrot.slane %v1611_v33, 9  ;;  %v1637_v39 = vrot.slane %v3871_v25, 5  ;;  %v1642_v48 = vsel %vm3770_vm11, %v2883_v27, %v1641_v28  ;;  %v3879_v50 = vld [vmem:[#allocation2 + $0x1c] sm:$0x1]  ;;  %v1382_v51 = vshrl.u32 %v1365_v37, 16 }
 0x118   : > { %v1385_v52 = vshll.u32 %v1365_v37, 16  ;;  %v1396_v43 = vshrl.u32 %v1367_v38, 16  ;;  %v1399_v1 = vshll.u32 %v1367_v38, 16  ;;  %v2817_v53 = vor.u32 %v3123_v30, %v2816_v29  ;;  %v1924_v4 = vld [vmem:[#allocation2 + $0x20] sm:$0xf] }
 0x119   : > { %v1957_v54 = vor.u32 %v1956_v36, %v1953_v35  ;;  %v828_v55 = vsel %vm3789_vm12, %v823_v32, %v827_v31  ;;  %v842_v56 = vsel %vm3789_vm12, %v837_v40, %v841_v41  ;;  %v1943_v57 = vor.u32 %v1942_v44, %v1939_v42  ;;  %v3889_v10 = vld [vmem:[#allocation2 + $0x1c] sm:$0x1]  ;;  %v1926_v12 = vld [vmem:[#allocation2 + $0x28] sm:$0xf]  ;;  %v1613_v15 = vld [vmem:[#allocation2 + $0x18] sm:$0xe] }
 0x11a   : > { %v1638_v58 = vsel %vm3770_vm11, %v2882_v47, %v1637_v39  ;;  %v1685_v59 = vunpack.c.l.b16 %v1642_v48  ;;  %v1946_v60 = vshll.u32 %v3877_v49, 16  ;;  %v1960_v61 = vshll.u32 %v3879_v50, 16  ;;  %v3892_v24 = vld [vmem:[#allocation2 + $0x24] sm:$0x1]  ;;  %v1614_v27 = vld [vmem:[#allocation2 + $0x20] sm:$0xe] }
 0x11b   : > { %v1384_v62 = vrot.slane %v1382_v51, 4  ;;  %v1387_v63 = vrot.slane %v1385_v52, 5  ;;  %v1398_v0 = vrot.slane %v1396_v43, 4  ;;  %v1401_v2 = vrot.slane %v1399_v1, 5  ;;  %v3148_v31 = vld [vmem:[#allocation2 + $0x14] sm:$0xf0] }
 0x11c   : > { %v866_v5 = vunpack.c.l.b16 %v828_v55  ;;  %v867_v6 = vunpack.c.l.b16 %v842_v56  ;;  %v1958_v7 = vrot.slane %v1957_v54, 4  ;;  %v1684_v8 = vunpack.c.l.b16 %v1638_v58  ;;  %v3173_v47 = vld [vmem:[#allocation8 + $0x228] sm:$0xff]  ;;  %v3901_v48 = vld [vmem:[#allocation2 + $0x24] sm:$0x1]  ;;  %v3172_v55 = vld [vmem:[#allocation8 + $0x220] sm:$0xff] }
 0x11d   : > { %v1944_v9 = vrot.slane %v1943_v57, 4  ;;  %v1962_v14 = vrot.slane %v1960_v61, 5  ;;  %v1965_v16 = vshrl.u32 %v1924_v4, 16  ;;  %v1388_v20 = vor.u32 %v1387_v63, %v1384_v62  ;;  %v1369_v54 = vld [vmem:[#allocation2 + $0x18] sm:$0xf]  ;;  %2305 = vmatpush.bf16.msrb.mxu0 %v3173_v47  ;;  %3214 = vmatpush.bf16.msra.mxu1 %v3173_v47 }
 0x11e   : > { %v1692_v19 = vpack.c.b16 %v1685_v59, %v1684_v8  ;;  %v1391_v21 = vshll.u32 %v3871_v25, 16  ;;  %v1402_v23 = vor.u32 %v1401_v2, %v1398_v0  ;;  %v871_v28 = vpack.c.b16 %v867_v6, %v866_v5  ;;  %v2924_v25 = vld [vmem:[#allocation2 + $0x10] sm:$0xf]  ;;  %v3911_v63 = vld [vmem:[#allocation2 + $0x2c] sm:$0x1] }
 0x11f   : > { %1048 = vmatmul.bf16.gmra.mxu2 %v2729_v13  ;;  %v1948_v13 = vrot.slane %v1946_v60, 5  ;;  %v1963_v29 = vsel %vm3789_vm12, %v1958_v7, %v1962_v14  ;;  %v1979_v30 = vshrl.u32 %v1926_v12, 16  ;;  %v1982_v32 = vshll.u32 %v1926_v12, 16 }
 0x120   : > { %942 = vmatmul.bf16.gmra.mxu1 %v870_v17  ;;  %v1968_v17 = vshll.u32 %v1924_v4, 16  ;;  %v1405_v34 = vshll.u32 %v3869_v11, 16  ;;  %v2884_v35 = vrot.slane %v1613_v15, 9  ;;  %v1645_v36 = vrot.slane %v3889_v10, 5 }
 0x121   : > { %v1949_v33 = vsel %vm3789_vm12, %v1944_v9, %v1948_v13  ;;  %v2885_v37 = vrot.slane %v1614_v27, 9  ;;  %v1649_v38 = vrot.slane %v3892_v24, 5  ;;  %v1967_v40 = vrot.slane %v1965_v16, 4  ;;  %2306 = vmatpush.bf16.msrb.mxu0 %v3172_v55  ;;  %3215 = vmatpush.bf16.msra.mxu1 %v3172_v55  ;;  %v3915_v27 = vld [vmem:[#allocation2 + $0x2c] sm:$0x1] }
 0x122   : > { %v1970_v41 = vrot.slane %v1968_v17, 5  ;;  %v2066_v42 = vunpack.c.l.b16 %v1963_v29  ;;  %v1389_v44 = vrot.slane %v1388_v20, 4  ;;  %v1403_v45 = vrot.slane %v1402_v23, 4  ;;  %v1928_v17 = vld [vmem:[#allocation2 + $0x30] sm:$0xf] }
 0x123   : > { %v2925_v39 = vor.u32 %v3148_v31, %v2924_v25  ;;  %v1981_v11 = vrot.slane %v1979_v30, 4  ;;  %v1984_v51 = vrot.slane %v1982_v32, 5  ;;  %v2065_v52 = vunpack.c.l.b16 %v1949_v33  ;;  %v3917_v30 = vld [vmem:[#allocation2 + $0x34] sm:$0x1]  ;;  %v522_v32 = vld [vmem:[#allocation2 + $0x48] sm:$0x1] }
 0x124   : > { %v1393_v43 = vrot.slane %v1391_v21, 5  ;;  %v1407_v1 = vrot.slane %v1405_v34, 5  ;;  %v1650_v56 = vsel %vm3770_vm11, %v2885_v37, %v1649_v38  ;;  %v1971_v57 = vor.u32 %v1970_v41, %v1967_v40  ;;  %v554_v31 = vld [vmem:[#allocation2 + $0x4c] sm:$0x1]  ;;  %v1615_v25 = vld [vmem:[#allocation2 + $0x28] sm:$0xe] }
 0x125   : > { %v2073_v60 = vpack.c.b16 %v2066_v42, %v2065_v52  ;;  %v1974_v0 = vshll.u32 %v3901_v48, 16  ;;  %v1985_v2 = vor.u32 %v1984_v51, %v1981_v11  ;;  %v1988_v4 = vshll.u32 %v3911_v63, 16  ;;  %v1616_v37 = vld [vmem:[#allocation2 + $0x30] sm:$0xe]  ;;  %2307 = vmatpush.bf16.msrb.mxu0 %v3171_v22  ;;  %3216 = vmatpush.bf16.msra.mxu1 %v3171_v22 }
 0x126   : > { %1217 = vmatmul.bf16.gmra.mxu3 %v1141_v46  ;;  %1351 = vmatmul.bf16.gmra.mxu0 %v2817_v53  ;;  %v1371_v46 = vld [vmem:[#allocation2 + $0x20] sm:$0xf]  ;;  %v1646_v53 = vsel %vm3770_vm11, %v2884_v35, %v1645_v36  ;;  %v1394_v61 = vsel %vm3789_vm12, %v1389_v44, %v1393_v43  ;;  %v1408_v62 = vsel %vm3789_vm12, %v1403_v45, %v1407_v1  ;;  %v1410_v5 = vshrl.u32 %v1369_v54, 16  ;;  %v3149_v45 = vld [vmem:[#allocation2 + $0x24] sm:$0xf0] }
 0x127   : > { %v1424_v58 = vshrl.u32 %v1371_v46, 16  ;;  %v1427_v59 = vshll.u32 %v1371_v46, 16  ;;  %v1413_v6 = vshll.u32 %v1369_v54, 16  ;;  %v1687_v7 = vunpack.c.l.b16 %v1650_v56  ;;  %v2928_v44 = vld [vmem:[#allocation2 + $0x20] sm:$0xf] }
 0x128   : > { %v1511_v8 = vunpack.c.l.b16 %v1408_v62  ;;  %v1972_v9 = vrot.slane %v1971_v57, 4  ;;  %v1510_v14 = vunpack.c.l.b16 %v1394_v61  ;;  %v1686_v15 = vunpack.c.l.b16 %v1646_v53  ;;  %v1373_v54 = vld [vmem:[#allocation2 + $0x28] sm:$0xf]  ;;  %v3931_v61 = vld [vmem:[#allocation2 + $0x34] sm:$0x1] }
 0x129   : > { %v1426_v12 = vrot.slane %v1424_v58, 4  ;;  %v1429_v13 = vrot.slane %v1427_v59, 5  ;;  %v1976_v16 = vrot.slane %v1974_v0, 5  ;;  %v1990_v20 = vrot.slane %v1988_v4, 5  ;;  %v3937_v4 = vld [vmem:[#allocation2 + $0x3c] sm:$0x1] }
 0x12a   : > { %v1412_v21 = vrot.slane %v1410_v5, 4  ;;  %v1415_v23 = vrot.slane %v1413_v6, 5  ;;  %v1693_v29 = vpack.c.b16 %v1687_v7, %v1686_v15  ;;  %v1518_v33 = vpack.c.b16 %v1511_v8, %v1510_v14  ;;  %v1375_v5 = vld [vmem:[#allocation2 + $0x30] sm:$0xf]  ;;  %v3170_v6 = vld [vmem:[#allocation8 + $0x210] sm:$0xff] }
 0x12b   : > { %v1977_v34 = vsel %vm3789_vm12, %v1972_v9, %v1976_v16  ;;  %v1430_v35 = vor.u32 %v1429_v13, %v1426_v12  ;;  %v1433_v36 = vshll.u32 %v3892_v24, 16  ;;  %v1993_v38 = vshrl.u32 %v1928_v17, 16  ;;  %2308 = vmatpush.bf16.msrb.mxu0 %v3170_v6  ;;  %3217 = vmatpush.bf16.msra.mxu1 %v3170_v6 }
 0x12c   : > { %v1996_v40 = vshll.u32 %v1928_v17, 16  ;;  %v1416_v47 = vor.u32 %v1415_v23, %v1412_v21  ;;  %v555_v11 = vsel %vm3707_vm4, 0, %v554_v31  ;;  %v2886_v51 = vrot.slane %v1615_v25, 9  ;;  %v2166_v17 = vld [vmem:[#allocation2 + $0x10] sm:$0xe] }
 0x12d   : > { %v1653_v24 = vrot.slane %v3915_v27, 5  ;;  %v2887_v52 = vrot.slane %v1616_v37, 9  ;;  %v1657_v43 = vrot.slane %v3917_v30, 5  ;;  %v1419_v1 = vshll.u32 %v3889_v10, 16  ;;  %556 = vst [vmem:[#allocation2 + $0x4c] sm:$0x1] %v555_v11 }
 0x12e   : > { %v1431_v53 = vrot.slane %v1430_v35, 4  ;;  %v1995_v55 = vrot.slane %v1993_v38, 4  ;;  %v1998_v18 = vrot.slane %v1996_v40, 5  ;;  %v2067_v58 = vunpack.c.l.b16 %v1977_v34  ;;  %v2167_v35 = vld [vmem:[#allocation2 + $0x18] sm:$0xe] }
 0x12f   : > { %1756 = vmatmul.bf16.vlgmr.msrb.gmra.mxu2 %v1692_v19  ;;  %v1986_v19 = vrot.slane %v1985_v2, 4  ;;  %v2929_v62 = vor.u32 %v3149_v45, %v2928_v44  ;;  %v1417_v0 = vrot.slane %v1416_v47, 4  ;;  %v1654_v10 = vsel %vm3770_vm11, %v2886_v51, %v1653_v24 }
 0x130   : > { %947 = vmatmul.bf16.gmra.mxu1 %v871_v28  ;;  %v1930_v28 = vld [vmem:[#allocation2 + $0x38] sm:$0xf]  ;;  %v1658_v2 = vsel %vm3770_vm11, %v2887_v52, %v1657_v43  ;;  %v2002_v8 = vshll.u32 %v3931_v61, 16  ;;  %v2016_v9 = vshll.u32 %v3937_v4, 16  ;;  %v1438_v12 = vshrl.u32 %v1373_v54, 16 }
 0x131   : > { %v2007_v41 = vshrl.u32 %v1930_v28, 16  ;;  %v2010_v42 = vshll.u32 %v1930_v28, 16  ;;  %v1991_v46 = vsel %vm3789_vm12, %v1986_v19, %v1990_v20  ;;  %v1421_v13 = vrot.slane %v1419_v1, 5 }
 0x132   : > { %v2068_v59 = vunpack.c.l.b16 %v1991_v46  ;;  %v1999_v14 = vor.u32 %v1998_v18, %v1995_v55  ;;  %v1441_v16 = vshll.u32 %v1373_v54, 16  ;;  %v1452_v20 = vshrl.u32 %v1375_v5, 16  ;;  %v1932_v46 = vld [vmem:[#allocation2 + $0x40] sm:$0xf]  ;;  %v1617_v54 = vld [vmem:[#allocation2 + $0x38] sm:$0xe] }
 0x133   : > { %v2009_v56 = vrot.slane %v2007_v41, 4  ;;  %v2012_v57 = vrot.slane %v2010_v42, 5  ;;  %v1455_v21 = vshll.u32 %v1375_v5, 16  ;;  %v1422_v23 = vsel %vm3789_vm12, %v1417_v0, %v1421_v13  ;;  %v3955_v18 = vld [vmem:[#allocation2 + $0x3c] sm:$0x1] }
 0x134   : > { %v2074_v19 = vpack.c.b16 %v2068_v59, %v2067_v58  ;;  %v2004_v31 = vrot.slane %v2002_v8, 5  ;;  %v1440_v34 = vrot.slane %v1438_v12, 4  ;;  %v2000_v25 = vrot.slane %v1999_v14, 4  ;;  %v3169_v8 = vld [vmem:[#allocation8 + $0x208] sm:$0xff] }
 0x135   : > { %v2013_v15 = vor.u32 %v2012_v57, %v2009_v56  ;;  %v1443_v38 = vrot.slane %v1441_v16, 5  ;;  %v2192_v40 = vrot.slane %v3877_v49, 5  ;;  %v1512_v41 = vunpack.c.l.b16 %v1422_v23  ;;  %v3150_v12 = vld [vmem:[#allocation2 + $0x34] sm:$0xf0]  ;;  %2309 = vmatpush.bf16.msrb.mxu0 %v3169_v8  ;;  %3218 = vmatpush.bf16.msra.mxu1 %v3169_v8  ;;  %v3168_v23 = vld [vmem:[#allocation8 + $0x200] sm:$0xff] }
 0x136   : > { %1891 = vmatmul.bf16.vlgmr.msra.gmra.mxu3 %v2925_v39  ;;  %2137 = vmatmul.bf16.vlgmr.msra.gmra.mxu0 %v2073_v60  ;;  %v523_v39 = vsel %vm3700_vm3, 0, %v522_v32  ;;  %v1435_v60 = vrot.slane %v1433_v36, 5  ;;  %v1689_v32 = vunpack.c.l.b16 %v1658_v2  ;;  %v3002_v36 = vrot.slane %v2166_v17, 9 }
 0x137   : > { %524 = vst [vmem:[#allocation2 + $0x48] sm:$0x1] %v523_v39  ;;  %v2014_v37 = vrot.slane %v2013_v15, 4  ;;  %v1454_v42 = vrot.slane %v1452_v20, 4  ;;  %v1457_v44 = vrot.slane %v1455_v21, 5  ;;  %v3003_v47 = vrot.slane %v2167_v35, 9 }
 0x138   : > { %v1436_v7 = vsel %vm3789_vm12, %v1431_v53, %v1435_v60  ;;  %v1447_v11 = vshll.u32 %v3915_v27, 16  ;;  %v2193_v24 = vsel %vm3770_vm11, %v3002_v36, %v2192_v40  ;;  %v2196_v52 = vrot.slane %v3879_v50, 5  ;;  %v1618_v27 = vld [vmem:[#allocation2 + $0x40] sm:$0xe]  ;;  %v3959_v50 = vld [vmem:[#allocation2 + $0x44] sm:$0x1] }
 0x139   : > { %v1513_v28 = vunpack.c.l.b16 %v1436_v7  ;;  %v2005_v43 = vsel %vm3789_vm12, %v2000_v25, %v2004_v31  ;;  %v1444_v1 = vor.u32 %v1443_v38, %v1440_v34  ;;  %v1461_v53 = vshll.u32 %v3917_v30, 16  ;;  %v2932_v30 = vld [vmem:[#allocation2 + $0x30] sm:$0xf]  ;;  %v1379_v31 = vld [vmem:[#allocation2 + $0x40] sm:$0xf]  ;;  %2310 = vmatpush.bf16.msrb.mxu0 %v3168_v23  ;;  %3219 = vmatpush.bf16.msra.mxu1 %v3168_v23 }
 0x13a   : > { %v1458_v55 = vor.u32 %v1457_v44, %v1454_v42  ;;  %v2021_v56 = vshrl.u32 %v1932_v46, 16  ;;  %v2024_v57 = vshll.u32 %v1932_v46, 16  ;;  %v2197_v22 = vsel %vm3770_vm11, %v3003_v47, %v2196_v52  ;;  %v3973_v25 = vld [vmem:[#allocation2 + $0x44] sm:$0x1] }
 0x13b   : > { %v1519_v39 = vpack.c.b16 %v1513_v28, %v1512_v41  ;;  %v2239_v60 = vunpack.c.l.b16 %v2193_v24  ;;  %v2069_v0 = vunpack.c.l.b16 %v2005_v43  ;;  %v2888_v2 = vrot.slane %v1617_v54, 9 }
 0x13c   : > { %v1463_v5 = vrot.slane %v1461_v53, 5  ;;  %v1661_v6 = vrot.slane %v3955_v18, 5  ;;  %v2889_v7 = vrot.slane %v1618_v27, 9  ;;  %v1445_v14 = vrot.slane %v1444_v1, 4 }
 0x13d   : > { %v1459_v15 = vrot.slane %v1458_v55, 4  ;;  %v1665_v16 = vrot.slane %v3959_v50, 5  ;;  %v2023_v17 = vrot.slane %v2021_v56, 4  ;;  %v2933_v28 = vor.u32 %v3150_v12, %v2932_v30 }
 0x13e   : > { %v1934_v51 = vld [vmem:[#allocation2 + $0x48] sm:$0xf]  ;;  %v2030_v40 = vshll.u32 %v3973_v25, 16  ;;  %v1480_v46 = vshrl.u32 %v1379_v31, 16  ;;  %v1483_v47 = vshll.u32 %v1379_v31, 16  ;;  %v2200_v23 = vrot.slane %v3901_v48, 5 }
 0x13f   : > { %1761 = vmatmul.bf16.gmra.mxu2 %v1693_v29  ;;  %v1688_v29 = vunpack.c.l.b16 %v1654_v10  ;;  %v2035_v58 = vshrl.u32 %v1934_v51, 16  ;;  %v2038_v59 = vshll.u32 %v1934_v51, 16  ;;  %v1449_v10 = vrot.slane %v1447_v11, 5 }
 0x140   : > { %1582 = vmatmul.bf16.vlgmr.msrb.gmra.mxu1 %v1518_v33  ;;  %v2018_v33 = vrot.slane %v2016_v9, 5  ;;  %v1464_v35 = vsel %vm3789_vm12, %v1459_v15, %v1463_v5  ;;  %v1666_v36 = vsel %vm3770_vm11, %v2889_v7, %v1665_v16  ;;  %v2032_v43 = vrot.slane %v2030_v40, 5 }
 0x141   : > { %v1694_v45 = vpack.c.b16 %v1689_v32, %v1688_v29  ;;  %v2037_v20 = vrot.slane %v2035_v58, 4  ;;  %v2040_v21 = vrot.slane %v2038_v59, 5  ;;  %v1662_v29 = vsel %vm3770_vm11, %v2888_v2, %v1661_v6  ;;  %v1377_v32 = vld [vmem:[#allocation2 + $0x38] sm:$0xf]  ;;  %v3151_v2 = vld [vmem:[#allocation2 + $0x44] sm:$0xf0] }
 0x142   : > { %v2019_v49 = vsel %vm3789_vm12, %v2014_v37, %v2018_v33  ;;  %v1450_v34 = vsel %vm3789_vm12, %v1445_v14, %v1449_v10  ;;  %v3975_v37 = vld [vmem:[#allocation2 + $0x4c] sm:$0x1]  ;;  %v1466_v44 = vshrl.u32 %v1377_v32, 16  ;;  %v1515_v11 = vunpack.c.l.b16 %v1464_v35  ;;  %v2936_v10 = vld [vmem:[#allocation2 + $0x40] sm:$0xf] }
 0x143   : > { %v2070_v13 = vunpack.c.l.b16 %v2019_v49  ;;  %v2041_v41 = vor.u32 %v2040_v21, %v2037_v20  ;;  %v2044_v42 = vshll.u32 %v3975_v37, 16  ;;  %v1690_v51 = vunpack.c.l.b16 %v1662_v29  ;;  %v2169_v20 = vld [vmem:[#allocation2 + $0x28] sm:$0xe] }
 0x144   : > { %v1691_v24 = vunpack.c.l.b16 %v1666_v36  ;;  %v1468_v53 = vrot.slane %v1466_v44, 4  ;;  %v1482_v55 = vrot.slane %v1480_v46, 4  ;;  %v1485_v27 = vrot.slane %v1483_v47, 5  ;;  %v2170_v44 = vld [vmem:[#allocation2 + $0x30] sm:$0xe] }
 0x145   : > { %v2075_v33 = vpack.c.b16 %v2070_v13, %v2069_v0  ;;  %v2042_v49 = vrot.slane %v2041_v41, 4  ;;  %v2046_v1 = vrot.slane %v2044_v42, 5  ;;  %v1489_v0 = vshll.u32 %v3959_v50, 16 }
 0x146   : > { %1896 = vmatmul.bf16.gmra.mxu3 %v2929_v62  ;;  %2142 = vmatmul.bf16.gmra.mxu0 %v2074_v19  ;;  %v2240_v62 = vunpack.c.l.b16 %v2197_v22  ;;  %v2026_v19 = vrot.slane %v2024_v57, 5  ;;  %v1695_v57 = vpack.c.b16 %v1691_v24, %v1690_v51  ;;  %v2937_v13 = vor.u32 %v3151_v2, %v2936_v10 }
 0x147   : > { %v2047_v58 = vsel %vm3789_vm12, %v2042_v49, %v2046_v1  ;;  %v1491_v12 = vrot.slane %v1489_v0, 5  ;;  %v3006_v47 = vrot.slane %v2170_v44, 9  ;;  %v2212_v51 = vrot.slane %v3937_v4, 5  ;;  %v2173_v4 = vld [vmem:[#allocation2 + $0x48] sm:$0xe] }
 0x148   : > { %v3962_v9 = vpack.c.b16 %v2240_v62, %v2239_v60  ;;  %v2027_v38 = vor.u32 %v2026_v19, %v2023_v17  ;;  %v1475_v60 = vshll.u32 %v3955_v18, 16  ;;  %v1486_v62 = vor.u32 %v1485_v27, %v1482_v55  ;;  %v2168_v19 = vld [vmem:[#allocation2 + $0x20] sm:$0xe] }
 0x149   : > { %v2072_v5 = vunpack.c.l.b16 %v2047_v58  ;;  %v3004_v29 = vrot.slane %v2168_v19, 9  ;;  %v2172_v58 = vld [vmem:[#allocation2 + $0x40] sm:$0xe]  ;;  %v2216_v0 = vrot.slane %v3973_v25, 5  ;;  %v3009_v10 = vrot.slane %v2173_v4, 9 }
 0x14a   : > { %v2028_v52 = vrot.slane %v2027_v38, 4  ;;  %v1477_v7 = vrot.slane %v1475_v60, 5  ;;  %v1487_v8 = vrot.slane %v1486_v62, 4  ;;  %v3008_v62 = vrot.slane %v2172_v58, 9 }
 0x14b   : > { %v2201_v26 = vsel %vm3770_vm11, %v3004_v29, %v2200_v23  ;;  %v2220_v2 = vrot.slane %v3975_v37, 5 }
 0x14c   : > { %v2033_v22 = vsel %vm3789_vm12, %v2028_v52, %v2032_v43  ;;  %v1492_v50 = vsel %vm3789_vm12, %v1487_v8, %v1491_v12  ;;  %v2241_v36 = vunpack.c.l.b16 %v2201_v26 }
 0x14d   : > { %v2071_v30 = vunpack.c.l.b16 %v2033_v22  ;;  %v1517_v16 = vunpack.c.l.b16 %v1492_v50 }
 0x14f   : > { %1766 = vmatmul.bf16.gmra.mxu2 %v1694_v45  ;;  %v1469_v45 = vshll.u32 %v1377_v32, 16  ;;  %v2076_v14 = vpack.c.b16 %v2072_v5, %v2071_v30  ;;  %v3005_v32 = vrot.slane %v2169_v20, 9 }
 0x150   : > { %1587 = vmatmul.bf16.gmra.mxu1 %v1519_v39  ;;  %v1514_v39 = vunpack.c.l.b16 %v1450_v34 }
 0x151   : > { %v1471_v54 = vrot.slane %v1469_v45, 5  ;;  %v2171_v45 = vld [vmem:[#allocation2 + $0x38] sm:$0xe] }
 0x152   : > { %v1520_v56 = vpack.c.b16 %v1515_v11, %v1514_v39  ;;  %v2208_v39 = vrot.slane %v3931_v61, 5  ;;  %v3007_v11 = vrot.slane %v2171_v45, 9 }
 0x153   : > { %v1472_v59 = vor.u32 %v1471_v54, %v1468_v53 }
 0x154   : > { %v2209_v43 = vsel %vm3770_vm11, %v3006_v47, %v2208_v39  ;;  %v2213_v49 = vsel %vm3770_vm11, %v3007_v11, %v2212_v51 }
 0x155   : > { %v1473_v6 = vrot.slane %v1472_v59, 4  ;;  %v2243_v53 = vunpack.c.l.b16 %v2209_v43  ;;  %v2244_v54 = vunpack.c.l.b16 %v2213_v49 }
 0x156   : > { %1901 = vmatmul.bf16.gmra.mxu3 %v2933_v28  ;;  %2147 = vmatmul.bf16.gmra.mxu0 %v2075_v33  ;;  %v2204_v28 = vrot.slane %v3911_v63, 5 }
 0x157   : > { %v1478_v18 = vsel %vm3789_vm12, %v1473_v6, %v1477_v7  ;;  %v2249_v22 = vpack.c.b16 %v2244_v54, %v2243_v53  ;;  %v2217_v6 = vsel %vm3770_vm11, %v3008_v62, %v2216_v0  ;;  %v2221_v7 = vsel %vm3770_vm11, %v3009_v10, %v2220_v2  ;;  %v3179_v0 = vld [vmem:[#allocation9 + $0x18] sm:$0xff] }
 0x158   : > { %v1516_v15 = vunpack.c.l.b16 %v1478_v18  ;;  %v2205_v33 = vsel %vm3770_vm11, %v3005_v32, %v2204_v28  ;;  %v2246_v18 = vunpack.c.l.b16 %v2221_v7 }
 0x159   : > { %v2242_v38 = vunpack.c.l.b16 %v2205_v33 }
 0x15a   : > { %v1521_v17 = vpack.c.b16 %v1517_v16, %v1516_v15 }
 0x15b   : > { %v2248_v42 = vpack.c.b16 %v2242_v38, %v2241_v36 }
 0x15f   : > { %1771 = vmatmul.bf16.gmra.mxu2 %v1695_v57 }
 0x160   : > { %1592 = vmatmul.bf16.gmra.mxu1 %v1520_v56 }
 0x166   : > { %1906 = vmatmul.bf16.gmra.mxu3 %v2937_v13  ;;  %2152 = vmatmul.bf16.gmra.mxu0 %v2076_v14  ;;  %v2245_v14 = vunpack.c.l.b16 %v2217_v6 }
 0x168   : > { %v2250_v19 = vpack.c.b16 %v2246_v18, %v2245_v14 }
 0x170   : > { %1597 = vmatmul.bf16.gmra.mxu1 %v1521_v17 }
 0x171   : > { %v1034_v21 = vpop.f32.mrf.mxu2 }
 0x173   : > { %v1337_v31 = vpop.f32.mrf.mxu0 }
 0x176   : > { %2311 = vmatmul.bf16.vlgmr.msrb.gmra.mxu0 %v3962_v9 }
 0x179   : > { %v1203_v34 = vpop.f32.mrf.mxu3  ;;  %v1036_v35 = vpop.f32.mrf.mxu2 }
 0x17b   : > { %v1339_v40 = vpop.f32.mrf.mxu0 }
 0x17d   : > { %v933_v41 = vpop.f32.mrf.mxu1 }
 0x17e   : > { %v1035_v48 = vadd.f32 %v1034_v21, %v933_v41  ;;  %v3183_v41 = vld [vmem:[#allocation9 + $0x38] sm:$0xff] }
 0x17f   : > { %2432 = vmatpush.bf16.msra.mxu2 %v3183_v41  ;;  %3220 = vmatpush.bf16.msrb.mxu3 %v3183_v41  ;;  %v3311_v41 = vld [vmem:[%s4092_s5] ss:$0 sm:$0xff] }
 0x180   : > { %v1223_v63 = vadd.f32 %v1203_v34, %v1035_v48  ;;  %2316 = vmatmul.bf16.vlgmr.msra.gmra.mxu1 %v2248_v42 }
 0x181   : > { %v1205_v46 = vpop.f32.mrf.mxu3 }
 0x182   : > { %v1039_v9 = vpop.f32.mrf.mxu2  ;;  %v1357_v8 = vadd.f32 %v1337_v31, %v1223_v63 }
 0x183   : > { %v1342_v24 = vpop.f32.mrf.mxu0 }
 0x185   : > { %v935_v52 = vpop.f32.mrf.mxu1 }
 0x186   : > { %v1037_v13 = vadd.f32 %v1036_v35, %v935_v52 }
 0x188   : > { %v1224_v25 = vadd.f32 %v1205_v46, %v1037_v13  ;;  %v3182_v46 = vld [vmem:[#allocation9 + $0x30] sm:$0xff] }
 0x189   : > { %v1208_v1 = vpop.f32.mrf.mxu3  ;;  %2433 = vmatpush.bf16.msra.mxu2 %v3182_v46  ;;  %3221 = vmatpush.bf16.msrb.mxu3 %v3182_v46 }
 0x18a   : > { %v1041_v55 = vpop.f32.mrf.mxu2  ;;  %v4008_v21 = vadd.f32 %v1339_v40, %v1224_v25 }
 0x18b   : > { %v1344_v27 = vpop.f32.mrf.mxu0 }
 0x18d   : > { %v938_v56 = vpop.f32.mrf.mxu1 }
 0x18e   : > { %v1040_v57 = vadd.f32 %v1039_v9, %v938_v56 }
 0x190   : > { %v1225_v61 = vadd.f32 %v1208_v1, %v1040_v57  ;;  %2321 = vmatmul.bf16.gmra.mxu1 %v2249_v22 }
 0x191   : > { %v1210_v59 = vpop.f32.mrf.mxu3 }
 0x192   : > { %v1044_v60 = vpop.f32.mrf.mxu2  ;;  %v1359_v31 = vadd.f32 %v1342_v24, %v1225_v61  ;;  %v3181_v24 = vld [vmem:[#allocation9 + $0x28] sm:$0xff] }
 0x193   : > { %v1347_v30 = vpop.f32.mrf.mxu0  ;;  %2434 = vmatpush.bf16.msra.mxu2 %v3181_v24  ;;  %3222 = vmatpush.bf16.msrb.mxu3 %v3181_v24 }
 0x195   : > { %v940_v5 = vpop.f32.mrf.mxu1 }
 0x196   : > { %v1042_v32 = vadd.f32 %v1041_v55, %v940_v5  ;;  %v3180_v55 = vld [vmem:[#allocation9 + $0x20] sm:$0xff] }
 0x197   : > { %2435 = vmatpush.bf16.msra.mxu2 %v3180_v55  ;;  %3223 = vmatpush.bf16.msrb.mxu3 %v3180_v55 }
 0x198   : > { %v1226_v34 = vadd.f32 %v1210_v59, %v1042_v32 }
 0x199   : > { %v1213_v12 = vpop.f32.mrf.mxu3 }
 0x19a   : > { %v1046_v50 = vpop.f32.mrf.mxu2  ;;  %v4010_v48 = vadd.f32 %v1344_v27, %v1226_v34 }
 0x19b   : > { %v1349_v15 = vpop.f32.mrf.mxu0  ;;  %2436 = vmatpush.bf16.msra.mxu2 %v3179_v0  ;;  %3224 = vmatpush.bf16.msrb.mxu3 %v3179_v0 }
 0x19d   : > { %v943_v16 = vpop.f32.mrf.mxu1 }
 0x19e   : > { %v1045_v17 = vadd.f32 %v1044_v60, %v943_v16 }
 0x1a0   : > { %v1227_v37 = vadd.f32 %v1213_v12, %v1045_v17  ;;  %2326 = vmatmul.bf16.gmra.mxu1 %v2250_v19  ;;  %v3178_v12 = vld [vmem:[#allocation9 + $0x10] sm:$0xff]  ;;  %v3177_v17 = vld [vmem:[#allocation9 + $0x8] sm:$0xff] }
 0x1a1   : > { %v1215_v20 = vpop.f32.mrf.mxu3  ;;  %2437 = vmatpush.bf16.msra.mxu2 %v3178_v12  ;;  %3225 = vmatpush.bf16.msrb.mxu3 %v3178_v12 }
 0x1a2   : > { %v1049_v3 = vpop.f32.mrf.mxu2  ;;  %v1361_v9 = vadd.f32 %v1347_v30, %v1227_v37 }
 0x1a3   : > { %v1352_v23 = vpop.f32.mrf.mxu0 }
 0x1a5   : > { %v945_v28 = vpop.f32.mrf.mxu1  ;;  %2438 = vmatpush.bf16.msra.mxu2 %v3177_v17  ;;  %3226 = vmatpush.bf16.msrb.mxu3 %v3177_v17 }
 0x1a6   : > { %v1047_v45 = vadd.f32 %v1046_v50, %v945_v28  ;;  %v3176_v28 = vld [vmem:[#allocation9] sm:$0xff] }
 0x1a8   : > { %v1228_v51 = vadd.f32 %v1215_v20, %v1047_v45 }
 0x1a9   : > { %v1218_v29 = vpop.f32.mrf.mxu3  ;;  %2439 = vmatpush.bf16.msra.mxu2 %v3176_v28  ;;  %3227 = vmatpush.bf16.msrb.mxu3 %v3176_v28 }
 0x1aa   : > { %v1051_v36 = vpop.f32.mrf.mxu2  ;;  %v4014_v52 = vadd.f32 %v1349_v15, %v1228_v51 }
 0x1ab   : > { %v1354_v26 = vpop.f32.mrf.mxu0 }
 0x1ad   : > { %v948_v33 = vpop.f32.mrf.mxu1 }
 0x1ae   : > { %v1050_v35 = vadd.f32 %v1049_v3, %v948_v33 }
 0x1b0   : > { %v1229_v38 = vadd.f32 %v1218_v29, %v1050_v35 }
 0x1b1   : > { %v1220_v42 = vpop.f32.mrf.mxu3 }
 0x1b2   : > { %v1757_v44 = vpop.f32.mrf.mxu2  ;;  %v4016_v27 = vadd.f32 %v1352_v23, %v1229_v38 }
 0x1b3   : > { %v2138_v63 = vpop.f32.mrf.mxu0 }
 0x1b5   : > { %v950_v40 = vpop.f32.mrf.mxu1 }
 0x1b6   : > { %v1052_v54 = vadd.f32 %v1051_v36, %v950_v40 }
 0x1b8   : > { %v1230_v61 = vadd.f32 %v1220_v42, %v1052_v54 }
 0x1b9   : > { %v1892_v11 = vpop.f32.mrf.mxu3 }
 0x1ba   : > { %v1759_v43 = vpop.f32.mrf.mxu2  ;;  %v4020_v10 = vadd.f32 %v1354_v26, %v1230_v61 }
 0x1bb   : > { %v4012_v47 = vpop.f32.mrf.mxu0 }
 0x1bd   : > { %v1583_v39 = vpop.f32.mrf.mxu1 }
 0x1be   : > { %v1603_v58 = vadd.f32 %v1583_v39, %v1357_v8 }
 0x1c0   : > { %v1777_v60 = vadd.f32 %v1757_v44, %v1603_v58 }
 0x1c1   : > { %v1894_v53 = vpop.f32.mrf.mxu3 }
 0x1c2   : > { %v1762_v57 = vpop.f32.mrf.mxu2  ;;  %v1912_v5 = vadd.f32 %v1892_v11, %v1777_v60 }
 0x1c3   : > { %v2143_v49 = vpop.f32.mrf.mxu0 }
 0x1c4   : > { %v2158_v13 = vadd.f32 %v2138_v63, %v1912_v5 }
 0x1c5   : > { %v1585_v1 = vpop.f32.mrf.mxu1 }
 0x1c9   : > { %v1897_v59 = vpop.f32.mrf.mxu3 }
 0x1ca   : > { %v1764_v7 = vpop.f32.mrf.mxu2 }
 0x1cb   : > { %v4018_v56 = vpop.f32.mrf.mxu0 }
 0x1cd   : > { %v1588_v22 = vpop.f32.mrf.mxu1 }
 0x1ce   : > { %v1605_v4 = vadd.f32 %v1588_v22, %v1359_v31  ;;  %v1604_v31 = vadd.f32 %v1585_v1, %v4008_v21 }
 0x1d0   : > { %v1779_v62 = vadd.f32 %v1762_v57, %v1605_v4  ;;  %v1778_v26 = vadd.f32 %v1759_v43, %v1604_v31 }
 0x1d1   : > { %v1899_v18 = vpop.f32.mrf.mxu3 }
 0x1d2   : > { %v1914_v6 = vadd.f32 %v1897_v59, %v1779_v62  ;;  %v1767_v16 = vpop.f32.mrf.mxu2  ;;  %v1913_v35 = vadd.f32 %v1894_v53, %v1778_v26 }
 0x1d3   : > { %v2148_v2 = vpop.f32.mrf.mxu0 }
 0x1d4   : > { %v2160_v14 = vadd.f32 %v2143_v49, %v1914_v6  ;;  %v2159_v42 = vadd.f32 %v4012_v47, %v1913_v35 }
 0x1d5   : > { %v1590_v30 = vpop.f32.mrf.mxu1 }
 0x1d6   : > { %v1606_v36 = vadd.f32 %v1590_v30, %v4010_v48 }
 0x1d8   : > { %v1780_v63 = vadd.f32 %v1764_v7, %v1606_v36 }
 0x1d9   : > { %v1902_v37 = vpop.f32.mrf.mxu3 }
 0x1da   : > { %v1915_v21 = vadd.f32 %v1899_v18, %v1780_v63  ;;  %v1769_v53 = vpop.f32.mrf.mxu2 }
 0x1db   : > { %v2150_v50 = vpop.f32.mrf.mxu0 }
 0x1dc   : > { %v2161_v48 = vadd.f32 %v4018_v56, %v1915_v21 }
 0x1dd   : > { %v1593_v8 = vpop.f32.mrf.mxu1 }
 0x1de   : > { %v1607_v15 = vadd.f32 %v1593_v8, %v1361_v9 }
 0x1e0   : > { %v1781_v25 = vadd.f32 %v1767_v16, %v1607_v15 }
 0x1e1   : > { %v1904_v22 = vpop.f32.mrf.mxu3 }
 0x1e2   : > { %v1916_v23 = vadd.f32 %v1902_v37, %v1781_v25  ;;  %v1772_v60 = vpop.f32.mrf.mxu2 }
 0x1e3   : > { %v4022_v19 = vpop.f32.mrf.mxu0 }
 0x1e4   : > { %v2162_v3 = vadd.f32 %v2148_v2, %v1916_v23 }
 0x1e5   : > { %v1595_v20 = vpop.f32.mrf.mxu1 }
 0x1e6   : > { %v1608_v47 = vadd.f32 %v1595_v20, %v4014_v52 }
 0x1e8   : > { %v1782_v61 = vadd.f32 %v1769_v53, %v1608_v47 }
 0x1e9   : > { %v1907_v2 = vpop.f32.mrf.mxu3 }
 0x1ea   : > { %v1917_v59 = vadd.f32 %v1904_v22, %v1782_v61  ;;  %v1774_v18 = vpop.f32.mrf.mxu2  ;;  %v3203_v22 = vld [vmem:[%s3682_s23 + $0x18] sm:$0xff]  }
 0x1eb   : > { %v2155_v29 = vpop.f32.mrf.mxu0 }
 0x1ec   : > { %v2163_v56 = vadd.f32 %v2150_v50, %v1917_v59 }
 0x1ed   : > { %v1598_v32 = vpop.f32.mrf.mxu1 }
 0x1ee   : > { %v1609_v0 = vadd.f32 %v1598_v32, %v4016_v27 }
 0x1f0   : > { %v1783_v7 = vadd.f32 %v1772_v60, %v1609_v0 }
 0x1f1   : > { %v1909_v17 = vpop.f32.mrf.mxu3 }
 0x1f2   : > { %v1918_v8 = vadd.f32 %v1907_v2, %v1783_v7 }
 0x1f3   : > { %v2312_v33 = vpop.f32.mrf.mxu0 }
 0x1f4   : > { %v2332_v38 = vadd.f32 %v2312_v33, %v2158_v13  ;;  %v2164_v50 = vadd.f32 %v4022_v19, %v1918_v8  ;;  %v3186_v33 = vld [vmem:[%s3682_s23] sm:$0xff]  }
 0x1f5   : > { %v1600_v34 = vpop.f32.mrf.mxu1  ;;  %v3187_v35 = vunpack.c.l.bf16 %v3186_v33 }
 0x1f6   : > { %v2344_v44 = vadd.f32 %v3311_v41, %v2332_v38  ;;  %v1610_v52 = vadd.f32 %v1600_v34, %v4020_v10  ;;  %v3312_v34 = vld [vmem:[%s4093_s6] ss:$0 sm:$0xff] }
 0x1f8   : > { %v2352_v39 = vmax.f32 %v2344_v44, 0.0  ;;  %v1784_v15 = vadd.f32 %v1774_v18, %v1610_v52  ;;  %v3201_v44 = vld [vmem:[%s3682_s23 + $0x8] sm:$0xff]  }
 0x1fa   : > { %v1919_v27 = vadd.f32 %v1909_v17, %v1784_v15 }
 0x1fb   : > { %v2314_v40 = vpop.f32.mrf.mxu0 }
 0x1fc   : > { %v2333_v46 = vadd.f32 %v2314_v40, %v2159_v42  ;;  %v2165_v20 = vadd.f32 %v2155_v29, %v1919_v27 }
 0x1fd   : > { %v2317_v45 = vpop.f32.mrf.mxu1 }
 0x1fe   : > { %v2345_v9 = vadd.f32 %v3311_v41, %v2333_v46  ;;  %v2334_v51 = vadd.f32 %v2317_v45, %v2160_v14  ;;  %v3191_v46 = vunpack.c.l.bf16 %v3201_v44 }
 0x200   : > { %v2353_v11 = vmax.f32 %v2345_v9, 0.0  ;;  %v2346_v49 = vadd.f32 %v3311_v41, %v2334_v51  ;;  %v3192_v51 = vunpack.c.h.bf16 %v3201_v44 }
 0x202   : > { %v2360_v24 = vpack.c.bf16 %v2353_v11, %v2352_v39  ;;  %v2354_v55 = vmax.f32 %v2346_v49, 0.0  ;;  %v3202_v49 = vld [vmem:[%s3682_s23 + $0x10] sm:$0xff]   ;;  %s2516_s23 = sshll.u32 %s2513_s20, 4  ;;  %s2517_s23 = int_to_ptr.hbm [resolvable:$true] %s2516_s23 }
 0x203   : > { %v3195_v53 = vunpack.c.l.bf16 %v3202_v49  ;;  %v3196_v61 = vunpack.c.h.bf16 %v3202_v49  ;;  %s3447_s28 = sshra.s32 %s2517_s23, 4  ;;  %s3448_s28 = int_to_ptr.hbm [resolvable:$true] %s3447_s28 }
 0x204   : > { %2440 = vmatmul.bf16.vlgmr.msra.gmra.mxu2 %v2360_v24  ;;  %s3449_s12 = scalar_lea.hbm %s3448_s28, 64  ;;  %p3454_p11 = scmp.lt.s32.totalorder %s3448_s28, %s4094_s7 }
 0x205   : > { %v2319_v43 = vpop.f32.mrf.mxu1  ;;  %p3450_p1 = scmp.ne.s32.totalorder %s3448_s28, %s3449_s12  ;;  %p3455_p9 = scmp.lt.s32.totalorder %s3453_s14, %s3449_s12 }
 0x206   : > { %v2335_v1 = vadd.f32 %v2319_v43, %v2161_v48 }
 0x207   : > { %p3451_p4 = pnand %p3450_p1, %p3648_p3  ;;  %p3456_p2 = por %p3455_p9, %p3454_p11 }
 0x208   : > { %v2347_v54 = vadd.f32 %v3311_v41, %v2335_v1 }
 0x209   : > { %p3452_p8 = pneg %p3451_p4 }
 0x20a   : > { %v2355_v57 = vmax.f32 %v2347_v54, 0.0 }
 0x20b   : > { %p3457_p10 = pnand %p3456_p2, %p3452_p8 }
 0x20c   : > { %v2361_v58 = vpack.c.bf16 %v2355_v57, %v2354_v55 }
 0x20d   : > { %v2322_v4 = vpop.f32.mrf.mxu1 }
 0x20e   : > { %v2336_v62 = vadd.f32 %v2322_v4, %v2162_v3 }
 0x210   : > { %v2348_v5 = vadd.f32 %v3311_v41, %v2336_v62 }
 0x212   : > { %v2356_v13 = vmax.f32 %v2348_v5, 0.0  ;;  %v3200_v5 = vunpack.c.h.bf16 %v3203_v22 }
 0x214   : > { %2445 = vmatmul.bf16.gmra.mxu2 %v2361_v58  ;;  %v3199_v58 = vunpack.c.l.bf16 %v3203_v22 }
 0x215   : > { %v2324_v30 = vpop.f32.mrf.mxu1 }
 0x216   : > { %v2337_v6 = vadd.f32 %v2324_v30, %v2163_v56 }
 0x218   : > { %v2349_v12 = vadd.f32 %v3311_v41, %v2337_v6 }
 0x21a   : > { %v2357_v14 = vmax.f32 %v2349_v12, 0.0 }
 0x21c   : > { %v2362_v16 = vpack.c.bf16 %v2357_v14, %v2356_v13 }
 0x21d   : > { %v2327_v25 = vpop.f32.mrf.mxu1 }
 0x21e   : > { %v2338_v37 = vadd.f32 %v2327_v25, %v2164_v50 }
 0x220   : > { %v2350_v28 = vadd.f32 %v3311_v41, %v2338_v37 }
 0x222   : > { %v2358_v32 = vmax.f32 %v2350_v28, 0.0 }
 0x224   : > { %2450 = vmatmul.bf16.gmra.mxu2 %v2362_v16 }
 0x225   : > { %v2329_v23 = vpop.f32.mrf.mxu1 }
 0x226   : > { %v2339_v10 = vadd.f32 %v2329_v23, %v2165_v20 }
 0x228   : > { %v2351_v3 = vadd.f32 %v3311_v41, %v2339_v10  ;;  %v3188_v41 = vunpack.c.h.bf16 %v3186_v33 }
 0x22a   : > { %v2359_v31 = vmax.f32 %v2351_v3, 0.0 }
 0x22c   : > { %v2363_v26 = vpack.c.bf16 %v2359_v31, %v2358_v32 }
 0x22e   : > { %2455 = vmatmul.bf16.vlgmr.msrb.gmra.mxu3 %v2363_v26 }
 0x287   : > { %v2441_v19 = vpop.f32.mrf.mxu2 }
 0x288   : > { %v2442_v36 = vadd.f32 %v3312_v34, %v2441_v19 }
 0x28a   : > { %v2477_v29 = vadd.f32 %v3187_v35, %v2442_v36 }
 0x28c   : > { %v2485_v38 = vmax.f32 %v2477_v29, 0.0 }
 0x28e   : > { %2493 = vst [vmem:[%s4040_s29] sm:$0xff] %v2485_v38 }
 0x28f   : > { %v2443_v42 = vpop.f32.mrf.mxu2 }
 0x290   : > { %v2444_v63 = vadd.f32 %v3312_v34, %v2443_v42 }
 0x292   : > { %v2478_v40 = vadd.f32 %v3188_v41, %v2444_v63 }
 0x294   : > { %v2486_v45 = vmax.f32 %v2478_v40, 0.0 }
 0x296   : > { %2494 = vst [vmem:[%s4040_s29 + $0x8] sm:$0xff] %v2486_v45 }
 0x297   : > { %v2446_v9 = vpop.f32.mrf.mxu2 }
 0x298   : > { %v2447_v21 = vadd.f32 %v3312_v34, %v2446_v9 }
 0x29a   : > { %v2479_v39 = vadd.f32 %v3191_v46, %v2447_v21 }
 0x29c   : > { %v2487_v11 = vmax.f32 %v2479_v39, 0.0 }
 0x29e   : > { %2495 = vst [vmem:[%s4040_s29 + $0x10] sm:$0xff] %v2487_v11 }
 0x29f   : > { %v2448_v24 = vpop.f32.mrf.mxu2 }
 0x2a0   : > { %v2449_v48 = vadd.f32 %v3312_v34, %v2448_v24 }
 0x2a2   : > { %v2480_v43 = vadd.f32 %v3192_v51, %v2449_v48 }
 0x2a4   : > { %v2488_v1 = vmax.f32 %v2480_v43, 0.0 }
 0x2a6   : > { %2496 = vst [vmem:[%s4040_s29 + $0x18] sm:$0xff] %v2488_v1 }
 0x2a7   : > { %v2451_v47 = vpop.f32.mrf.mxu2 }
 0x2a8   : > { %v2452_v54 = vadd.f32 %v3312_v34, %v2451_v47 }
 0x2aa   : > { %v2481_v55 = vadd.f32 %v3195_v53, %v2452_v54 }
 0x2ac   : > { %v2489_v57 = vmax.f32 %v2481_v55, 0.0 }
 0x2ae   : > { %2497 = vst [vmem:[%s4040_s29 + $0x20] sm:$0xff] %v2489_v57 }
 0x2af   : > { %v2453_v4 = vpop.f32.mrf.mxu2 }
 0x2b0   : > { %v2454_v60 = vadd.f32 %v3312_v34, %v2453_v4 }
 0x2b1   : > { %v2456_v59 = vpop.f32.mrf.mxu3 }
 0x2b2   : > { %v2457_v62 = vadd.f32 %v3312_v34, %v2456_v59  ;;  %v2482_v0 = vadd.f32 %v3196_v61, %v2454_v60 }
 0x2b4   : > { %v2483_v56 = vadd.f32 %v3199_v58, %v2457_v62  ;;  %v2490_v2 = vmax.f32 %v2482_v0, 0.0 }
 0x2b6   : > { %v2491_v30 = vmax.f32 %v2483_v56, 0.0  ;;  %2498 = vst [vmem:[%s4040_s29 + $0x28] sm:$0xff] %v2490_v2 }
 0x2b8   : > { %2499 = vst [vmem:[%s4040_s29 + $0x30] sm:$0xff] %v2491_v30 }
 0x2b9   : > { %v2458_v6 = vpop.f32.mrf.mxu3 }
 0x2ba   : > { %v2459_v7 = vadd.f32 %v3312_v34, %v2458_v6 }
 0x2bc   : > { %v2484_v52 = vadd.f32 %v3200_v5, %v2459_v7 }
 0x2be   : > { %v2492_v12 = vmax.f32 %v2484_v52, 0.0 }
 0x2c0   : > { %2500 = vst [vmem:[%s4040_s29 + $0x38] sm:$0xff] %v2492_v12 }
 0x2c1   : > { %3460 = shalt.err (!%p3457_p10)
}
 0x2c2   : > { %s3515_s15 = smov 128   ;;  %s3516_s29 = smov 8  }
 0x2c3   : > { %3242 = dma.vmem_to_hbm [thread:$0]  (%p3648_p3), %s2515_s1, 1024, %s2517_s23, %s2502_s30, %s3515_s15, %s3515_s15, %s3516_s29  }
 0x2c4 PF: > { %s2531_s9 = sand.u32 1, %s3495_s24   ;;  %p4117_p12 = scmp.ge.s32.totalorder %s3507_s27, 2 }
 0x2c5   : > { %s2532_s21 = scalar_lea.sflag [#allocation5], %s2531_s9 }
 0x2c6   : > { %p3259_p13 = pnand %p4117_p12, %p3592_p6 }
 0x2c8   : > { %p3260_p0 = pneg %p3259_p13 }
 0x2ca   : > { %3490 = dma.done.wait (%p3260_p0), %s2532_s21, 1024  }
 0x2cb   : > { %3492 = vsyncadd (%p3260_p0), %s2532_s21, 4294966272  ;;  %p22_p5 = scmp.ge.s32.totalorder %s3630_s13, 4   ;;  %s4118_s24 = smov %s3499_s25 }
 0x2cc   : > { %s4119_s25 = smov %s3503_s26  ;;  %s4120_s26 = smov %s3644_s17 }
 0x2cd   : > { %s4121_s27 = smov %s3630_s13  ;;  %24 = sbr.rel (!%p22_p5) target bundleno = 9 (0x9), region = 116 }
 0x2d2   :  { %2538 = vsyncpa [#allocation4], 1 }
 0x2d3   :  { %2540 = vsyncpa [#allocation4 + $0x1], 1 }
 0x2d4   :  { %2541 = vsyncpa [#allocation7], 1 }
 0x2d5   :  { %2542 = vsyncpa [#allocation10], 1 }
 0x2d6   :  { %2543 = vsyncpa [#allocation5], 1 }
 0x2d7   :  { %2545 = vsyncpa [#allocation5 + $0x1], 1 }

// kernel: tpu_custom_call.1
= control target key start
LH: loop header
LB: loop body
LE: loop exit
PB: predicated region body
PF: predicated region fallthrough
CT: control target
= control target key end

     0   :  { %s4087_s0 = inlined_call_operand.hbm [shape: bf16[2,8,8,128], index: 0, kind: input, shape index: {}]   ;;  %s4088_s1 = inlined_call_operand.hbm [shape: bf16[128,128], index: 1, kind: input, shape index: {}]   ;;  %s4089_s2 = inlined_call_operand.hbm [shape: bf16[9,128,128], index: 2, kind: input, shape index: {}]   ;;  %s4090_s3 = inlined_call_operand.hbm [shape: bf16[128,128], index: 3, kind: input, shape index: {}]   ;;  %s4091_s4 = inlined_call_operand.vmem [shape: f32[1,128], index: 4, kind: input, shape index: {}]   ;;  %s4092_s5 = inlined_call_operand.vmem [shape: f32[1,128], index: 5, kind: input, shape index: {}]   ;;  %s4093_s6 = inlined_call_operand.vmem [shape: f32[1,128], index: 6, kind: input, shape index: {}]   ;;  %s4094_s7 = inlined_call_operand.hbm [shape: f32[2,8,8,128], index: 7, kind: output, shape index: {}]  }
   0x1   :  { %4097 = sst [smem:[#allocation16_spill]] %s4088_s1 }
   0x2   :  { %12 = vsyncpa [#allocation4], 0 }
   0x3   :  { %14 = vsyncpa [#allocation4 + $0x1], 0 }
   0x4   :  { %15 = vsyncpa [#allocation7], 0 }
   0x5   :  { %16 = vsyncpa [#allocation10], 0 }
   0x6   :  { %17 = vsyncpa [#allocation5], 0 }
   0x7   :  { %19 = vsyncpa [#allocation5 + $0x1], 0  ;;  %s3557_s24 = smov 0   ;;  %s3559_s25 = smov 0  }
   0x8   :  { %s3561_s26 = smov 0   ;;  %s3563_s27 = smov 0  }
   0x9 LB: > { %s3578_s28 = sadd.s32 4294967295, %s3507_s27   ;;  %s2619_s29 = sadd.s32 4294967294, %s3507_s27   ;;  %s3507_s27 = sphi %s3563_s27, %s4121_s27   ;;  %s3503_s26 = sphi %s3561_s26, %s4120_s26   ;;  %s3499_s25 = sphi %s3559_s25, %s4119_s25   ;;  %s3495_s24 = sphi %s3557_s24, %s4118_s24  }
   0xa   : > { %p45_p0 = scmp.ne.s32.totalorder %s3499_s25, %s3495_s24  ;;  %p46_p1 = scmp.eq.s32.totalorder %s3578_s28, 0 }
   0xb   : > { %p195_p2 = scmp.eq.s32.totalorder %s3578_s28, 1  ;;  %p201_p3 = scmp.eq.s32.totalorder %s2619_s29, 1 }
   0xc   : > { %p3587_p4 = por %p46_p1, %p45_p0  ;;  %p2620_p5 = scmp.ge.s32.totalorder %s3507_s27, 1 }
   0xd   : > { %p3592_p6 = por %p201_p3, %p45_p0  ;;  %p208_p7 = scmp.lt.s32.totalorder %s3507_s27, 3 }
   0xe   : > { %s4100_s1 = sld [smem:[#allocation16_spill]]  ;;  %s3509_s13 = smov [#allocation6]  }
   0xf   : > { %p3600_p8 = pnand %p2620_p5, %p208_p7  ;;  %s221_s14 = sshll.u32 %s3509_s13, 4  ;;  %s222_s14 = int_to_ptr.vmem [resolvable:$true] %s221_s14 }
  0x10   : > { %s233_s18 = sshll.u32 %s4089_s2, 4  ;;  %s4095_s19 = smov 64   ;;  %s234_s18 = int_to_ptr.hbm [resolvable:$true] %s233_s18 }
  0x11   : > { %p3244_p9 = pneg %p3600_p8  ;;  %s4096_s20 = smov 4  }
  0x12   : > { %s3512_s21 = smov [#allocation8]   ;;  %s247_s9 = sshll.u32 %s4090_s3, 4  ;;  %s248_s9 = int_to_ptr.hbm [resolvable:$true] %s247_s9 }
  0x13   : > { %p3608_p10 = pnand %p3244_p9, %p46_p1  ;;  %s235_s22 = sshll.u32 %s3512_s21, 4  ;;  %s236_s22 = int_to_ptr.vmem [resolvable:$true] %s235_s22 }
  0x14   : > { %s219_s11 = sshll.u32 %s4100_s1, 4  ;;  %s3513_s10 = smov [#allocation9]   ;;  %s220_s11 = int_to_ptr.hbm [resolvable:$true] %s219_s11 }
  0x15   : > { %3247 = dma.hbm_to_vmem [thread:$0]  (!%p3608_p10), %s220_s11, 1024, %s222_s14, [#allocation7], %s4095_s19, %s4095_s19, %s4096_s20  }
  0x16   : > { %3250 = dma.hbm_to_vmem [thread:$0]  (!%p3608_p10), %s234_s18, 9216, %s236_s22, [#allocation7], %s4095_s19, %s4095_s19, %s4096_s20  }
  0x17   : > { %s249_s11 = sshll.u32 %s3513_s10, 4  ;;  %s3630_s13 = sadd.s32 1, %s3507_s27   ;;  %s250_s11 = int_to_ptr.vmem [resolvable:$true] %s249_s11 }
  0x18   : > { %3253 = dma.hbm_to_vmem [thread:$0]  (!%p3608_p10), %s248_s9, 1024, %s250_s11, [#allocation10], %s4095_s19, %s4095_s19, %s4096_s20  }
  0x19   : > { %s29_s14 = ssub.s32 %s3507_s27, %s3630_s13  ;;  %s32_s16 = sadd.s32 1, %s3503_s26 }
  0x1a   : > { %p30_p12 = scmp.eq.s32.totalorder %s29_s14, 0  ;;  %p39_p13 = scmp.ne.s32.totalorder %s3503_s26, %s3499_s25 }
  0x1b   : > { %p40_p0 = scmp.eq.s32.totalorder %s3507_s27, 0  ;;  %p3265_p5 = scmp.lt.s32.totalorder %s3507_s27, 2 }
  0x1c   : > { %s3644_s17 = scalar_select %p30_p12, %s3503_s26, %s32_s16  }
  0x1d   : > { %p3648_p3 = por %p195_p2, %p39_p13  ;;  %s272_s21 = sand.u32 1, %s3503_s26  }
  0x1e   : > { %s3079_s15 = sshll.u32 %s3507_s27, 5  ;;  %p41_p7 = por %p40_p0, %p39_p13 }
  0x1f   : > { %s2625_s22 = sshll.u32 %s272_s21, 5  ;;  %s281_s9 = scalar_lea.hbm %s4087_s0, %s3079_s15 }
  0x20   : > { %s282_s10 = sshll.u32 %s281_s9, 4  ;;  %s276_s11 = scalar_lea.vmem [#allocation3], %s2625_s22  ;;  %s283_s10 = int_to_ptr.hbm [resolvable:$true] %s282_s10 }
  0x21   : > { %s284_s14 = sshll.u32 %s276_s11, 4  ;;  %p3658_p9 = pnand %p3265_p5, %p41_p7  ;;  %s285_s14 = int_to_ptr.vmem [resolvable:$true] %s284_s14 }
  0x22   : > { %s273_s19 = scalar_lea.sflag [#allocation4], %s272_s21  ;;  %s3403_s20 = sshra.s32 %s283_s10, 4  ;;  %s3404_s20 = int_to_ptr.hbm [resolvable:$true] %s3403_s20 }
  0x23   : > { %s3405_s1 = scalar_lea.hbm %s3404_s20, 32  ;;  %p3407_p10 = pneg %p3658_p9 }
  0x24   : > { %p3406_p2 = scmp.ne.s32.totalorder %s3404_s20, %s3405_s1  ;;  %s3410_s22 = scalar_lea.hbm %s4087_s0, 64 }
  0x25   : > { %p3411_p0 = scmp.lt.s32.totalorder %s3404_s20, %s4087_s0  ;;  %p3412_p5 = scmp.lt.s32.totalorder %s3410_s22, %s3405_s1 }
  0x26   : > { %p3408_p12 = pnand %p3407_p10, %p3406_p2 }
  0x27   : > { %p3413_p7 = por %p3412_p5, %p3411_p0 }
  0x28   : > { %p3409_p13 = pneg %p3408_p12 }
  0x2a   : > { %p3414_p11 = pnand %p3413_p7, %p3409_p13 }
  0x2c   : > { %3417 = shalt.err (!%p3414_p11)
}
  0x2d   : > { %s4105_s21 = smov 4   ;;  %s4106_s11 = smov 64  }
  0x2e   : > { %3257 = dma.hbm_to_vmem [thread:$0]  (!%p3658_p9), %s283_s10, 512, %s285_s14, %s273_s19, %s4106_s11, %s4106_s11, %s4105_s21  }
  0x2f   : > { %296 = sbr.rel (%p3600_p8) target bundleno = 708 (0x2c4), region = 48  ;;  %s3678_s15 = sand.u32 (!%p3600_p8), 1, %s3499_s25  }
  0x30   : > { %s2629_s20 = sshll.u32 (!%p3600_p8), %s3678_s15, 5  ;;  %s299_s1 = scalar_lea.sflag (!%p3600_p8), [#allocation4], %s3678_s15 }
  0x31   : > { %s3682_s23 = scalar_lea.vmem (!%p3600_p8), [#allocation3], %s2629_s20 }
  0x34   : > { %3478 = dma.done.wait (%p3587_p4), %s299_s1, 512  }
  0x35   : > { %3480 = vsyncadd (%p3587_p4), %s299_s1, 4294966784 }
  0x36   : > { %3482 = dma.done.wait (%p46_p1), [#allocation7], 10240  }
  0x37   : > { %3484 = vsyncadd (%p46_p1), [#allocation7], 4294957056 }
  0x38   : > { %3486 = dma.done.wait (%p46_p1), [#allocation10], 1024  }
  0x39   : > { %3488 = vsyncadd (%p46_p1), [#allocation10], 4294966272  ;;  %v3091_v0 = vld [vmem:[#allocation6 + $0x38] sm:$0xff]  ;;  %v3090_v1 = vld [vmem:[#allocation6 + $0x30] sm:$0xff]  ;;  %vm492_vm0 = vcmask 1040384   ;;  %v3514_v29 = vmov 0  }
  0x3a   : > { %450 = vmatpush.bf16.msra.mxu0 %v3091_v0  ;;  %3204 = vmatpush.bf16.msra.mxu3 %v3091_v0  ;;  %v3089_v2 = vld [vmem:[#allocation6 + $0x28] sm:$0xff]  ;;  %v3088_v3 = vld [vmem:[#allocation6 + $0x20] sm:$0xff]  ;;  %v3087_v4 = vld [vmem:[#allocation6 + $0x18] sm:$0xff]  ;;  %vm493_vm1 = vsmask.f32 256  ;;  %vm646_vm5 = vcmask 1043456  }
  0x3b   : > { %v3103_v5 = vld [vmem:[#allocation8 + $0x38] sm:$0xff]  ;;  %v3086_v6 = vld [vmem:[#allocation6 + $0x10] sm:$0xff]  ;;  %v3085_v8 = vld [vmem:[#allocation6 + $0x8] sm:$0xff]  ;;  %vm525_vm2 = vsmask.f32 7938  ;;  %vm1078_vm6 = vcmask 1042432  }
  0x3c   : > { %1025 = vmatpush.bf16.msra.mxu2 %v3103_v5  ;;  %v3102_v7 = vld [vmem:[#allocation8 + $0x30] sm:$0xff]  ;;  %v3084_v9 = vld [vmem:[#allocation6] sm:$0xff]  ;;  %v3119_v10 = vld [vmem:[#allocation8 + $0xb8] sm:$0xff]  ;;  %487 = vst [vmem:[#allocation2] sm:$0xf] %v3514_v29  ;;  %vm1079_vm7 = vcmask 1046532  }
  0x3d   : > { %v3080_v11 = vld [vmem:[%s3682_s23] sm:$0xff]  ;;  %v3082_v12 = vld [vmem:[%s3682_s23 + $0x10] sm:$0xff]  ;;  %v3081_v13 = vld [vmem:[%s3682_s23 + $0x8] sm:$0xff]  ;;  %488 = vst [vmem:[#allocation2 + $0x4] sm:$0x1] %v3514_v29  ;;  %s2633_s22 = sshll.u32 %s3678_s15, 6 }
  0x3e   : > { %451 = vmatpush.bf16.msra.mxu0 %v3090_v1  ;;  %3205 = vmatpush.bf16.msra.mxu3 %v3090_v1  ;;  %v3083_v14 = vld [vmem:[%s3682_s23 + $0x18] sm:$0xff]  ;;  %v3101_v15 = vld [vmem:[#allocation8 + $0x28] sm:$0xff]  ;;  %v3118_v17 = vld [vmem:[#allocation8 + $0xb0] sm:$0xff]  ;;  %491 = vst [vmem:[#allocation2 + $0x4c] sm:$0x1] %v3514_v29  ;;  %s4040_s29 = scalar_lea.vmem [#allocation11], %s2633_s22 }
  0x3f   : > { %v3131_v16 = vld [vmem:[#allocation8 + $0xf8] sm:$0xff]  ;;  %vm3700_vm3 = vmand %vm492_vm0, %vm493_vm1  ;;  %v3100_v24 = vld [vmem:[#allocation8 + $0x20] sm:$0xff]  ;;  %490 = vst [vmem:[#allocation2 + $0x48] sm:$0xf] %v3514_v29  ;;  %vm728_vm9 = vsmask.f32 3328 }
  0x40   : > { %1026 = vmatpush.bf16.msra.mxu2 %v3102_v7  ;;  %v498_v19 = vld [vmem:[#allocation2 + $0x8] sm:$0x1]  ;;  %v530_v20 = vld [vmem:[#allocation2 + $0xc] sm:$0x1]  ;;  %vm3707_vm4 = vmand %vm492_vm0, %vm525_vm2  ;;  %vm729_vm10 = vsmask.f32 7440 }
  0x41   : > { %v499_v21 = vsel %vm3700_vm3, 0, %v498_v19  ;;  %v3111_v23 = vld [vmem:[#allocation8 + $0x78] sm:$0xff]  ;;  %v531_v25 = vsel %vm3707_vm4, 0, %v530_v20  ;;  %v3130_v26 = vld [vmem:[#allocation8 + $0xf0] sm:$0xff]  ;;  %v3117_v27 = vld [vmem:[#allocation8 + $0xa8] sm:$0xff]  ;;  %s3184_s9 = sshll.u32 %s3578_s28, 6 }
  0x42   : > { %452 = vmatpush.bf16.msra.mxu0 %v3089_v2  ;;  %3206 = vmatpush.bf16.msra.mxu3 %v3089_v2  ;;  %500 = vst [vmem:[#allocation2 + $0x8] sm:$0x1] %v499_v21  ;;  %v3110_v28 = vld [vmem:[#allocation8 + $0x70] sm:$0xff]  ;;  %v3099_v30 = vld [vmem:[#allocation8 + $0x18] sm:$0xff]  ;;  %v3129_v31 = vld [vmem:[#allocation8 + $0xe8] sm:$0xff]  ;;  %s2513_s20 = scalar_lea.hbm %s4094_s7, %s3184_s9  ;;  %s2514_s1 = sshll.u32 %s4040_s29, 4  ;;  %s2515_s1 = int_to_ptr.vmem [resolvable:$true] %s2514_s1 }
  0x43   : > { %532 = vst [vmem:[#allocation2 + $0xc] sm:$0x1] %v531_v25  ;;  %924 = vmatpush.bf16.msra.mxu1 %v3111_v23  ;;  %v3116_v32 = vld [vmem:[#allocation8 + $0xa0] sm:$0xff]  ;;  %v3109_v33 = vld [vmem:[#allocation8 + $0x68] sm:$0xff]  ;;  %v3098_v37 = vld [vmem:[#allocation8 + $0x10] sm:$0xff]  ;;  %s2502_s30 = scalar_lea.sflag [#allocation5], %s3678_s15 }
  0x44   : > { %1027 = vmatpush.bf16.msra.mxu2 %v3101_v15  ;;  %v501_v34 = vld [vmem:[#allocation2 + $0x10] sm:$0x1]  ;;  %v533_v36 = vld [vmem:[#allocation2 + $0x14] sm:$0x1]  ;;  %v3115_v40 = vld [vmem:[#allocation8 + $0x98] sm:$0xff]  ;;  %s3453_s14 = scalar_lea.hbm %s4094_s7, 128 }
  0x45   : > { %v502_v35 = vsel %vm3700_vm3, 0, %v501_v34  ;;  %v534_v38 = vsel %vm3707_vm4, 0, %v533_v36  ;;  %v3128_v39 = vld [vmem:[#allocation8 + $0xe0] sm:$0xff]  ;;  %v495_v41 = vld [vmem:[#allocation2] sm:$0x1]  ;;  %v3097_v46 = vld [vmem:[#allocation8 + $0x8] sm:$0xff] }
  0x46   : > { %453 = vmatpush.bf16.msra.mxu0 %v3088_v3  ;;  %3207 = vmatpush.bf16.msra.mxu3 %v3088_v3  ;;  %503 = vst [vmem:[#allocation2 + $0x10] sm:$0x1] %v502_v35  ;;  %v527_v42 = vld [vmem:[#allocation2 + $0x4] sm:$0x1]  ;;  %v3108_v43 = vld [vmem:[#allocation8 + $0x60] sm:$0xff]  ;;  %v496_v44 = vsel %vm3700_vm3, 0, %v495_v41  ;;  %vm3753_vm8 = vmand %vm646_vm5, %vm525_vm2 }
  0x47   : > { %925 = vmatpush.bf16.msra.mxu1 %v3110_v28  ;;  %535 = vst [vmem:[#allocation2 + $0x14] sm:$0x1] %v534_v38  ;;  %v528_v45 = vsel %vm3707_vm4, 0, %v527_v42  ;;  %v3127_v47 = vld [vmem:[#allocation8 + $0xd8] sm:$0xff]  ;;  %v3114_v48 = vld [vmem:[#allocation8 + $0x90] sm:$0xff]  ;;  %v3096_v54 = vld [vmem:[#allocation8] sm:$0xff] }
  0x48   : > { %1028 = vmatpush.bf16.msra.mxu2 %v3100_v24  ;;  %497 = vst [vmem:[#allocation2] sm:$0x1] %v496_v44  ;;  %v504_v49 = vld [vmem:[#allocation2 + $0x18] sm:$0x1]  ;;  %v536_v50 = vld [vmem:[#allocation2 + $0x1c] sm:$0x1]  ;;  %vm3770_vm11 = vmor %vm1078_vm6, %vm1079_vm7 }
  0x49   : > { %529 = vst [vmem:[#allocation2 + $0x4] sm:$0x1] %v528_v45  ;;  %v3107_v51 = vld [vmem:[#allocation8 + $0x58] sm:$0xff]  ;;  %v505_v52 = vsel %vm3700_vm3, 0, %v504_v49  ;;  %v537_v53 = vsel %vm3707_vm4, 0, %v536_v50  ;;  %v3126_v55 = vld [vmem:[#allocation8 + $0xd0] sm:$0xff]  ;;  %vm3789_vm12 = vmor %vm728_vm9, %vm729_vm10 }
  0x4a   : > { %454 = vmatpush.bf16.msra.mxu0 %v3087_v4  ;;  %3208 = vmatpush.bf16.msra.mxu3 %v3087_v4  ;;  %506 = vst [vmem:[#allocation2 + $0x18] sm:$0x1] %v505_v52  ;;  %v3113_v56 = vld [vmem:[#allocation8 + $0x88] sm:$0xff]  ;;  %v510_v57 = vld [vmem:[#allocation2 + $0x28] sm:$0x1]  ;;  %v3106_v61 = vld [vmem:[#allocation8 + $0x50] sm:$0xff] }
  0x4b   : > { %926 = vmatpush.bf16.msra.mxu1 %v3109_v33  ;;  %v542_v58 = vld [vmem:[#allocation2 + $0x2c] sm:$0x1]  ;;  %538 = vst [vmem:[#allocation2 + $0x1c] sm:$0x1] %v537_v53  ;;  %v511_v59 = vsel %vm3700_vm3, 0, %v510_v57  ;;  %v3125_v62 = vld [vmem:[#allocation8 + $0xc8] sm:$0xff] }
  0x4c   : > { %1029 = vmatpush.bf16.msra.mxu2 %v3099_v30  ;;  %v543_v60 = vsel %vm3707_vm4, 0, %v542_v58  ;;  %512 = vst [vmem:[#allocation2 + $0x28] sm:$0x1] %v511_v59  ;;  %v3112_v63 = vld [vmem:[#allocation8 + $0x80] sm:$0xff]  ;;  %v3105_v0 = vld [vmem:[#allocation8 + $0x48] sm:$0xff]  ;;  %v3167_v38 = vld [vmem:[#allocation8 + $0x1f8] sm:$0xff] }
  0x4d   : > { %544 = vst [vmem:[#allocation2 + $0x2c] sm:$0x1] %v543_v60  ;;  %v3732_v1 = vld [vmem:[%s4091_s4] ss:$0 sm:$0xff]  ;;  %v539_v3 = vld [vmem:[#allocation2 + $0x24] sm:$0x1] }
  0x4e   : > { %455 = vmatpush.bf16.msra.mxu0 %v3086_v6  ;;  %3209 = vmatpush.bf16.msra.mxu3 %v3086_v6  ;;  %v507_v2 = vld [vmem:[#allocation2 + $0x20] sm:$0x1]  ;;  %v540_v5 = vsel %vm3707_vm4, 0, %v539_v3  ;;  %v3124_v6 = vld [vmem:[#allocation8 + $0xc0] sm:$0xff]  ;;  %v548_v19 = vld [vmem:[#allocation2 + $0x3c] sm:$0x1] }
  0x4f   : > { %927 = vmatpush.bf16.msra.mxu1 %v3108_v43  ;;  %v508_v4 = vsel %vm3700_vm3, 0, %v507_v2  ;;  %541 = vst [vmem:[#allocation2 + $0x24] sm:$0x1] %v540_v5  ;;  %v3104_v15 = vld [vmem:[#allocation8 + $0x40] sm:$0xff]  ;;  %v549_v20 = vsel %vm3707_vm4, 0, %v548_v19  ;;  %v3171_v22 = vld [vmem:[#allocation8 + $0x218] sm:$0xff] }
  0x50   : > { %1030 = vmatpush.bf16.msra.mxu2 %v3098_v37  ;;  %509 = vst [vmem:[#allocation2 + $0x20] sm:$0x1] %v508_v4  ;;  %v3748_v28 = vld [vmem:[#allocation2 + $0x4] sm:$0x1]  ;;  %v648_v29 = vld [vmem:[#allocation2 + $0x8] sm:$0xf] }
  0x51   : > { %550 = vst [vmem:[#allocation2 + $0x3c] sm:$0x1] %v549_v20  ;;  %v651_v30 = vld [vmem:[#allocation2 + $0xc] sm:$0x1]  ;;  %v519_v49 = vld [vmem:[#allocation2 + $0x40] sm:$0x1] }
  0x52   : > { %456 = vmatpush.bf16.msra.mxu0 %v3085_v8  ;;  %3210 = vmatpush.bf16.msra.mxu3 %v3085_v8  ;;  %v513_v8 = vld [vmem:[#allocation2 + $0x30] sm:$0x1]  ;;  %v3139_v37 = vld [vmem:[#allocation8 + $0x138] sm:$0xff]  ;;  %v551_v52 = vld [vmem:[#allocation2 + $0x44] sm:$0x1]  ;;  %v741_v60 = vshll.u32 %v3748_v28, 16 }
  0x53   : > { %928 = vmatpush.bf16.msra.mxu1 %v3107_v51  ;;  %v520_v51 = vsel %vm3700_vm3, 0, %v519_v49 }
  0x54   : > { %1031 = vmatpush.bf16.msra.mxu2 %v3097_v46  ;;  %521 = vst [vmem:[#allocation2 + $0x40] sm:$0x1] %v520_v51  ;;  %v675_v5 = vld [vmem:[#allocation2 + $0x2c] sm:$0x1] }
  0x56   : > { %457 = vmatpush.bf16.msra.mxu0 %v3084_v9  ;;  %3211 = vmatpush.bf16.msra.mxu3 %v3084_v9  ;;  %v545_v9 = vld [vmem:[#allocation2 + $0x34] sm:$0x1] }
  0x57   : > { %929 = vmatpush.bf16.msra.mxu1 %v3106_v61  ;;  %v552_v61 = vsel %vm3707_vm4, 0, %v551_v52 }
  0x58   : > { %1032 = vmatpush.bf16.msra.mxu2 %v3096_v54  ;;  %553 = vst [vmem:[#allocation2 + $0x44] sm:$0x1] %v552_v61 }
  0x59   : > { %458 = vmatmul.bf16.vlgmr.msra.gmra.mxu0 %v3080_v11  ;;  %468 = vmatmul.bf16.vlgmr.msra.gmra.mxu3 %v3082_v12  ;;  %v514_v11 = vsel %vm3700_vm3, 0, %v513_v8  ;;  %v546_v12 = vsel %vm3707_vm4, 0, %v545_v9  ;;  %v654_v8 = vld [vmem:[#allocation2 + $0x10] sm:$0xf] }
  0x5a   : > { %1194 = vmatpush.bf16.msrb.mxu3 %v3119_v10  ;;  %1328 = vmatpush.bf16.msrb.mxu0 %v3131_v16  ;;  %515 = vst [vmem:[#allocation2 + $0x30] sm:$0x1] %v514_v11 }
  0x5b   : > { %930 = vmatpush.bf16.msra.mxu1 %v3105_v0  ;;  %547 = vst [vmem:[#allocation2 + $0x34] sm:$0x1] %v546_v12  ;;  %v672_v0 = vld [vmem:[#allocation2 + $0x28] sm:$0xf]  ;;  %v657_v12 = vld [vmem:[#allocation2 + $0x14] sm:$0x1] }
  0x5e   : > { %1195 = vmatpush.bf16.msrb.mxu3 %v3118_v17  ;;  %1329 = vmatpush.bf16.msrb.mxu0 %v3130_v26 }
  0x5f   : > { %931 = vmatpush.bf16.msra.mxu1 %v3104_v15 }
  0x62   : > { %1196 = vmatpush.bf16.msrb.mxu3 %v3117_v27  ;;  %1330 = vmatpush.bf16.msrb.mxu0 %v3129_v31 }
  0x63   : > { %1574 = vmatpush.bf16.msrb.mxu1 %v3139_v37 }
  0x66   : > { %1197 = vmatpush.bf16.msrb.mxu3 %v3116_v32  ;;  %1331 = vmatpush.bf16.msrb.mxu0 %v3128_v39  ;;  %v1054_v32 = vld [vmem:[#allocation2] sm:$0xe] }
  0x67   : > { %v2762_v50 = vrot.slane %v1054_v32, 9 }
  0x69   : > { %463 = vmatmul.bf16.gmra.mxu0 %v3081_v13  ;;  %473 = vmatmul.bf16.gmra.mxu3 %v3083_v14  ;;  %v696_v13 = vld [vmem:[#allocation2] sm:$0xf]  ;;  %v516_v14 = vld [vmem:[#allocation2 + $0x38] sm:$0x1] }
  0x6a   : > { %1198 = vmatpush.bf16.msrb.mxu3 %v3115_v40  ;;  %1332 = vmatpush.bf16.msrb.mxu0 %v3127_v47  ;;  %v517_v17 = vsel %vm3700_vm3, 0, %v516_v14  ;;  %v732_v24 = vshrl.u32 %v696_v13, 16  ;;  %v735_v25 = vshll.u32 %v696_v13, 16  ;;  %v1083_v40 = vrot.slane %v3748_v28, 5  ;;  %v3138_v47 = vld [vmem:[#allocation8 + $0x130] sm:$0xff] }
  0x6b   : > { %518 = vst [vmem:[#allocation2 + $0x38] sm:$0x1] %v517_v17  ;;  %1575 = vmatpush.bf16.msrb.mxu1 %v3138_v47 }
  0x6c   : > { %v734_v41 = vrot.slane %v732_v24, 4  ;;  %v737_v42 = vrot.slane %v735_v25, 5  ;;  %v3777_v14 = vsel %vm3770_vm11, %v2762_v50, %v1083_v40  ;;  %v681_v50 = vld [vmem:[#allocation2 + $0x34] sm:$0x1] }
  0x6e   : > { %1199 = vmatpush.bf16.msrb.mxu3 %v3114_v48  ;;  %1333 = vmatpush.bf16.msrb.mxu0 %v3126_v55  ;;  %v3166_v48 = vld [vmem:[#allocation8 + $0x1f0] sm:$0xff]  ;;  %v738_v59 = vor.u32 %v737_v42, %v734_v41 }
  0x70   : > { %v3779_v15 = vrot.slane %v738_v59, 4 }
  0x72   : > { %1200 = vmatpush.bf16.msrb.mxu3 %v3113_v56  ;;  %1334 = vmatpush.bf16.msrb.mxu0 %v3125_v62 }
  0x76   : > { %1201 = vmatpush.bf16.msrb.mxu3 %v3112_v63  ;;  %1335 = vmatpush.bf16.msrb.mxu0 %v3124_v6 }
  0x7a   : > { %2129 = vmatpush.bf16.msra.mxu0 %v3167_v38  ;;  %v678_v38 = vld [vmem:[#allocation2 + $0x30] sm:$0xf] }
  0x7e   : > { %2130 = vmatpush.bf16.msra.mxu0 %v3166_v48 }
  0xd6   : > { %v459_v7 = vpop.f32.mrf.mxu0 }
  0xd7   : > { %v460_v10 = vadd.f32 %v3732_v1, %v459_v7 }
  0xd9   : > { %v479_v16 = vmax.f32 %v460_v10, 0.0 }
  0xdb   : > { %v557_v21 = vpack.c.bf16 %v479_v16, %v479_v16  ;;  %v3781_v16 = vrot.slane %v741_v60, 5 }
  0xdc   : > { %v469_v23 = vpop.f32.mrf.mxu3 }
  0xdd   : > { %v566_v26 = vshrl.u32 %v557_v21, 16  ;;  %v470_v27 = vadd.f32 %v3732_v1, %v469_v23  ;;  %v569_v34 = vshll.u32 %v557_v21, 16  ;;  %v2716_v23 = vld [vmem:[#allocation2] sm:$0xf] }
  0xde   : > { %v461_v31 = vpop.f32.mrf.mxu0 }
  0xdf   : > { %v568_v33 = vrot.slane %v566_v26, 7  ;;  %v462_v35 = vadd.f32 %v3732_v1, %v461_v31  ;;  %v483_v36 = vmax.f32 %v470_v27, 0.0  ;;  %v1130_v31 = vunpack.c.l.b16 %v3777_v14 }
  0xe1   : > { %v571_v43 = vor.u32 %v569_v34, %v568_v33  ;;  %v572_v44 = vrot.slane %v568_v33, 4  ;;  %v480_v45 = vmax.f32 %v462_v35, 0.0  ;;  %v561_v46 = vpack.c.bf16 %v483_v36, %v483_v36 }
  0xe3   : > { %v649_v53 = vsel %vm3753_vm8, %v571_v43, %v648_v29  ;;  %v652_v54 = vsel %vm3700_vm3, %v572_v44, %v651_v30  ;;  %v558_v55 = vpack.c.bf16 %v480_v45, %v480_v45  ;;  %v598_v56 = vshrl.u32 %v561_v46, 16 }
  0xe4   : > { %650 = vst [vmem:[#allocation2 + $0x8] sm:$0xf] %v649_v53  ;;  %v601_v57 = vshll.u32 %v561_v46, 16  ;;  %v471_v58 = vpop.f32.mrf.mxu3  ;;  %v744_v43 = vsel %vm3789_vm12, %v3779_v15, %v3781_v16 }
  0xe5   : > { %653 = vst [vmem:[#allocation2 + $0xc] sm:$0x1] %v652_v54  ;;  %v574_v62 = vshrl.u32 %v558_v55, 16  ;;  %v600_v63 = vrot.slane %v598_v56, 7  ;;  %v472_v2 = vadd.f32 %v3732_v1, %v471_v58  ;;  %v577_v4 = vshll.u32 %v558_v55, 16  ;;  %v3137_v55 = vld [vmem:[#allocation8 + $0x128] sm:$0xff] }
  0xe6   : > { %v464_v6 = vpop.f32.mrf.mxu0  ;;  %v3165_v56 = vld [vmem:[#allocation8 + $0x1e8] sm:$0xff]  ;;  %1576 = vmatpush.bf16.msrb.mxu1 %v3137_v55 }
  0xe7   : > { %v576_v7 = vrot.slane %v574_v62, 7  ;;  %v603_v9 = vor.u32 %v601_v57, %v600_v63  ;;  %v604_v10 = vrot.slane %v600_v63, 4  ;;  %v465_v11 = vadd.f32 %v3732_v1, %v464_v6  ;;  %v660_v58 = vld [vmem:[#allocation2 + $0x18] sm:$0xf]  ;;  %v3147_v62 = vld [vmem:[#allocation8 + $0x178] sm:$0xff]  ;;  %2131 = vmatpush.bf16.msra.mxu0 %v3165_v56  ;;  %v3136_v6 = vld [vmem:[#allocation8 + $0x120] sm:$0xff] }
  0xe8   : > { %v484_v13 = vmax.f32 %v472_v2, 0.0  ;;  %v663_v63 = vld [vmem:[#allocation2 + $0x1c] sm:$0x1]  ;;  %1748 = vmatpush.bf16.msrb.mxu2 %v3147_v62 }
  0xe9   : > { %v579_v17 = vor.u32 %v577_v4, %v576_v7  ;;  %v580_v19 = vrot.slane %v576_v7, 4  ;;  %v673_v20 = vsel %vm3753_vm8, %v603_v9, %v672_v0  ;;  %v676_v21 = vsel %vm3700_vm3, %v604_v10, %v675_v5 }
  0xea   : > { %674 = vst [vmem:[#allocation2 + $0x28] sm:$0xf] %v673_v20  ;;  %v481_v24 = vmax.f32 %v465_v11, 0.0  ;;  %v562_v25 = vpack.c.bf16 %v484_v13, %v484_v13  ;;  %1577 = vmatpush.bf16.msrb.mxu1 %v3136_v6 }
  0xeb   : > { %v655_v27 = vsel %vm3753_vm8, %v579_v17, %v654_v8  ;;  %v658_v28 = vsel %vm3700_vm3, %v580_v19, %v657_v12  ;;  %677 = vst [vmem:[#allocation2 + $0x2c] sm:$0x1] %v676_v21  ;;  %v3092_v29 = vld [vmem:[#allocation2 + $0x4] sm:$0xf0]  ;;  %v3164_v12 = vld [vmem:[#allocation8 + $0x1e0] sm:$0xff] }
  0xec   : > { %v1055_v30 = vld [vmem:[#allocation2 + $0x8] sm:$0xe]  ;;  %656 = vst [vmem:[#allocation2 + $0x10] sm:$0xf] %v655_v27  ;;  %v559_v32 = vpack.c.bf16 %v481_v24, %v481_v24  ;;  %v606_v33 = vshrl.u32 %v562_v25, 16  ;;  %v609_v34 = vshll.u32 %v562_v25, 16  ;;  %v2717_v35 = vor.u32 %v3092_v29, %v2716_v23  ;;  %v474_v36 = vpop.f32.mrf.mxu3  ;;  %2132 = vmatpush.bf16.msra.mxu0 %v3164_v12 }
  0xed   : > { %v721_v37 = vld [vmem:[#allocation2 + $0xc] sm:$0x1]  ;;  %659 = vst [vmem:[#allocation2 + $0x14] sm:$0x1] %v658_v28  ;;  %v475_v40 = vadd.f32 %v3732_v1, %v474_v36  ;;  %v2763_v41 = vrot.slane %v1055_v30, 9 }
  0xee   : > { %v1087_v42 = vrot.slane %v721_v37, 5  ;;  %v582_v44 = vshrl.u32 %v559_v32, 16  ;;  %v585_v45 = vshll.u32 %v559_v32, 16  ;;  %v608_v46 = vrot.slane %v606_v33, 7  ;;  %v466_v47 = vpop.f32.mrf.mxu0  ;;  %1033 = vmatmul.bf16.vlgmr.msra.gmra.mxu2 %v2717_v35  ;;  %v697_v48 = vld [vmem:[#allocation2 + $0x8] sm:$0xf] }
  0xef   : > { %v755_v49 = vshll.u32 %v721_v37, 16  ;;  %v467_v51 = vadd.f32 %v3732_v1, %v466_v47  ;;  %v485_v52 = vmax.f32 %v475_v40, 0.0  ;;  %v746_v54 = vshrl.u32 %v697_v48, 16  ;;  %v2804_v11 = vld [vmem:[#allocation2 + $0x8] sm:$0xf] }
  0xf0   : > { %v1088_v53 = vsel %vm3770_vm11, %v2763_v41, %v1087_v42  ;;  %v584_v57 = vrot.slane %v582_v44, 7  ;;  %v611_v59 = vor.u32 %v609_v34, %v608_v46  ;;  %v612_v60 = vrot.slane %v608_v46, 4  ;;  %v684_v21 = vld [vmem:[#allocation2 + $0x38] sm:$0xf]  ;;  %v687_v23 = vld [vmem:[#allocation2 + $0x3c] sm:$0x1] }
  0xf1   : > { %v1131_v61 = vunpack.c.l.b16 %v1088_v53  ;;  %v482_v0 = vmax.f32 %v467_v51, 0.0  ;;  %v563_v2 = vpack.c.bf16 %v485_v52, %v485_v52  ;;  %v748_v4 = vrot.slane %v746_v54, 4  ;;  %v669_v33 = vld [vmem:[#allocation2 + $0x24] sm:$0x1]  ;;  %v3159_v51 = vld [vmem:[#allocation8 + $0x1b8] sm:$0xff]  ;;  %v3145_v54 = vld [vmem:[#allocation8 + $0x168] sm:$0xff] }
  0xf2   : > { %v749_v5 = vshll.u32 %v697_v48, 16  ;;  %v587_v7 = vor.u32 %v585_v45, %v584_v57  ;;  %v588_v8 = vrot.slane %v584_v57, 4  ;;  %v679_v9 = vsel %vm3753_vm8, %v611_v59, %v678_v38  ;;  %v3146_v46 = vld [vmem:[#allocation8 + $0x170] sm:$0xff]  ;;  %1883 = vmatpush.bf16.msra.mxu3 %v3159_v51 }
  0xf3   : > { %v682_v10 = vsel %vm3700_vm3, %v612_v60, %v681_v50  ;;  %680 = vst [vmem:[#allocation2 + $0x30] sm:$0xf] %v679_v9  ;;  %v560_v13 = vpack.c.bf16 %v482_v0, %v482_v0  ;;  %v614_v14 = vshrl.u32 %v563_v2, 16  ;;  %v617_v15 = vshll.u32 %v563_v2, 16  ;;  %v3120_v17 = vld [vmem:[#allocation2 + $0xc] sm:$0xf0]  ;;  %1749 = vmatpush.bf16.msrb.mxu2 %v3146_v46 }
  0xf4   : > { %v1138_v16 = vpack.c.b16 %v1131_v61, %v1130_v31  ;;  %v661_v19 = vsel %vm3753_vm8, %v587_v7, %v660_v58  ;;  %v664_v20 = vsel %vm3700_vm3, %v588_v8, %v663_v63  ;;  %683 = vst [vmem:[#allocation2 + $0x34] sm:$0x1] %v682_v10  ;;  %v2805_v24 = vor.u32 %v3120_v17, %v2804_v11  ;;  %v476_v27 = vpop.f32.mrf.mxu3  ;;  %v666_v31 = vld [vmem:[#allocation2 + $0x20] sm:$0xf]  ;;  %v3815_v37 = vld [vmem:[#allocation2 + $0x14] sm:$0x1] }
  0xf5   : > { %v751_v25 = vrot.slane %v749_v5, 5  ;;  %662 = vst [vmem:[#allocation2 + $0x18] sm:$0xf] %v661_v19  ;;  %v590_v28 = vshrl.u32 %v560_v13, 16  ;;  %v593_v29 = vshll.u32 %v560_v13, 16  ;;  %v616_v30 = vrot.slane %v614_v14, 7 }
  0xf6   : > { %1202 = vmatmul.bf16.vlgmr.msrb.gmra.mxu3 %v1138_v16  ;;  %v757_v32 = vrot.slane %v755_v49, 5  ;;  %665 = vst [vmem:[#allocation2 + $0x1c] sm:$0x1] %v664_v20  ;;  %1336 = vmatmul.bf16.vlgmr.msrb.gmra.mxu0 %v2805_v24  ;;  %v860_v35 = vunpack.c.l.b16 %v744_v43  ;;  %v477_v36 = vadd.f32 %v3732_v1, %v476_v27  ;;  %v1056_v38 = vld [vmem:[#allocation2 + $0x10] sm:$0xe]  ;;  %v1091_v49 = vrot.slane %v3815_v37, 5 }
  0xf7   : > { %v752_v34 = vor.u32 %v751_v25, %v748_v4  ;;  %v592_v40 = vrot.slane %v590_v28, 7  ;;  %v619_v41 = vor.u32 %v617_v15, %v616_v30  ;;  %v620_v42 = vrot.slane %v616_v30, 4  ;;  %v698_v45 = vld [vmem:[#allocation2 + $0x10] sm:$0xf]  ;;  %v3158_v57 = vld [vmem:[#allocation8 + $0x1b0] sm:$0xff]  ;;  %1750 = vmatpush.bf16.msrb.mxu2 %v3145_v54  ;;  %v3163_v24 = vld [vmem:[#allocation8 + $0x1d8] sm:$0xff] }
  0xf8   : > { %v2764_v44 = vrot.slane %v1056_v38, 9  ;;  %v486_v48 = vmax.f32 %v477_v36, 0.0  ;;  %v760_v50 = vshrl.u32 %v698_v45, 16  ;;  %v2720_v61 = vld [vmem:[#allocation2 + $0x10] sm:$0xf]  ;;  %v763_v13 = vshll.u32 %v698_v45, 16  ;;  %1884 = vmatpush.bf16.msra.mxu3 %v3158_v57  ;;  %2133 = vmatpush.bf16.msra.mxu0 %v3163_v24 }
  0xf9   : > { %v753_v47 = vrot.slane %v752_v34, 4  ;;  %v595_v52 = vor.u32 %v593_v29, %v592_v40  ;;  %v596_v43 = vrot.slane %v592_v40, 4  ;;  %v685_v1 = vsel %vm3753_vm8, %v619_v41, %v684_v21  ;;  %v690_v10 = vld [vmem:[#allocation2 + $0x40] sm:$0xf]  ;;  %v693_v14 = vld [vmem:[#allocation2 + $0x44] sm:$0x1] }
  0xfa   : > { %v688_v53 = vsel %vm3700_vm3, %v620_v42, %v687_v23  ;;  %686 = vst [vmem:[#allocation2 + $0x38] sm:$0xf] %v685_v1  ;;  %v564_v56 = vpack.c.bf16 %v486_v48, %v486_v48  ;;  %v762_v62 = vrot.slane %v760_v50, 4  ;;  %v1092_v8 = vsel %vm3770_vm11, %v2764_v44, %v1091_v49  ;;  %v3135_v23 = vld [vmem:[#allocation8 + $0x118] sm:$0xff]  ;;  %v3144_v25 = vld [vmem:[#allocation8 + $0x160] sm:$0xff]  ;;  %v3134_v41 = vld [vmem:[#allocation8 + $0x110] sm:$0xff] }
  0xfb   : > { %v758_v55 = vsel %vm3789_vm12, %v753_v47, %v757_v32  ;;  %v667_v58 = vsel %vm3753_vm8, %v595_v52, %v666_v31  ;;  %v670_v59 = vsel %vm3700_vm3, %v596_v43, %v669_v33  ;;  %689 = vst [vmem:[#allocation2 + $0x3c] sm:$0x1] %v688_v53  ;;  %v769_v16 = vshll.u32 %v3815_v37, 16  ;;  %v701_v31 = vld [vmem:[#allocation2 + $0x28] sm:$0xf]  ;;  %v3157_v33 = vld [vmem:[#allocation8 + $0x1a8] sm:$0xff]  ;;  %1578 = vmatpush.bf16.msrb.mxu1 %v3135_v23 }
  0xfc   : > { %v861_v60 = vunpack.c.l.b16 %v758_v55  ;;  %668 = vst [vmem:[#allocation2 + $0x20] sm:$0xf] %v667_v58  ;;  %v3093_v63 = vld [vmem:[#allocation2 + $0x14] sm:$0xf0]  ;;  %v622_v0 = vshrl.u32 %v564_v56, 16  ;;  %v625_v2 = vshll.u32 %v564_v56, 16  ;;  %v1132_v27 = vunpack.c.l.b16 %v1092_v8  ;;  %1751 = vmatpush.bf16.msrb.mxu2 %v3144_v25  ;;  %1885 = vmatpush.bf16.msra.mxu3 %v3157_v33 }
  0xfd   : > { %671 = vst [vmem:[#allocation2 + $0x24] sm:$0x1] %v670_v59  ;;  %v2721_v5 = vor.u32 %v3093_v63, %v2720_v61  ;;  %v3828_v6 = vld [vmem:[#allocation2 + $0x1c] sm:$0x1]  ;;  %v1057_v7 = vld [vmem:[#allocation2 + $0x18] sm:$0xe] }
  0xfe   : > { %v868_v4 = vpack.c.b16 %v861_v60, %v860_v35  ;;  %v624_v9 = vrot.slane %v622_v0, 7  ;;  %v2765_v11 = vrot.slane %v1057_v7, 9  ;;  %v1095_v12 = vrot.slane %v3828_v6, 5  ;;  %v699_v15 = vld [vmem:[#allocation2 + $0x18] sm:$0xf]  ;;  %v3143_v38 = vld [vmem:[#allocation8 + $0x158] sm:$0xff] }
  0xff   : > { %1038 = vmatmul.bf16.gmra.mxu2 %v2721_v5  ;;  %v765_v21 = vrot.slane %v763_v13, 5  ;;  %v2808_v29 = vld [vmem:[#allocation2 + $0x18] sm:$0xf]  ;;  %v774_v30 = vshrl.u32 %v699_v15, 16  ;;  %v777_v32 = vshll.u32 %v699_v15, 16  ;;  %v783_v37 = vshll.u32 %v3828_v6, 16  ;;  %1579 = vmatpush.bf16.msrb.mxu1 %v3134_v41 }
 0x100   : > { %932 = vmatmul.bf16.vlgmr.msra.gmra.mxu1 %v868_v4  ;;  %v627_v17 = vor.u32 %v625_v2, %v624_v9  ;;  %v628_v19 = vrot.slane %v624_v9, 4  ;;  %v1096_v20 = vsel %vm3770_vm11, %v2765_v11, %v1095_v12  ;;  %v3156_v40 = vld [vmem:[#allocation8 + $0x1a0] sm:$0xff]  ;;  %v3841_v47 = vld [vmem:[#allocation2 + $0x2c] sm:$0x1]  ;;  %v771_v49 = vrot.slane %v769_v16, 5  ;;  %v3162_v56 = vld [vmem:[#allocation8 + $0x1d0] sm:$0xff]  ;;  %1752 = vmatpush.bf16.msrb.mxu2 %v3143_v38 }
 0x101   : > { %v1133_v28 = vunpack.c.l.b16 %v1096_v20  ;;  %v766_v36 = vor.u32 %v765_v21, %v762_v62  ;;  %v776_v45 = vrot.slane %v774_v30, 4  ;;  %v779_v46 = vrot.slane %v777_v32, 5  ;;  %v1059_v50 = vld [vmem:[#allocation2 + $0x28] sm:$0xe]  ;;  %1886 = vmatpush.bf16.msra.mxu3 %v3156_v40  ;;  %v3142_v61 = vld [vmem:[#allocation8 + $0x150] sm:$0xff]  ;;  %2134 = vmatpush.bf16.msra.mxu0 %v3162_v56  ;;  %v3161_v30 = vld [vmem:[#allocation8 + $0x1c8] sm:$0xff] }
 0x102   : > { %v691_v34 = vsel %vm3753_vm8, %v627_v17, %v690_v10  ;;  %v694_v35 = vsel %vm3700_vm3, %v628_v19, %v693_v14  ;;  %v802_v55 = vshrl.u32 %v701_v31, 16  ;;  %v785_v58 = vrot.slane %v783_v37, 5  ;;  %v3155_v4 = vld [vmem:[#allocation8 + $0x198] sm:$0xff]  ;;  %v3141_v17 = vld [vmem:[#allocation8 + $0x148] sm:$0xff]  ;;  %v3154_v19 = vld [vmem:[#allocation8 + $0x190] sm:$0xff] }
 0x103   : > { %692 = vst [vmem:[#allocation2 + $0x40] sm:$0xf] %v691_v34  ;;  %v1139_v42 = vpack.c.b16 %v1133_v28, %v1132_v27  ;;  %v3121_v44 = vld [vmem:[#allocation2 + $0x1c] sm:$0xf0]  ;;  %v767_v48 = vrot.slane %v766_v36, 4  ;;  %v780_v51 = vor.u32 %v779_v46, %v776_v45  ;;  %v2767_v59 = vrot.slane %v1059_v50, 9 }
 0x104   : > { %695 = vst [vmem:[#allocation2 + $0x44] sm:$0x1] %v694_v35  ;;  %v2809_v39 = vor.u32 %v3121_v44, %v2808_v29  ;;  %v3843_v52 = vld [vmem:[#allocation2 + $0x24] sm:$0x1]  ;;  %v1058_v43 = vld [vmem:[#allocation2 + $0x20] sm:$0xe]  ;;  %1753 = vmatpush.bf16.msrb.mxu2 %v3142_v61 }
 0x105   : > { %v700_v1 = vld [vmem:[#allocation2 + $0x20] sm:$0xf]  ;;  %v772_v53 = vsel %vm3789_vm12, %v767_v48, %v771_v49  ;;  %v781_v57 = vrot.slane %v780_v51, 4  ;;  %v2766_v62 = vrot.slane %v1058_v43, 9  ;;  %v1099_v63 = vrot.slane %v3843_v52, 5  ;;  %1887 = vmatpush.bf16.msra.mxu3 %v3155_v4  ;;  %v3133_v29 = vld [vmem:[#allocation8 + $0x108] sm:$0xff]  ;;  %2135 = vmatpush.bf16.msra.mxu0 %v3161_v30 }
 0x106   : > { %1207 = vmatmul.bf16.gmra.mxu3 %v1139_v42  ;;  %1341 = vmatmul.bf16.gmra.mxu0 %v2809_v39  ;;  %v788_v54 = vshrl.u32 %v700_v1, 16  ;;  %v791_v60 = vshll.u32 %v700_v1, 16  ;;  %v1103_v0 = vrot.slane %v3841_v47, 5  ;;  %v805_v2 = vshll.u32 %v701_v31, 16  ;;  %v3094_v7 = vld [vmem:[#allocation2 + $0x24] sm:$0xf0] }
 0x107   : > { %v786_v5 = vsel %vm3789_vm12, %v781_v57, %v785_v58  ;;  %v862_v6 = vunpack.c.l.b16 %v772_v53  ;;  %v2724_v10 = vld [vmem:[#allocation2 + $0x20] sm:$0xf]  ;;  %v804_v12 = vrot.slane %v802_v55, 4  ;;  %v1100_v15 = vsel %vm3770_vm11, %v2766_v62, %v1099_v63  ;;  %v2812_v28 = vld [vmem:[#allocation2 + $0x28] sm:$0xf]  ;;  %v3140_v33 = vld [vmem:[#allocation8 + $0x140] sm:$0xff]  ;;  %1580 = vmatpush.bf16.msrb.mxu1 %v3133_v29 }
 0x108   : > { %v790_v8 = vrot.slane %v788_v54, 4  ;;  %v863_v9 = vunpack.c.l.b16 %v786_v5  ;;  %v793_v11 = vrot.slane %v791_v60, 5  ;;  %v807_v13 = vrot.slane %v805_v2, 5  ;;  %1754 = vmatpush.bf16.msrb.mxu2 %v3141_v17  ;;  %v702_v31 = vld [vmem:[#allocation2 + $0x30] sm:$0xf]  ;;  %v3153_v34 = vld [vmem:[#allocation8 + $0x188] sm:$0xff] }
 0x109   : > { %v1104_v16 = vsel %vm3770_vm11, %v2767_v59, %v1103_v0  ;;  %v2725_v20 = vor.u32 %v3094_v7, %v2724_v10  ;;  %v811_v24 = vshll.u32 %v3841_v47, 16  ;;  %v1134_v25 = vunpack.c.l.b16 %v1100_v15  ;;  %1888 = vmatpush.bf16.msra.mxu3 %v3154_v19  ;;  %v3122_v35 = vld [vmem:[#allocation2 + $0x2c] sm:$0xf0]  ;;  %v3857_v36 = vld [vmem:[#allocation2 + $0x34] sm:$0x1] }
 0x10a   : > { %v869_v14 = vpack.c.b16 %v863_v9, %v862_v6  ;;  %v794_v21 = vor.u32 %v793_v11, %v790_v8  ;;  %v808_v23 = vor.u32 %v807_v13, %v804_v12  ;;  %v1135_v27 = vunpack.c.l.b16 %v1104_v16  ;;  %v3132_v37 = vld [vmem:[#allocation8 + $0x100] sm:$0xff]  ;;  %v703_v42 = vld [vmem:[#allocation2 + $0x38] sm:$0xf]  ;;  %v727_v50 = vld [vmem:[#allocation2 + $0x3c] sm:$0x1] }
 0x10b   : > { %v797_v32 = vshll.u32 %v3843_v52, 16  ;;  %v813_v41 = vrot.slane %v811_v24, 5  ;;  %v1060_v45 = vld [vmem:[#allocation2 + $0x30] sm:$0xe]  ;;  %v816_v46 = vshrl.u32 %v702_v31, 16  ;;  %v819_v47 = vshll.u32 %v702_v31, 16  ;;  %1581 = vmatpush.bf16.msrb.mxu1 %v3132_v37 }
 0x10c   : > { %v795_v38 = vrot.slane %v794_v21, 4  ;;  %v809_v40 = vrot.slane %v808_v23, 4  ;;  %v1140_v44 = vpack.c.b16 %v1135_v27, %v1134_v25  ;;  %v3160_v39 = vld [vmem:[#allocation8 + $0x1c0] sm:$0xff]  ;;  %v2813_v48 = vor.u32 %v3122_v35, %v2812_v28  ;;  %v1061_v51 = vld [vmem:[#allocation2 + $0x38] sm:$0xe]  ;;  %1755 = vmatpush.bf16.msrb.mxu2 %v3140_v33 }
 0x10d   : > { %v799_v49 = vrot.slane %v797_v32, 5  ;;  %1889 = vmatpush.bf16.msra.mxu3 %v3153_v34  ;;  %v3152_v52 = vld [vmem:[#allocation8 + $0x180] sm:$0xff]  ;;  %v830_v43 = vshrl.u32 %v703_v42, 16  ;;  %v833_v1 = vshll.u32 %v703_v42, 16  ;;  %v2768_v55 = vrot.slane %v1060_v45, 9  ;;  %2136 = vmatpush.bf16.msra.mxu0 %v3160_v39  ;;  %v3175_v34 = vld [vmem:[#allocation8 + $0x238] sm:$0xff] }
 0x10e   : > { %v814_v54 = vsel %vm3789_vm12, %v809_v40, %v813_v41  ;;  %v1107_v56 = vrot.slane %v3857_v36, 5  ;;  %v2769_v57 = vrot.slane %v1061_v51, 9  ;;  %v1111_v58 = vrot.slane %v727_v50, 5  ;;  %v2728_v61 = vld [vmem:[#allocation2 + $0x30] sm:$0xf]  ;;  %v3174_v45 = vld [vmem:[#allocation8 + $0x230] sm:$0xff] }
 0x10f   : > { %1043 = vmatmul.bf16.gmra.mxu2 %v2725_v20  ;;  %v800_v53 = vsel %vm3789_vm12, %v795_v38, %v799_v49  ;;  %v818_v59 = vrot.slane %v816_v46, 4  ;;  %v821_v60 = vrot.slane %v819_v47, 5  ;;  %v865_v63 = vunpack.c.l.b16 %v814_v54  ;;  %v3095_v0 = vld [vmem:[#allocation2 + $0x34] sm:$0xf0]  ;;  %v1920_v6 = vld [vmem:[#allocation2 + $0x10] sm:$0xf]  ;;  %3212 = vmatpush.bf16.msra.mxu1 %v3175_v34 }
 0x110   : > { %937 = vmatmul.bf16.gmra.mxu1 %v869_v14  ;;  %v864_v62 = vunpack.c.l.b16 %v800_v53  ;;  %v832_v2 = vrot.slane %v830_v43, 4  ;;  %v835_v4 = vrot.slane %v833_v1, 5  ;;  %v1922_v5 = vld [vmem:[#allocation2 + $0x18] sm:$0xf]  ;;  %v1108_v7 = vsel %vm3770_vm11, %v2768_v55, %v1107_v56  ;;  %v3869_v11 = vld [vmem:[#allocation2 + $0x14] sm:$0x1] }
 0x111   : > { %1890 = vmatpush.bf16.msra.mxu3 %v3152_v52  ;;  %v1112_v8 = vsel %vm3770_vm11, %v2769_v57, %v1111_v58  ;;  %v822_v9 = vor.u32 %v821_v60, %v818_v59  ;;  %v825_v10 = vshll.u32 %v3857_v36, 16  ;;  %v1612_v12 = vld [vmem:[#allocation2 + $0x10] sm:$0xe]  ;;  %v2729_v13 = vor.u32 %v3095_v0, %v2728_v61  ;;  %v3871_v25 = vld [vmem:[#allocation2 + $0xc] sm:$0x1]  ;;  %2303 = vmatpush.bf16.msrb.mxu0 %v3175_v34 }
 0x112   : > { %v839_v14 = vshll.u32 %v727_v50, 16  ;;  %v1951_v15 = vshrl.u32 %v1922_v5, 16  ;;  %v1954_v16 = vshll.u32 %v1922_v5, 16  ;;  %v870_v17 = vpack.c.b16 %v865_v63, %v864_v62  ;;  %v2816_v29 = vld [vmem:[#allocation2 + $0x38] sm:$0xf] }
 0x113   : > { %v836_v19 = vor.u32 %v835_v4, %v832_v2  ;;  %v1937_v20 = vshrl.u32 %v1920_v6, 16  ;;  %v1940_v21 = vshll.u32 %v1920_v6, 16  ;;  %v1136_v23 = vunpack.c.l.b16 %v1108_v7  ;;  %v3123_v30 = vld [vmem:[#allocation2 + $0x3c] sm:$0xf0]  ;;  %v1611_v33 = vld [vmem:[#allocation2 + $0x8] sm:$0xe]  ;;  %3213 = vmatpush.bf16.msra.mxu1 %v3174_v45 }
 0x114   : > { %v1137_v24 = vunpack.c.l.b16 %v1112_v8  ;;  %v2883_v27 = vrot.slane %v1612_v12, 9  ;;  %v1641_v28 = vrot.slane %v3869_v11, 5  ;;  %v823_v32 = vrot.slane %v822_v9, 4  ;;  %v1365_v37 = vld [vmem:[#allocation2 + $0x8] sm:$0xf] }
 0x115   : > { %v827_v31 = vrot.slane %v825_v10, 5  ;;  %v1953_v35 = vrot.slane %v1951_v15, 4  ;;  %v1956_v36 = vrot.slane %v1954_v16, 5  ;;  %v1367_v38 = vld [vmem:[#allocation2 + $0x10] sm:$0xf]  ;;  %v837_v40 = vrot.slane %v836_v19, 4  ;;  %2304 = vmatpush.bf16.msrb.mxu0 %v3174_v45 }
 0x116   : > { %1212 = vmatmul.bf16.gmra.mxu3 %v1140_v44  ;;  %1346 = vmatmul.bf16.gmra.mxu0 %v2813_v48  ;;  %v841_v41 = vrot.slane %v839_v14, 5  ;;  %v1939_v42 = vrot.slane %v1937_v20, 4  ;;  %v1942_v44 = vrot.slane %v1940_v21, 5  ;;  %v1141_v46 = vpack.c.b16 %v1137_v24, %v1136_v23  ;;  %v3877_v49 = vld [vmem:[#allocation2 + $0x14] sm:$0x1] }
 0x117   : > { %v2882_v47 = vrot.slane %v1611_v33, 9  ;;  %v1637_v39 = vrot.slane %v3871_v25, 5  ;;  %v1642_v48 = vsel %vm3770_vm11, %v2883_v27, %v1641_v28  ;;  %v3879_v50 = vld [vmem:[#allocation2 + $0x1c] sm:$0x1]  ;;  %v1382_v51 = vshrl.u32 %v1365_v37, 16 }
 0x118   : > { %v1385_v52 = vshll.u32 %v1365_v37, 16  ;;  %v1396_v43 = vshrl.u32 %v1367_v38, 16  ;;  %v1399_v1 = vshll.u32 %v1367_v38, 16  ;;  %v2817_v53 = vor.u32 %v3123_v30, %v2816_v29  ;;  %v1924_v4 = vld [vmem:[#allocation2 + $0x20] sm:$0xf] }
 0x119   : > { %v1957_v54 = vor.u32 %v1956_v36, %v1953_v35  ;;  %v828_v55 = vsel %vm3789_vm12, %v823_v32, %v827_v31  ;;  %v842_v56 = vsel %vm3789_vm12, %v837_v40, %v841_v41  ;;  %v1943_v57 = vor.u32 %v1942_v44, %v1939_v42  ;;  %v3889_v10 = vld [vmem:[#allocation2 + $0x1c] sm:$0x1]  ;;  %v1926_v12 = vld [vmem:[#allocation2 + $0x28] sm:$0xf]  ;;  %v1613_v15 = vld [vmem:[#allocation2 + $0x18] sm:$0xe] }
 0x11a   : > { %v1638_v58 = vsel %vm3770_vm11, %v2882_v47, %v1637_v39  ;;  %v1685_v59 = vunpack.c.l.b16 %v1642_v48  ;;  %v1946_v60 = vshll.u32 %v3877_v49, 16  ;;  %v1960_v61 = vshll.u32 %v3879_v50, 16  ;;  %v3892_v24 = vld [vmem:[#allocation2 + $0x24] sm:$0x1]  ;;  %v1614_v27 = vld [vmem:[#allocation2 + $0x20] sm:$0xe] }
 0x11b   : > { %v1384_v62 = vrot.slane %v1382_v51, 4  ;;  %v1387_v63 = vrot.slane %v1385_v52, 5  ;;  %v1398_v0 = vrot.slane %v1396_v43, 4  ;;  %v1401_v2 = vrot.slane %v1399_v1, 5  ;;  %v3148_v31 = vld [vmem:[#allocation2 + $0x14] sm:$0xf0] }
 0x11c   : > { %v866_v5 = vunpack.c.l.b16 %v828_v55  ;;  %v867_v6 = vunpack.c.l.b16 %v842_v56  ;;  %v1958_v7 = vrot.slane %v1957_v54, 4  ;;  %v1684_v8 = vunpack.c.l.b16 %v1638_v58  ;;  %v3173_v47 = vld [vmem:[#allocation8 + $0x228] sm:$0xff]  ;;  %v3901_v48 = vld [vmem:[#allocation2 + $0x24] sm:$0x1]  ;;  %v3172_v55 = vld [vmem:[#allocation8 + $0x220] sm:$0xff] }
 0x11d   : > { %v1944_v9 = vrot.slane %v1943_v57, 4  ;;  %v1962_v14 = vrot.slane %v1960_v61, 5  ;;  %v1965_v16 = vshrl.u32 %v1924_v4, 16  ;;  %v1388_v20 = vor.u32 %v1387_v63, %v1384_v62  ;;  %v1369_v54 = vld [vmem:[#allocation2 + $0x18] sm:$0xf]  ;;  %2305 = vmatpush.bf16.msrb.mxu0 %v3173_v47  ;;  %3214 = vmatpush.bf16.msra.mxu1 %v3173_v47 }
 0x11e   : > { %v1692_v19 = vpack.c.b16 %v1685_v59, %v1684_v8  ;;  %v1391_v21 = vshll.u32 %v3871_v25, 16  ;;  %v1402_v23 = vor.u32 %v1401_v2, %v1398_v0  ;;  %v871_v28 = vpack.c.b16 %v867_v6, %v866_v5  ;;  %v2924_v25 = vld [vmem:[#allocation2 + $0x10] sm:$0xf]  ;;  %v3911_v63 = vld [vmem:[#allocation2 + $0x2c] sm:$0x1] }
 0x11f   : > { %1048 = vmatmul.bf16.gmra.mxu2 %v2729_v13  ;;  %v1948_v13 = vrot.slane %v1946_v60, 5  ;;  %v1963_v29 = vsel %vm3789_vm12, %v1958_v7, %v1962_v14  ;;  %v1979_v30 = vshrl.u32 %v1926_v12, 16  ;;  %v1982_v32 = vshll.u32 %v1926_v12, 16 }
 0x120   : > { %942 = vmatmul.bf16.gmra.mxu1 %v870_v17  ;;  %v1968_v17 = vshll.u32 %v1924_v4, 16  ;;  %v1405_v34 = vshll.u32 %v3869_v11, 16  ;;  %v2884_v35 = vrot.slane %v1613_v15, 9  ;;  %v1645_v36 = vrot.slane %v3889_v10, 5 }
 0x121   : > { %v1949_v33 = vsel %vm3789_vm12, %v1944_v9, %v1948_v13  ;;  %v2885_v37 = vrot.slane %v1614_v27, 9  ;;  %v1649_v38 = vrot.slane %v3892_v24, 5  ;;  %v1967_v40 = vrot.slane %v1965_v16, 4  ;;  %2306 = vmatpush.bf16.msrb.mxu0 %v3172_v55  ;;  %3215 = vmatpush.bf16.msra.mxu1 %v3172_v55  ;;  %v3915_v27 = vld [vmem:[#allocation2 + $0x2c] sm:$0x1] }
 0x122   : > { %v1970_v41 = vrot.slane %v1968_v17, 5  ;;  %v2066_v42 = vunpack.c.l.b16 %v1963_v29  ;;  %v1389_v44 = vrot.slane %v1388_v20, 4  ;;  %v1403_v45 = vrot.slane %v1402_v23, 4  ;;  %v1928_v17 = vld [vmem:[#allocation2 + $0x30] sm:$0xf] }
 0x123   : > { %v2925_v39 = vor.u32 %v3148_v31, %v2924_v25  ;;  %v1981_v11 = vrot.slane %v1979_v30, 4  ;;  %v1984_v51 = vrot.slane %v1982_v32, 5  ;;  %v2065_v52 = vunpack.c.l.b16 %v1949_v33  ;;  %v3917_v30 = vld [vmem:[#allocation2 + $0x34] sm:$0x1]  ;;  %v522_v32 = vld [vmem:[#allocation2 + $0x48] sm:$0x1] }
 0x124   : > { %v1393_v43 = vrot.slane %v1391_v21, 5  ;;  %v1407_v1 = vrot.slane %v1405_v34, 5  ;;  %v1650_v56 = vsel %vm3770_vm11, %v2885_v37, %v1649_v38  ;;  %v1971_v57 = vor.u32 %v1970_v41, %v1967_v40  ;;  %v554_v31 = vld [vmem:[#allocation2 + $0x4c] sm:$0x1]  ;;  %v1615_v25 = vld [vmem:[#allocation2 + $0x28] sm:$0xe] }
 0x125   : > { %v2073_v60 = vpack.c.b16 %v2066_v42, %v2065_v52  ;;  %v1974_v0 = vshll.u32 %v3901_v48, 16  ;;  %v1985_v2 = vor.u32 %v1984_v51, %v1981_v11  ;;  %v1988_v4 = vshll.u32 %v3911_v63, 16  ;;  %v1616_v37 = vld [vmem:[#allocation2 + $0x30] sm:$0xe]  ;;  %2307 = vmatpush.bf16.msrb.mxu0 %v3171_v22  ;;  %3216 = vmatpush.bf16.msra.mxu1 %v3171_v22 }
 0x126   : > { %1217 = vmatmul.bf16.gmra.mxu3 %v1141_v46  ;;  %1351 = vmatmul.bf16.gmra.mxu0 %v2817_v53  ;;  %v1371_v46 = vld [vmem:[#allocation2 + $0x20] sm:$0xf]  ;;  %v1646_v53 = vsel %vm3770_vm11, %v2884_v35, %v1645_v36  ;;  %v1394_v61 = vsel %vm3789_vm12, %v1389_v44, %v1393_v43  ;;  %v1408_v62 = vsel %vm3789_vm12, %v1403_v45, %v1407_v1  ;;  %v1410_v5 = vshrl.u32 %v1369_v54, 16  ;;  %v3149_v45 = vld [vmem:[#allocation2 + $0x24] sm:$0xf0] }
 0x127   : > { %v1424_v58 = vshrl.u32 %v1371_v46, 16  ;;  %v1427_v59 = vshll.u32 %v1371_v46, 16  ;;  %v1413_v6 = vshll.u32 %v1369_v54, 16  ;;  %v1687_v7 = vunpack.c.l.b16 %v1650_v56  ;;  %v2928_v44 = vld [vmem:[#allocation2 + $0x20] sm:$0xf] }
 0x128   : > { %v1511_v8 = vunpack.c.l.b16 %v1408_v62  ;;  %v1972_v9 = vrot.slane %v1971_v57, 4  ;;  %v1510_v14 = vunpack.c.l.b16 %v1394_v61  ;;  %v1686_v15 = vunpack.c.l.b16 %v1646_v53  ;;  %v1373_v54 = vld [vmem:[#allocation2 + $0x28] sm:$0xf]  ;;  %v3931_v61 = vld [vmem:[#allocation2 + $0x34] sm:$0x1] }
 0x129   : > { %v1426_v12 = vrot.slane %v1424_v58, 4  ;;  %v1429_v13 = vrot.slane %v1427_v59, 5  ;;  %v1976_v16 = vrot.slane %v1974_v0, 5  ;;  %v1990_v20 = vrot.slane %v1988_v4, 5  ;;  %v3937_v4 = vld [vmem:[#allocation2 + $0x3c] sm:$0x1] }
 0x12a   : > { %v1412_v21 = vrot.slane %v1410_v5, 4  ;;  %v1415_v23 = vrot.slane %v1413_v6, 5  ;;  %v1693_v29 = vpack.c.b16 %v1687_v7, %v1686_v15  ;;  %v1518_v33 = vpack.c.b16 %v1511_v8, %v1510_v14  ;;  %v1375_v5 = vld [vmem:[#allocation2 + $0x30] sm:$0xf]  ;;  %v3170_v6 = vld [vmem:[#allocation8 + $0x210] sm:$0xff] }
 0x12b   : > { %v1977_v34 = vsel %vm3789_vm12, %v1972_v9, %v1976_v16  ;;  %v1430_v35 = vor.u32 %v1429_v13, %v1426_v12  ;;  %v1433_v36 = vshll.u32 %v3892_v24, 16  ;;  %v1993_v38 = vshrl.u32 %v1928_v17, 16  ;;  %2308 = vmatpush.bf16.msrb.mxu0 %v3170_v6  ;;  %3217 = vmatpush.bf16.msra.mxu1 %v3170_v6 }
 0x12c   : > { %v1996_v40 = vshll.u32 %v1928_v17, 16  ;;  %v1416_v47 = vor.u32 %v1415_v23, %v1412_v21  ;;  %v555_v11 = vsel %vm3707_vm4, 0, %v554_v31  ;;  %v2886_v51 = vrot.slane %v1615_v25, 9  ;;  %v2166_v17 = vld [vmem:[#allocation2 + $0x10] sm:$0xe] }
 0x12d   : > { %v1653_v24 = vrot.slane %v3915_v27, 5  ;;  %v2887_v52 = vrot.slane %v1616_v37, 9  ;;  %v1657_v43 = vrot.slane %v3917_v30, 5  ;;  %v1419_v1 = vshll.u32 %v3889_v10, 16  ;;  %556 = vst [vmem:[#allocation2 + $0x4c] sm:$0x1] %v555_v11 }
 0x12e   : > { %v1431_v53 = vrot.slane %v1430_v35, 4  ;;  %v1995_v55 = vrot.slane %v1993_v38, 4  ;;  %v1998_v18 = vrot.slane %v1996_v40, 5  ;;  %v2067_v58 = vunpack.c.l.b16 %v1977_v34  ;;  %v2167_v35 = vld [vmem:[#allocation2 + $0x18] sm:$0xe] }
 0x12f   : > { %1756 = vmatmul.bf16.vlgmr.msrb.gmra.mxu2 %v1692_v19  ;;  %v1986_v19 = vrot.slane %v1985_v2, 4  ;;  %v2929_v62 = vor.u32 %v3149_v45, %v2928_v44  ;;  %v1417_v0 = vrot.slane %v1416_v47, 4  ;;  %v1654_v10 = vsel %vm3770_vm11, %v2886_v51, %v1653_v24 }
 0x130   : > { %947 = vmatmul.bf16.gmra.mxu1 %v871_v28  ;;  %v1930_v28 = vld [vmem:[#allocation2 + $0x38] sm:$0xf]  ;;  %v1658_v2 = vsel %vm3770_vm11, %v2887_v52, %v1657_v43  ;;  %v2002_v8 = vshll.u32 %v3931_v61, 16  ;;  %v2016_v9 = vshll.u32 %v3937_v4, 16  ;;  %v1438_v12 = vshrl.u32 %v1373_v54, 16 }
 0x131   : > { %v2007_v41 = vshrl.u32 %v1930_v28, 16  ;;  %v2010_v42 = vshll.u32 %v1930_v28, 16  ;;  %v1991_v46 = vsel %vm3789_vm12, %v1986_v19, %v1990_v20  ;;  %v1421_v13 = vrot.slane %v1419_v1, 5 }
 0x132   : > { %v2068_v59 = vunpack.c.l.b16 %v1991_v46  ;;  %v1999_v14 = vor.u32 %v1998_v18, %v1995_v55  ;;  %v1441_v16 = vshll.u32 %v1373_v54, 16  ;;  %v1452_v20 = vshrl.u32 %v1375_v5, 16  ;;  %v1932_v46 = vld [vmem:[#allocation2 + $0x40] sm:$0xf]  ;;  %v1617_v54 = vld [vmem:[#allocation2 + $0x38] sm:$0xe] }
 0x133   : > { %v2009_v56 = vrot.slane %v2007_v41, 4  ;;  %v2012_v57 = vrot.slane %v2010_v42, 5  ;;  %v1455_v21 = vshll.u32 %v1375_v5, 16  ;;  %v1422_v23 = vsel %vm3789_vm12, %v1417_v0, %v1421_v13  ;;  %v3955_v18 = vld [vmem:[#allocation2 + $0x3c] sm:$0x1] }
 0x134   : > { %v2074_v19 = vpack.c.b16 %v2068_v59, %v2067_v58  ;;  %v2004_v31 = vrot.slane %v2002_v8, 5  ;;  %v1440_v34 = vrot.slane %v1438_v12, 4  ;;  %v2000_v25 = vrot.slane %v1999_v14, 4  ;;  %v3169_v8 = vld [vmem:[#allocation8 + $0x208] sm:$0xff] }
 0x135   : > { %v2013_v15 = vor.u32 %v2012_v57, %v2009_v56  ;;  %v1443_v38 = vrot.slane %v1441_v16, 5  ;;  %v2192_v40 = vrot.slane %v3877_v49, 5  ;;  %v1512_v41 = vunpack.c.l.b16 %v1422_v23  ;;  %v3150_v12 = vld [vmem:[#allocation2 + $0x34] sm:$0xf0]  ;;  %2309 = vmatpush.bf16.msrb.mxu0 %v3169_v8  ;;  %3218 = vmatpush.bf16.msra.mxu1 %v3169_v8  ;;  %v3168_v23 = vld [vmem:[#allocation8 + $0x200] sm:$0xff] }
 0x136   : > { %1891 = vmatmul.bf16.vlgmr.msra.gmra.mxu3 %v2925_v39  ;;  %2137 = vmatmul.bf16.vlgmr.msra.gmra.mxu0 %v2073_v60  ;;  %v523_v39 = vsel %vm3700_vm3, 0, %v522_v32  ;;  %v1435_v60 = vrot.slane %v1433_v36, 5  ;;  %v1689_v32 = vunpack.c.l.b16 %v1658_v2  ;;  %v3002_v36 = vrot.slane %v2166_v17, 9 }
 0x137   : > { %524 = vst [vmem:[#allocation2 + $0x48] sm:$0x1] %v523_v39  ;;  %v2014_v37 = vrot.slane %v2013_v15, 4  ;;  %v1454_v42 = vrot.slane %v1452_v20, 4  ;;  %v1457_v44 = vrot.slane %v1455_v21, 5  ;;  %v3003_v47 = vrot.slane %v2167_v35, 9 }
 0x138   : > { %v1436_v7 = vsel %vm3789_vm12, %v1431_v53, %v1435_v60  ;;  %v1447_v11 = vshll.u32 %v3915_v27, 16  ;;  %v2193_v24 = vsel %vm3770_vm11, %v3002_v36, %v2192_v40  ;;  %v2196_v52 = vrot.slane %v3879_v50, 5  ;;  %v1618_v27 = vld [vmem:[#allocation2 + $0x40] sm:$0xe]  ;;  %v3959_v50 = vld [vmem:[#allocation2 + $0x44] sm:$0x1] }
 0x139   : > { %v1513_v28 = vunpack.c.l.b16 %v1436_v7  ;;  %v2005_v43 = vsel %vm3789_vm12, %v2000_v25, %v2004_v31  ;;  %v1444_v1 = vor.u32 %v1443_v38, %v1440_v34  ;;  %v1461_v53 = vshll.u32 %v3917_v30, 16  ;;  %v2932_v30 = vld [vmem:[#allocation2 + $0x30] sm:$0xf]  ;;  %v1379_v31 = vld [vmem:[#allocation2 + $0x40] sm:$0xf]  ;;  %2310 = vmatpush.bf16.msrb.mxu0 %v3168_v23  ;;  %3219 = vmatpush.bf16.msra.mxu1 %v3168_v23 }
 0x13a   : > { %v1458_v55 = vor.u32 %v1457_v44, %v1454_v42  ;;  %v2021_v56 = vshrl.u32 %v1932_v46, 16  ;;  %v2024_v57 = vshll.u32 %v1932_v46, 16  ;;  %v2197_v22 = vsel %vm3770_vm11, %v3003_v47, %v2196_v52  ;;  %v3973_v25 = vld [vmem:[#allocation2 + $0x44] sm:$0x1] }
 0x13b   : > { %v1519_v39 = vpack.c.b16 %v1513_v28, %v1512_v41  ;;  %v2239_v60 = vunpack.c.l.b16 %v2193_v24  ;;  %v2069_v0 = vunpack.c.l.b16 %v2005_v43  ;;  %v2888_v2 = vrot.slane %v1617_v54, 9 }
 0x13c   : > { %v1463_v5 = vrot.slane %v1461_v53, 5  ;;  %v1661_v6 = vrot.slane %v3955_v18, 5  ;;  %v2889_v7 = vrot.slane %v1618_v27, 9  ;;  %v1445_v14 = vrot.slane %v1444_v1, 4 }
 0x13d   : > { %v1459_v15 = vrot.slane %v1458_v55, 4  ;;  %v1665_v16 = vrot.slane %v3959_v50, 5  ;;  %v2023_v17 = vrot.slane %v2021_v56, 4  ;;  %v2933_v28 = vor.u32 %v3150_v12, %v2932_v30 }
 0x13e   : > { %v1934_v51 = vld [vmem:[#allocation2 + $0x48] sm:$0xf]  ;;  %v2030_v40 = vshll.u32 %v3973_v25, 16  ;;  %v1480_v46 = vshrl.u32 %v1379_v31, 16  ;;  %v1483_v47 = vshll.u32 %v1379_v31, 16  ;;  %v2200_v23 = vrot.slane %v3901_v48, 5 }
 0x13f   : > { %1761 = vmatmul.bf16.gmra.mxu2 %v1693_v29  ;;  %v1688_v29 = vunpack.c.l.b16 %v1654_v10  ;;  %v2035_v58 = vshrl.u32 %v1934_v51, 16  ;;  %v2038_v59 = vshll.u32 %v1934_v51, 16  ;;  %v1449_v10 = vrot.slane %v1447_v11, 5 }
 0x140   : > { %1582 = vmatmul.bf16.vlgmr.msrb.gmra.mxu1 %v1518_v33  ;;  %v2018_v33 = vrot.slane %v2016_v9, 5  ;;  %v1464_v35 = vsel %vm3789_vm12, %v1459_v15, %v1463_v5  ;;  %v1666_v36 = vsel %vm3770_vm11, %v2889_v7, %v1665_v16  ;;  %v2032_v43 = vrot.slane %v2030_v40, 5 }
 0x141   : > { %v1694_v45 = vpack.c.b16 %v1689_v32, %v1688_v29  ;;  %v2037_v20 = vrot.slane %v2035_v58, 4  ;;  %v2040_v21 = vrot.slane %v2038_v59, 5  ;;  %v1662_v29 = vsel %vm3770_vm11, %v2888_v2, %v1661_v6  ;;  %v1377_v32 = vld [vmem:[#allocation2 + $0x38] sm:$0xf]  ;;  %v3151_v2 = vld [vmem:[#allocation2 + $0x44] sm:$0xf0] }
 0x142   : > { %v2019_v49 = vsel %vm3789_vm12, %v2014_v37, %v2018_v33  ;;  %v1450_v34 = vsel %vm3789_vm12, %v1445_v14, %v1449_v10  ;;  %v3975_v37 = vld [vmem:[#allocation2 + $0x4c] sm:$0x1]  ;;  %v1466_v44 = vshrl.u32 %v1377_v32, 16  ;;  %v1515_v11 = vunpack.c.l.b16 %v1464_v35  ;;  %v2936_v10 = vld [vmem:[#allocation2 + $0x40] sm:$0xf] }
 0x143   : > { %v2070_v13 = vunpack.c.l.b16 %v2019_v49  ;;  %v2041_v41 = vor.u32 %v2040_v21, %v2037_v20  ;;  %v2044_v42 = vshll.u32 %v3975_v37, 16  ;;  %v1690_v51 = vunpack.c.l.b16 %v1662_v29  ;;  %v2169_v20 = vld [vmem:[#allocation2 + $0x28] sm:$0xe] }
 0x144   : > { %v1691_v24 = vunpack.c.l.b16 %v1666_v36  ;;  %v1468_v53 = vrot.slane %v1466_v44, 4  ;;  %v1482_v55 = vrot.slane %v1480_v46, 4  ;;  %v1485_v27 = vrot.slane %v1483_v47, 5  ;;  %v2170_v44 = vld [vmem:[#allocation2 + $0x30] sm:$0xe] }
 0x145   : > { %v2075_v33 = vpack.c.b16 %v2070_v13, %v2069_v0  ;;  %v2042_v49 = vrot.slane %v2041_v41, 4  ;;  %v2046_v1 = vrot.slane %v2044_v42, 5  ;;  %v1489_v0 = vshll.u32 %v3959_v50, 16 }
 0x146   : > { %1896 = vmatmul.bf16.gmra.mxu3 %v2929_v62  ;;  %2142 = vmatmul.bf16.gmra.mxu0 %v2074_v19  ;;  %v2240_v62 = vunpack.c.l.b16 %v2197_v22  ;;  %v2026_v19 = vrot.slane %v2024_v57, 5  ;;  %v1695_v57 = vpack.c.b16 %v1691_v24, %v1690_v51  ;;  %v2937_v13 = vor.u32 %v3151_v2, %v2936_v10 }
 0x147   : > { %v2047_v58 = vsel %vm3789_vm12, %v2042_v49, %v2046_v1  ;;  %v1491_v12 = vrot.slane %v1489_v0, 5  ;;  %v3006_v47 = vrot.slane %v2170_v44, 9  ;;  %v2212_v51 = vrot.slane %v3937_v4, 5  ;;  %v2173_v4 = vld [vmem:[#allocation2 + $0x48] sm:$0xe] }
 0x148   : > { %v3962_v9 = vpack.c.b16 %v2240_v62, %v2239_v60  ;;  %v2027_v38 = vor.u32 %v2026_v19, %v2023_v17  ;;  %v1475_v60 = vshll.u32 %v3955_v18, 16  ;;  %v1486_v62 = vor.u32 %v1485_v27, %v1482_v55  ;;  %v2168_v19 = vld [vmem:[#allocation2 + $0x20] sm:$0xe] }
 0x149   : > { %v2072_v5 = vunpack.c.l.b16 %v2047_v58  ;;  %v3004_v29 = vrot.slane %v2168_v19, 9  ;;  %v2172_v58 = vld [vmem:[#allocation2 + $0x40] sm:$0xe]  ;;  %v2216_v0 = vrot.slane %v3973_v25, 5  ;;  %v3009_v10 = vrot.slane %v2173_v4, 9 }
 0x14a   : > { %v2028_v52 = vrot.slane %v2027_v38, 4  ;;  %v1477_v7 = vrot.slane %v1475_v60, 5  ;;  %v1487_v8 = vrot.slane %v1486_v62, 4  ;;  %v3008_v62 = vrot.slane %v2172_v58, 9 }
 0x14b   : > { %v2201_v26 = vsel %vm3770_vm11, %v3004_v29, %v2200_v23  ;;  %v2220_v2 = vrot.slane %v3975_v37, 5 }
 0x14c   : > { %v2033_v22 = vsel %vm3789_vm12, %v2028_v52, %v2032_v43  ;;  %v1492_v50 = vsel %vm3789_vm12, %v1487_v8, %v1491_v12  ;;  %v2241_v36 = vunpack.c.l.b16 %v2201_v26 }
 0x14d   : > { %v2071_v30 = vunpack.c.l.b16 %v2033_v22  ;;  %v1517_v16 = vunpack.c.l.b16 %v1492_v50 }
 0x14f   : > { %1766 = vmatmul.bf16.gmra.mxu2 %v1694_v45  ;;  %v1469_v45 = vshll.u32 %v1377_v32, 16  ;;  %v2076_v14 = vpack.c.b16 %v2072_v5, %v2071_v30  ;;  %v3005_v32 = vrot.slane %v2169_v20, 9 }
 0x150   : > { %1587 = vmatmul.bf16.gmra.mxu1 %v1519_v39  ;;  %v1514_v39 = vunpack.c.l.b16 %v1450_v34 }
 0x151   : > { %v1471_v54 = vrot.slane %v1469_v45, 5  ;;  %v2171_v45 = vld [vmem:[#allocation2 + $0x38] sm:$0xe] }
 0x152   : > { %v1520_v56 = vpack.c.b16 %v1515_v11, %v1514_v39  ;;  %v2208_v39 = vrot.slane %v3931_v61, 5  ;;  %v3007_v11 = vrot.slane %v2171_v45, 9 }
 0x153   : > { %v1472_v59 = vor.u32 %v1471_v54, %v1468_v53 }
 0x154   : > { %v2209_v43 = vsel %vm3770_vm11, %v3006_v47, %v2208_v39  ;;  %v2213_v49 = vsel %vm3770_vm11, %v3007_v11, %v2212_v51 }
 0x155   : > { %v1473_v6 = vrot.slane %v1472_v59, 4  ;;  %v2243_v53 = vunpack.c.l.b16 %v2209_v43  ;;  %v2244_v54 = vunpack.c.l.b16 %v2213_v49 }
 0x156   : > { %1901 = vmatmul.bf16.gmra.mxu3 %v2933_v28  ;;  %2147 = vmatmul.bf16.gmra.mxu0 %v2075_v33  ;;  %v2204_v28 = vrot.slane %v3911_v63, 5 }
 0x157   : > { %v1478_v18 = vsel %vm3789_vm12, %v1473_v6, %v1477_v7  ;;  %v2249_v22 = vpack.c.b16 %v2244_v54, %v2243_v53  ;;  %v2217_v6 = vsel %vm3770_vm11, %v3008_v62, %v2216_v0  ;;  %v2221_v7 = vsel %vm3770_vm11, %v3009_v10, %v2220_v2  ;;  %v3179_v0 = vld [vmem:[#allocation9 + $0x18] sm:$0xff] }
 0x158   : > { %v1516_v15 = vunpack.c.l.b16 %v1478_v18  ;;  %v2205_v33 = vsel %vm3770_vm11, %v3005_v32, %v2204_v28  ;;  %v2246_v18 = vunpack.c.l.b16 %v2221_v7 }
 0x159   : > { %v2242_v38 = vunpack.c.l.b16 %v2205_v33 }
 0x15a   : > { %v1521_v17 = vpack.c.b16 %v1517_v16, %v1516_v15 }
 0x15b   : > { %v2248_v42 = vpack.c.b16 %v2242_v38, %v2241_v36 }
 0x15f   : > { %1771 = vmatmul.bf16.gmra.mxu2 %v1695_v57 }
 0x160   : > { %1592 = vmatmul.bf16.gmra.mxu1 %v1520_v56 }
 0x166   : > { %1906 = vmatmul.bf16.gmra.mxu3 %v2937_v13  ;;  %2152 = vmatmul.bf16.gmra.mxu0 %v2076_v14  ;;  %v2245_v14 = vunpack.c.l.b16 %v2217_v6 }
 0x168   : > { %v2250_v19 = vpack.c.b16 %v2246_v18, %v2245_v14 }
 0x170   : > { %1597 = vmatmul.bf16.gmra.mxu1 %v1521_v17 }
 0x171   : > { %v1034_v21 = vpop.f32.mrf.mxu2 }
 0x173   : > { %v1337_v31 = vpop.f32.mrf.mxu0 }
 0x176   : > { %2311 = vmatmul.bf16.vlgmr.msrb.gmra.mxu0 %v3962_v9 }
 0x179   : > { %v1203_v34 = vpop.f32.mrf.mxu3  ;;  %v1036_v35 = vpop.f32.mrf.mxu2 }
 0x17b   : > { %v1339_v40 = vpop.f32.mrf.mxu0 }
 0x17d   : > { %v933_v41 = vpop.f32.mrf.mxu1 }
 0x17e   : > { %v1035_v48 = vadd.f32 %v1034_v21, %v933_v41  ;;  %v3183_v41 = vld [vmem:[#allocation9 + $0x38] sm:$0xff] }
 0x17f   : > { %2432 = vmatpush.bf16.msra.mxu2 %v3183_v41  ;;  %3220 = vmatpush.bf16.msrb.mxu3 %v3183_v41  ;;  %v3311_v41 = vld [vmem:[%s4092_s5] ss:$0 sm:$0xff] }
 0x180   : > { %v1223_v63 = vadd.f32 %v1203_v34, %v1035_v48  ;;  %2316 = vmatmul.bf16.vlgmr.msra.gmra.mxu1 %v2248_v42 }
 0x181   : > { %v1205_v46 = vpop.f32.mrf.mxu3 }
 0x182   : > { %v1039_v9 = vpop.f32.mrf.mxu2  ;;  %v1357_v8 = vadd.f32 %v1337_v31, %v1223_v63 }
 0x183   : > { %v1342_v24 = vpop.f32.mrf.mxu0 }
 0x185   : > { %v935_v52 = vpop.f32.mrf.mxu1 }
 0x186   : > { %v1037_v13 = vadd.f32 %v1036_v35, %v935_v52 }
 0x188   : > { %v1224_v25 = vadd.f32 %v1205_v46, %v1037_v13  ;;  %v3182_v46 = vld [vmem:[#allocation9 + $0x30] sm:$0xff] }
 0x189   : > { %v1208_v1 = vpop.f32.mrf.mxu3  ;;  %2433 = vmatpush.bf16.msra.mxu2 %v3182_v46  ;;  %3221 = vmatpush.bf16.msrb.mxu3 %v3182_v46 }
 0x18a   : > { %v1041_v55 = vpop.f32.mrf.mxu2  ;;  %v4008_v21 = vadd.f32 %v1339_v40, %v1224_v25 }
 0x18b   : > { %v1344_v27 = vpop.f32.mrf.mxu0 }
 0x18d   : > { %v938_v56 = vpop.f32.mrf.mxu1 }
 0x18e   : > { %v1040_v57 = vadd.f32 %v1039_v9, %v938_v56 }
 0x190   : > { %v1225_v61 = vadd.f32 %v1208_v1, %v1040_v57  ;;  %2321 = vmatmul.bf16.gmra.mxu1 %v2249_v22 }
 0x191   : > { %v1210_v59 = vpop.f32.mrf.mxu3 }
 0x192   : > { %v1044_v60 = vpop.f32.mrf.mxu2  ;;  %v1359_v31 = vadd.f32 %v1342_v24, %v1225_v61  ;;  %v3181_v24 = vld [vmem:[#allocation9 + $0x28] sm:$0xff] }
 0x193   : > { %v1347_v30 = vpop.f32.mrf.mxu0  ;;  %2434 = vmatpush.bf16.msra.mxu2 %v3181_v24  ;;  %3222 = vmatpush.bf16.msrb.mxu3 %v3181_v24 }
 0x195   : > { %v940_v5 = vpop.f32.mrf.mxu1 }
 0x196   : > { %v1042_v32 = vadd.f32 %v1041_v55, %v940_v5  ;;  %v3180_v55 = vld [vmem:[#allocation9 + $0x20] sm:$0xff] }
 0x197   : > { %2435 = vmatpush.bf16.msra.mxu2 %v3180_v55  ;;  %3223 = vmatpush.bf16.msrb.mxu3 %v3180_v55 }
 0x198   : > { %v1226_v34 = vadd.f32 %v1210_v59, %v1042_v32 }
 0x199   : > { %v1213_v12 = vpop.f32.mrf.mxu3 }
 0x19a   : > { %v1046_v50 = vpop.f32.mrf.mxu2  ;;  %v4010_v48 = vadd.f32 %v1344_v27, %v1226_v34 }
 0x19b   : > { %v1349_v15 = vpop.f32.mrf.mxu0  ;;  %2436 = vmatpush.bf16.msra.mxu2 %v3179_v0  ;;  %3224 = vmatpush.bf16.msrb.mxu3 %v3179_v0 }
 0x19d   : > { %v943_v16 = vpop.f32.mrf.mxu1 }
 0x19e   : > { %v1045_v17 = vadd.f32 %v1044_v60, %v943_v16 }
 0x1a0   : > { %v1227_v37 = vadd.f32 %v1213_v12, %v1045_v17  ;;  %2326 = vmatmul.bf16.gmra.mxu1 %v2250_v19  ;;  %v3178_v12 = vld [vmem:[#allocation9 + $0x10] sm:$0xff]  ;;  %v3177_v17 = vld [vmem:[#allocation9 + $0x8] sm:$0xff] }
 0x1a1   : > { %v1215_v20 = vpop.f32.mrf.mxu3  ;;  %2437 = vmatpush.bf16.msra.mxu2 %v3178_v12  ;;  %3225 = vmatpush.bf16.msrb.mxu3 %v3178_v12 }
 0x1a2   : > { %v1049_v3 = vpop.f32.mrf.mxu2  ;;  %v1361_v9 = vadd.f32 %v1347_v30, %v1227_v37 }
 0x1a3   : > { %v1352_v23 = vpop.f32.mrf.mxu0 }
 0x1a5   : > { %v945_v28 = vpop.f32.mrf.mxu1  ;;  %2438 = vmatpush.bf16.msra.mxu2 %v3177_v17  ;;  %3226 = vmatpush.bf16.msrb.mxu3 %v3177_v17 }
 0x1a6   : > { %v1047_v45 = vadd.f32 %v1046_v50, %v945_v28  ;;  %v3176_v28 = vld [vmem:[#allocation9] sm:$0xff] }
 0x1a8   : > { %v1228_v51 = vadd.f32 %v1215_v20, %v1047_v45 }
 0x1a9   : > { %v1218_v29 = vpop.f32.mrf.mxu3  ;;  %2439 = vmatpush.bf16.msra.mxu2 %v3176_v28  ;;  %3227 = vmatpush.bf16.msrb.mxu3 %v3176_v28 }
 0x1aa   : > { %v1051_v36 = vpop.f32.mrf.mxu2  ;;  %v4014_v52 = vadd.f32 %v1349_v15, %v1228_v51 }
 0x1ab   : > { %v1354_v26 = vpop.f32.mrf.mxu0 }
 0x1ad   : > { %v948_v33 = vpop.f32.mrf.mxu1 }
 0x1ae   : > { %v1050_v35 = vadd.f32 %v1049_v3, %v948_v33 }
 0x1b0   : > { %v1229_v38 = vadd.f32 %v1218_v29, %v1050_v35 }
 0x1b1   : > { %v1220_v42 = vpop.f32.mrf.mxu3 }
 0x1b2   : > { %v1757_v44 = vpop.f32.mrf.mxu2  ;;  %v4016_v27 = vadd.f32 %v1352_v23, %v1229_v38 }
 0x1b3   : > { %v2138_v63 = vpop.f32.mrf.mxu0 }
 0x1b5   : > { %v950_v40 = vpop.f32.mrf.mxu1 }
 0x1b6   : > { %v1052_v54 = vadd.f32 %v1051_v36, %v950_v40 }
 0x1b8   : > { %v1230_v61 = vadd.f32 %v1220_v42, %v1052_v54 }
 0x1b9   : > { %v1892_v11 = vpop.f32.mrf.mxu3 }
 0x1ba   : > { %v1759_v43 = vpop.f32.mrf.mxu2  ;;  %v4020_v10 = vadd.f32 %v1354_v26, %v1230_v61 }
 0x1bb   : > { %v4012_v47 = vpop.f32.mrf.mxu0 }
 0x1bd   : > { %v1583_v39 = vpop.f32.mrf.mxu1 }
 0x1be   : > { %v1603_v58 = vadd.f32 %v1583_v39, %v1357_v8 }
 0x1c0   : > { %v1777_v60 = vadd.f32 %v1757_v44, %v1603_v58 }
 0x1c1   : > { %v1894_v53 = vpop.f32.mrf.mxu3 }
 0x1c2   : > { %v1762_v57 = vpop.f32.mrf.mxu2  ;;  %v1912_v5 = vadd.f32 %v1892_v11, %v1777_v60 }
 0x1c3   : > { %v2143_v49 = vpop.f32.mrf.mxu0 }
 0x1c4   : > { %v2158_v13 = vadd.f32 %v2138_v63, %v1912_v5 }
 0x1c5   : > { %v1585_v1 = vpop.f32.mrf.mxu1 }
 0x1c9   : > { %v1897_v59 = vpop.f32.mrf.mxu3 }
 0x1ca   : > { %v1764_v7 = vpop.f32.mrf.mxu2 }
 0x1cb   : > { %v4018_v56 = vpop.f32.mrf.mxu0 }
 0x1cd   : > { %v1588_v22 = vpop.f32.mrf.mxu1 }
 0x1ce   : > { %v1605_v4 = vadd.f32 %v1588_v22, %v1359_v31  ;;  %v1604_v31 = vadd.f32 %v1585_v1, %v4008_v21 }
 0x1d0   : > { %v1779_v62 = vadd.f32 %v1762_v57, %v1605_v4  ;;  %v1778_v26 = vadd.f32 %v1759_v43, %v1604_v31 }
 0x1d1   : > { %v1899_v18 = vpop.f32.mrf.mxu3 }
 0x1d2   : > { %v1914_v6 = vadd.f32 %v1897_v59, %v1779_v62  ;;  %v1767_v16 = vpop.f32.mrf.mxu2  ;;  %v1913_v35 = vadd.f32 %v1894_v53, %v1778_v26 }
 0x1d3   : > { %v2148_v2 = vpop.f32.mrf.mxu0 }
 0x1d4   : > { %v2160_v14 = vadd.f32 %v2143_v49, %v1914_v6  ;;  %v2159_v42 = vadd.f32 %v4012_v47, %v1913_v35 }
 0x1d5   : > { %v1590_v30 = vpop.f32.mrf.mxu1 }
 0x1d6   : > { %v1606_v36 = vadd.f32 %v1590_v30, %v4010_v48 }
 0x1d8   : > { %v1780_v63 = vadd.f32 %v1764_v7, %v1606_v36 }
 0x1d9   : > { %v1902_v37 = vpop.f32.mrf.mxu3 }
 0x1da   : > { %v1915_v21 = vadd.f32 %v1899_v18, %v1780_v63  ;;  %v1769_v53 = vpop.f32.mrf.mxu2 }
 0x1db   : > { %v2150_v50 = vpop.f32.mrf.mxu0 }
 0x1dc   : > { %v2161_v48 = vadd.f32 %v4018_v56, %v1915_v21 }
 0x1dd   : > { %v1593_v8 = vpop.f32.mrf.mxu1 }
 0x1de   : > { %v1607_v15 = vadd.f32 %v1593_v8, %v1361_v9 }
 0x1e0   : > { %v1781_v25 = vadd.f32 %v1767_v16, %v1607_v15 }
 0x1e1   : > { %v1904_v22 = vpop.f32.mrf.mxu3 }
 0x1e2   : > { %v1916_v23 = vadd.f32 %v1902_v37, %v1781_v25  ;;  %v1772_v60 = vpop.f32.mrf.mxu2 }
 0x1e3   : > { %v4022_v19 = vpop.f32.mrf.mxu0 }
 0x1e4   : > { %v2162_v3 = vadd.f32 %v2148_v2, %v1916_v23 }
 0x1e5   : > { %v1595_v20 = vpop.f32.mrf.mxu1 }
 0x1e6   : > { %v1608_v47 = vadd.f32 %v1595_v20, %v4014_v52 }
 0x1e8   : > { %v1782_v61 = vadd.f32 %v1769_v53, %v1608_v47 }
 0x1e9   : > { %v1907_v2 = vpop.f32.mrf.mxu3 }
 0x1ea   : > { %v1917_v59 = vadd.f32 %v1904_v22, %v1782_v61  ;;  %v1774_v18 = vpop.f32.mrf.mxu2  ;;  %v3203_v22 = vld [vmem:[%s3682_s23 + $0x18] sm:$0xff]  }
 0x1eb   : > { %v2155_v29 = vpop.f32.mrf.mxu0 }
 0x1ec   : > { %v2163_v56 = vadd.f32 %v2150_v50, %v1917_v59 }
 0x1ed   : > { %v1598_v32 = vpop.f32.mrf.mxu1 }
 0x1ee   : > { %v1609_v0 = vadd.f32 %v1598_v32, %v4016_v27 }
 0x1f0   : > { %v1783_v7 = vadd.f32 %v1772_v60, %v1609_v0 }
 0x1f1   : > { %v1909_v17 = vpop.f32.mrf.mxu3 }
 0x1f2   : > { %v1918_v8 = vadd.f32 %v1907_v2, %v1783_v7 }
 0x1f3   : > { %v2312_v33 = vpop.f32.mrf.mxu0 }
 0x1f4   : > { %v2332_v38 = vadd.f32 %v2312_v33, %v2158_v13  ;;  %v2164_v50 = vadd.f32 %v4022_v19, %v1918_v8  ;;  %v3186_v33 = vld [vmem:[%s3682_s23] sm:$0xff]  }
 0x1f5   : > { %v1600_v34 = vpop.f32.mrf.mxu1  ;;  %v3187_v35 = vunpack.c.l.bf16 %v3186_v33 }
 0x1f6   : > { %v2344_v44 = vadd.f32 %v3311_v41, %v2332_v38  ;;  %v1610_v52 = vadd.f32 %v1600_v34, %v4020_v10  ;;  %v3312_v34 = vld [vmem:[%s4093_s6] ss:$0 sm:$0xff] }
 0x1f8   : > { %v2352_v39 = vmax.f32 %v2344_v44, 0.0  ;;  %v1784_v15 = vadd.f32 %v1774_v18, %v1610_v52  ;;  %v3201_v44 = vld [vmem:[%s3682_s23 + $0x8] sm:$0xff]  }
 0x1fa   : > { %v1919_v27 = vadd.f32 %v1909_v17, %v1784_v15 }
 0x1fb   : > { %v2314_v40 = vpop.f32.mrf.mxu0 }
 0x1fc   : > { %v2333_v46 = vadd.f32 %v2314_v40, %v2159_v42  ;;  %v2165_v20 = vadd.f32 %v2155_v29, %v1919_v27 }
 0x1fd   : > { %v2317_v45 = vpop.f32.mrf.mxu1 }
 0x1fe   : > { %v2345_v9 = vadd.f32 %v3311_v41, %v2333_v46  ;;  %v2334_v51 = vadd.f32 %v2317_v45, %v2160_v14  ;;  %v3191_v46 = vunpack.c.l.bf16 %v3201_v44 }
 0x200   : > { %v2353_v11 = vmax.f32 %v2345_v9, 0.0  ;;  %v2346_v49 = vadd.f32 %v3311_v41, %v2334_v51  ;;  %v3192_v51 = vunpack.c.h.bf16 %v3201_v44 }
 0x202   : > { %v2360_v24 = vpack.c.bf16 %v2353_v11, %v2352_v39  ;;  %v2354_v55 = vmax.f32 %v2346_v49, 0.0  ;;  %v3202_v49 = vld [vmem:[%s3682_s23 + $0x10] sm:$0xff]   ;;  %s2516_s23 = sshll.u32 %s2513_s20, 4  ;;  %s2517_s23 = int_to_ptr.hbm [resolvable:$true] %s2516_s23 }
 0x203   : > { %v3195_v53 = vunpack.c.l.bf16 %v3202_v49  ;;  %v3196_v61 = vunpack.c.h.bf16 %v3202_v49  ;;  %s3447_s28 = sshra.s32 %s2517_s23, 4  ;;  %s3448_s28 = int_to_ptr.hbm [resolvable:$true] %s3447_s28 }
 0x204   : > { %2440 = vmatmul.bf16.vlgmr.msra.gmra.mxu2 %v2360_v24  ;;  %s3449_s12 = scalar_lea.hbm %s3448_s28, 64  ;;  %p3454_p11 = scmp.lt.s32.totalorder %s3448_s28, %s4094_s7 }
 0x205   : > { %v2319_v43 = vpop.f32.mrf.mxu1  ;;  %p3450_p1 = scmp.ne.s32.totalorder %s3448_s28, %s3449_s12  ;;  %p3455_p9 = scmp.lt.s32.totalorder %s3453_s14, %s3449_s12 }
 0x206   : > { %v2335_v1 = vadd.f32 %v2319_v43, %v2161_v48 }
 0x207   : > { %p3451_p4 = pnand %p3450_p1, %p3648_p3  ;;  %p3456_p2 = por %p3455_p9, %p3454_p11 }
 0x208   : > { %v2347_v54 = vadd.f32 %v3311_v41, %v2335_v1 }
 0x209   : > { %p3452_p8 = pneg %p3451_p4 }
 0x20a   : > { %v2355_v57 = vmax.f32 %v2347_v54, 0.0 }
 0x20b   : > { %p3457_p10 = pnand %p3456_p2, %p3452_p8 }
 0x20c   : > { %v2361_v58 = vpack.c.bf16 %v2355_v57, %v2354_v55 }
 0x20d   : > { %v2322_v4 = vpop.f32.mrf.mxu1 }
 0x20e   : > { %v2336_v62 = vadd.f32 %v2322_v4, %v2162_v3 }
 0x210   : > { %v2348_v5 = vadd.f32 %v3311_v41, %v2336_v62 }
 0x212   : > { %v2356_v13 = vmax.f32 %v2348_v5, 0.0  ;;  %v3200_v5 = vunpack.c.h.bf16 %v3203_v22 }
 0x214   : > { %2445 = vmatmul.bf16.gmra.mxu2 %v2361_v58  ;;  %v3199_v58 = vunpack.c.l.bf16 %v3203_v22 }
 0x215   : > { %v2324_v30 = vpop.f32.mrf.mxu1 }
 0x216   : > { %v2337_v6 = vadd.f32 %v2324_v30, %v2163_v56 }
 0x218   : > { %v2349_v12 = vadd.f32 %v3311_v41, %v2337_v6 }
 0x21a   : > { %v2357_v14 = vmax.f32 %v2349_v12, 0.0 }
 0x21c   : > { %v2362_v16 = vpack.c.bf16 %v2357_v14, %v2356_v13 }
 0x21d   : > { %v2327_v25 = vpop.f32.mrf.mxu1 }
 0x21e   : > { %v2338_v37 = vadd.f32 %v2327_v25, %v2164_v50 }
 0x220   : > { %v2350_v28 = vadd.f32 %v3311_v41, %v2338_v37 }
 0x222   : > { %v2358_v32 = vmax.f32 %v2350_v28, 0.0 }
 0x224   : > { %2450 = vmatmul.bf16.gmra.mxu2 %v2362_v16 }
 0x225   : > { %v2329_v23 = vpop.f32.mrf.mxu1 }
 0x226   : > { %v2339_v10 = vadd.f32 %v2329_v23, %v2165_v20 }
 0x228   : > { %v2351_v3 = vadd.f32 %v3311_v41, %v2339_v10  ;;  %v3188_v41 = vunpack.c.h.bf16 %v3186_v33 }
 0x22a   : > { %v2359_v31 = vmax.f32 %v2351_v3, 0.0 }
 0x22c   : > { %v2363_v26 = vpack.c.bf16 %v2359_v31, %v2358_v32 }
 0x22e   : > { %2455 = vmatmul.bf16.vlgmr.msrb.gmra.mxu3 %v2363_v26 }
 0x287   : > { %v2441_v19 = vpop.f32.mrf.mxu2 }
 0x288   : > { %v2442_v36 = vadd.f32 %v3312_v34, %v2441_v19 }
 0x28a   : > { %v2477_v29 = vadd.f32 %v3187_v35, %v2442_v36 }
 0x28c   : > { %v2485_v38 = vmax.f32 %v2477_v29, 0.0 }
 0x28e   : > { %2493 = vst [vmem:[%s4040_s29] sm:$0xff] %v2485_v38 }
 0x28f   : > { %v2443_v42 = vpop.f32.mrf.mxu2 }
 0x290   : > { %v2444_v63 = vadd.f32 %v3312_v34, %v2443_v42 }
 0x292   : > { %v2478_v40 = vadd.f32 %v3188_v41, %v2444_v63 }
 0x294   : > { %v2486_v45 = vmax.f32 %v2478_v40, 0.0 }
 0x296   : > { %2494 = vst [vmem:[%s4040_s29 + $0x8] sm:$0xff] %v2486_v45 }
 0x297   : > { %v2446_v9 = vpop.f32.mrf.mxu2 }
 0x298   : > { %v2447_v21 = vadd.f32 %v3312_v34, %v2446_v9 }
 0x29a   : > { %v2479_v39 = vadd.f32 %v3191_v46, %v2447_v21 }
 0x29c   : > { %v2487_v11 = vmax.f32 %v2479_v39, 0.0 }
 0x29e   : > { %2495 = vst [vmem:[%s4040_s29 + $0x10] sm:$0xff] %v2487_v11 }
 0x29f   : > { %v2448_v24 = vpop.f32.mrf.mxu2 }
 0x2a0   : > { %v2449_v48 = vadd.f32 %v3312_v34, %v2448_v24 }
 0x2a2   : > { %v2480_v43 = vadd.f32 %v3192_v51, %v2449_v48 }
 0x2a4   : > { %v2488_v1 = vmax.f32 %v2480_v43, 0.0 }
 0x2a6   : > { %2496 = vst [vmem:[%s4040_s29 + $0x18] sm:$0xff] %v2488_v1 }
 0x2a7   : > { %v2451_v47 = vpop.f32.mrf.mxu2 }
 0x2a8   : > { %v2452_v54 = vadd.f32 %v3312_v34, %v2451_v47 }
 0x2aa   : > { %v2481_v55 = vadd.f32 %v3195_v53, %v2452_v54 }
 0x2ac   : > { %v2489_v57 = vmax.f32 %v2481_v55, 0.0 }
 0x2ae   : > { %2497 = vst [vmem:[%s4040_s29 + $0x20] sm:$0xff] %v2489_v57 }
 0x2af   : > { %v2453_v4 = vpop.f32.mrf.mxu2 }
 0x2b0   : > { %v2454_v60 = vadd.f32 %v3312_v34, %v2453_v4 }
 0x2b1   : > { %v2456_v59 = vpop.f32.mrf.mxu3 }
 0x2b2   : > { %v2457_v62 = vadd.f32 %v3312_v34, %v2456_v59  ;;  %v2482_v0 = vadd.f32 %v3196_v61, %v2454_v60 }
 0x2b4   : > { %v2483_v56 = vadd.f32 %v3199_v58, %v2457_v62  ;;  %v2490_v2 = vmax.f32 %v2482_v0, 0.0 }
 0x2b6   : > { %v2491_v30 = vmax.f32 %v2483_v56, 0.0  ;;  %2498 = vst [vmem:[%s4040_s29 + $0x28] sm:$0xff] %v2490_v2 }
 0x2b8   : > { %2499 = vst [vmem:[%s4040_s29 + $0x30] sm:$0xff] %v2491_v30 }
 0x2b9   : > { %v2458_v6 = vpop.f32.mrf.mxu3 }
 0x2ba   : > { %v2459_v7 = vadd.f32 %v3312_v34, %v2458_v6 }
 0x2bc   : > { %v2484_v52 = vadd.f32 %v3200_v5, %v2459_v7 }
 0x2be   : > { %v2492_v12 = vmax.f32 %v2484_v52, 0.0 }
 0x2c0   : > { %2500 = vst [vmem:[%s4040_s29 + $0x38] sm:$0xff] %v2492_v12 }
 0x2c1   : > { %3460 = shalt.err (!%p3457_p10)
}
 0x2c2   : > { %s3515_s15 = smov 128   ;;  %s3516_s29 = smov 8  }
 0x2c3   : > { %3242 = dma.vmem_to_hbm [thread:$0]  (%p3648_p3), %s2515_s1, 1024, %s2517_s23, %s2502_s30, %s3515_s15, %s3515_s15, %s3516_s29  }
 0x2c4 PF: > { %s2531_s9 = sand.u32 1, %s3495_s24   ;;  %p4117_p12 = scmp.ge.s32.totalorder %s3507_s27, 2 }
 0x2c5   : > { %s2532_s21 = scalar_lea.sflag [#allocation5], %s2531_s9 }
 0x2c6   : > { %p3259_p13 = pnand %p4117_p12, %p3592_p6 }
 0x2c8   : > { %p3260_p0 = pneg %p3259_p13 }
 0x2ca   : > { %3490 = dma.done.wait (%p3260_p0), %s2532_s21, 1024  }
 0x2cb   : > { %3492 = vsyncadd (%p3260_p0), %s2532_s21, 4294966272  ;;  %p22_p5 = scmp.ge.s32.totalorder %s3630_s13, 4   ;;  %s4118_s24 = smov %s3499_s25 }
 0x2cc   : > { %s4119_s25 = smov %s3503_s26  ;;  %s4120_s26 = smov %s3644_s17 }
 0x2cd   : > { %s4121_s27 = smov %s3630_s13  ;;  %24 = sbr.rel (!%p22_p5) target bundleno = 9 (0x9), region = 116 }
 0x2d2   :  { %2538 = vsyncpa [#allocation4], 1 }
 0x2d3   :  { %2540 = vsyncpa [#allocation4 + $0x1], 1 }
 0x2d4   :  { %2541 = vsyncpa [#allocation7], 1 }
 0x2d5   :  { %2542 = vsyncpa [#allocation10], 1 }
 0x2d6   :  { %2543 = vsyncpa [#allocation5], 1 }
 0x2d7   :  { %2545 = vsyncpa [#allocation5 + $0x1], 1 }

</bundles_post_ra>
